<compile_context>
chip_gen: v6e
topology: v6e:2x2x1
jax: 0.10.0
libtpu: 0.0.40
codegen_flags: <defaults>
</compile_context>

<pallas_src>
import functools

import jax
import jax.numpy as jnp
from jax.experimental import pallas as pl
from jax.experimental.pallas import tpu as pltpu


def _attn_kernel(*refs, hb, keep_scale, apply_dropout):
    # refs (apply_dropout=True):  bias(1,SK) f32, scores(hb,SQ,SK) f32,
    #                             values(hb,SK,D) bf16, mask(hb,SQ,SK) i8, out(hb,SQ,D) f32
    # refs (apply_dropout=False): same without the mask.
    if apply_dropout:
        bias_ref, s_ref, v_ref, m_ref, o_ref = refs
    else:
        bias_ref, s_ref, v_ref, o_ref = refs
        m_ref = None

    bias = bias_ref[...]  # (1, SK), hoisted out of the head loop

    for h in range(hb):  # static unroll over the heads of this block
        scores = s_ref[h] + bias                                   # (SQ, SK)
        m = jnp.max(scores, axis=-1, keepdims=True)
        e = jnp.exp(scores - m)                                    # EUP
        denom = jnp.sum(e, axis=-1, keepdims=True)                 # XLU reduce
        # Fold the dropout keep-scale into the per-row normalizer (a (SQ,1) op).
        # approx=False kept for interpret-mode portability; this is a (SQ,1)
        # tensor so the EUP-approx saving is negligible anyway.
        inv = pl.reciprocal(denom, approx=False) * keep_scale
        probs = e * inv                                            # (SQ, SK) f32

        if apply_dropout:
            probs = probs * m_ref[h].astype(jnp.float32)           # 0/1 keep mask

        # bf16 x bf16 -> f32 accumulate on the MXU.
        o_ref[h] = jnp.dot(
            probs.astype(jnp.bfloat16),
            v_ref[h],
            preferred_element_type=jnp.float32,
        ).astype(o_ref.dtype)


def attn_softmax_dropout_matmul(x301, x293, bias, *, p_drop=0.1,
                                apply_dropout=True, rng_key=None, head_block=2):
    """x301: (B,H,SQ,SK) f32 scores; x293: (B,H,SK,D) f32 values; bias: (1,1,1,SK) f32."""
    B, H, SQ, SK = x301.shape
    _, _, _, D = x293.shape
    BH = B * H

    hb = head_block
    if BH % hb != 0:
        hb = 1
    grid = (BH // hb,)

    scores = x301.reshape(BH, SQ, SK)
    values = x293.reshape(BH, SK, D).astype(jnp.bfloat16)  # halve V DMA; MXU-native
    bias2d = bias.reshape(1, SK)

    in_arrays = [bias2d, scores, values]
    in_specs = [
        pl.BlockSpec((1, SK), lambda g: (0, 0)),            # bias (re-used every step)
        pl.BlockSpec((hb, SQ, SK), lambda g: (g, 0, 0)),     # scores
        pl.BlockSpec((hb, SK, D), lambda g: (g, 0, 0)),      # values (q-invariant)
    ]

    if apply_dropout:
        if rng_key is None:
            rng_key = jax.random.PRNGKey(0)
        keep = jax.random.bernoulli(rng_key, 1.0 - p_drop, (BH, SQ, SK))
        in_arrays.append(keep.astype(jnp.int8))              # 1 byte/elem keep mask
        in_specs.append(pl.BlockSpec((hb, SQ, SK), lambda g: (g, 0, 0)))
        keep_scale = 1.0 / (1.0 - p_drop)
    else:
        keep_scale = 1.0

    kernel = functools.partial(
        _attn_kernel, hb=hb, keep_scale=float(keep_scale), apply_dropout=apply_dropout
    )

    out = pl.pallas_call(
        kernel,
        out_shape=jax.ShapeDtypeStruct((BH, SQ, D), jnp.float32),
        grid_spec=pltpu.PrefetchScalarGridSpec(
            num_scalar_prefetch=0,
            grid=grid,
            in_specs=in_specs,
            out_specs=pl.BlockSpec((hb, SQ, D), lambda g: (g, 0, 0)),
        ),
        compiler_params=pltpu.CompilerParams(
            dimension_semantics=("parallel",),   # >=2 steps -> both v7x TCs used
        ),
    )(*in_arrays)

    return out.reshape(B, H, SQ, D)


if __name__ == "__main__":
    # Small shapes consistent with the module's (1, 12, 384, 384)/(1, 12, 384, 64).
    B, H, S, D = 1, 4, 256, 64

    key = jax.random.PRNGKey(0)
    k1, k2, k3, k4 = jax.random.split(key, 4)
    x301 = jax.random.normal(k1, (B, H, S, S), dtype=jnp.float32)   # scores
    x293 = jax.random.normal(k2, (B, H, S, D), dtype=jnp.float32)   # values
    bias = jax.random.uniform(k3, (1, 1, 1, S), dtype=jnp.float32)  # _tensor_constant20

    # Deterministic part (softmax + matmul) vs plain JAX; tolerance loosened
    # because the matmul inputs are bf16 (f32 accumulate).
    out_nodrop = attn_softmax_dropout_matmul(x301, x293, bias, apply_dropout=False)
    ref = jnp.einsum(
        "bhqk,bhkd->bhqd", jax.nn.softmax(x301 + bias, axis=-1), x293
    )
    assert jnp.allclose(out_nodrop, ref, atol=2e-2, rtol=2e-2), float(
        jnp.max(jnp.abs(out_nodrop - ref))
    )

    # Full forward (dropout active, as in the module's default training mode).
    out = attn_softmax_dropout_matmul(x301, x293, bias, apply_dropout=True, rng_key=k4)
    jax.block_until_ready(out)
    assert out.shape == (B, H, S, D)
    print("KERNEL_OK")
</pallas_src>

<mosaic_0001>
module attributes {stable_mosaic.version = 11 : i64} {
  func.func @_attn_kernel(%arg0: i32, %arg1: memref<1x256xf32, #tpu.memory_space<vmem>>, %arg2: memref<2x256x256xf32, #tpu.memory_space<vmem>>, %arg3: memref<2x256x64xbf16, #tpu.memory_space<vmem>>, %arg4: memref<2x256x64xf32, #tpu.memory_space<vmem>>) attributes {dimension_semantics = [#tpu.dimension_semantics<parallel>], iteration_bounds = array<i64: 2>, scalar_prefetch = 0 : i64, scratch_operands = 0 : i64, tpu.core_type = #tpu.core_type<tc>, window_params = [{pipeline_mode = #tpu.pipeline_mode<synchronous>, transform_indices = @transform_0, window_bounds = array<i64: 1, 256>}, {transform_indices = @transform_1, window_bounds = array<i64: 2, 256, 256>}, {transform_indices = @transform_2, window_bounds = array<i64: 2, 256, 64>}, {transform_indices = @transform_3, window_bounds = array<i64: 2, 256, 64>}]} {
    %c0 = arith.constant 0 : index
    %c0_0 = arith.constant 0 : index
    %0 = vector.load %arg1[%c0, %c0_0] : memref<1x256xf32, #tpu.memory_space<vmem>>, vector<1x256xf32>
    %c0_1 = arith.constant 0 : index
    %c0_2 = arith.constant 0 : index
    %c0_3 = arith.constant 0 : index
    %1 = vector.load %arg2[%c0_1, %c0_2, %c0_3] : memref<2x256x256xf32, #tpu.memory_space<vmem>>, vector<1x256x256xf32>
    %2 = vector.shape_cast %1 : vector<1x256x256xf32> to vector<256x256xf32>
    %3 = vector.broadcast %0 : vector<1x256xf32> to vector<256x256xf32>
    %4 = arith.addf %2, %3 : vector<256x256xf32>
    %cst = arith.constant dense<0xFF800000> : vector<256xf32>
    %5 = vector.multi_reduction <maximumf>, %4, %cst [1] : vector<256x256xf32> to vector<256xf32>
    %6 = vector.shape_cast %5 : vector<256xf32> to vector<256x1xf32>
    %7 = vector.broadcast %6 : vector<256x1xf32> to vector<256x256xf32>
    %8 = arith.subf %4, %7 : vector<256x256xf32>
    %9 = math.exp %8 : vector<256x256xf32>
    %cst_4 = arith.constant dense<0.000000e+00> : vector<256xf32>
    %10 = vector.multi_reduction <add>, %9, %cst_4 [1] : vector<256x256xf32> to vector<256xf32>
    %11 = vector.shape_cast %10 : vector<256xf32> to vector<256x1xf32>
    %12 = tpu.reciprocal %11 : vector<256x1xf32> -> vector<256x1xf32>
    %cst_5 = arith.constant 1.000000e+00 : f32
    %13 = vector.broadcast %cst_5 : f32 to vector<256x1xf32>
    %14 = arith.mulf %12, %13 : vector<256x1xf32>
    %15 = vector.broadcast %14 : vector<256x1xf32> to vector<256x256xf32>
    %16 = arith.mulf %9, %15 : vector<256x256xf32>
    %17 = arith.truncf %16 : vector<256x256xf32> to vector<256x256xbf16>
    %c0_6 = arith.constant 0 : index
    %c0_7 = arith.constant 0 : index
    %c0_8 = arith.constant 0 : index
    %18 = vector.load %arg3[%c0_6, %c0_7, %c0_8] : memref<2x256x64xbf16, #tpu.memory_space<vmem>>, vector<1x256x64xbf16>
    %19 = vector.shape_cast %18 : vector<1x256x64xbf16> to vector<256x64xbf16>
    %cst_9 = arith.constant dense<0.000000e+00> : vector<256x64xf32>
    %20 = tpu.matmul %17, %19, %cst_9 {dimension_numbers = #tpu.dot_dimension_numbers<[1], [0], [0], [1], [0, 0, 1, 1], [], []>} : vector<256x256xbf16>, vector<256x64xbf16>, vector<256x64xf32> -> vector<256x64xf32>
    %c0_10 = arith.constant 0 : index
    %c0_11 = arith.constant 0 : index
    %c0_12 = arith.constant 0 : index
    %21 = vector.load %arg4[%c0_10, %c0_11, %c0_12] : memref<2x256x64xf32, #tpu.memory_space<vmem>>, vector<1x256x64xf32>
    %22 = vector.shape_cast %21 : vector<1x256x64xf32> to vector<256x64xf32>
    %23 = vector.shape_cast %20 : vector<256x64xf32> to vector<1x256x64xf32>
    tpu.vector_store %arg4[%c0_10, %c0_11, %c0_12], %23 {strides = array<i32>} : memref<2x256x64xf32, #tpu.memory_space<vmem>>, vector<1x256x64xf32>,
    %c1 = arith.constant 1 : index
    %c0_13 = arith.constant 0 : index
    %c0_14 = arith.constant 0 : index
    %24 = vector.load %arg2[%c1, %c0_13, %c0_14] : memref<2x256x256xf32, #tpu.memory_space<vmem>>, vector<1x256x256xf32>
    %25 = vector.shape_cast %24 : vector<1x256x256xf32> to vector<256x256xf32>
    %26 = vector.broadcast %0 : vector<1x256xf32> to vector<256x256xf32>
    %27 = arith.addf %25, %26 : vector<256x256xf32>
    %cst_15 = arith.constant dense<0xFF800000> : vector<256xf32>
    %28 = vector.multi_reduction <maximumf>, %27, %cst_15 [1] : vector<256x256xf32> to vector<256xf32>
    %29 = vector.shape_cast %28 : vector<256xf32> to vector<256x1xf32>
    %30 = vector.broadcast %29 : vector<256x1xf32> to vector<256x256xf32>
    %31 = arith.subf %27, %30 : vector<256x256xf32>
    %32 = math.exp %31 : vector<256x256xf32>
    %cst_16 = arith.constant dense<0.000000e+00> : vector<256xf32>
    %33 = vector.multi_reduction <add>, %32, %cst_16 [1] : vector<256x256xf32> to vector<256xf32>
    %34 = vector.shape_cast %33 : vector<256xf32> to vector<256x1xf32>
    %35 = tpu.reciprocal %34 : vector<256x1xf32> -> vector<256x1xf32>
    %cst_17 = arith.constant 1.000000e+00 : f32
    %36 = vector.broadcast %cst_17 : f32 to vector<256x1xf32>
    %37 = arith.mulf %35, %36 : vector<256x1xf32>
    %38 = vector.broadcast %37 : vector<256x1xf32> to vector<256x256xf32>
    %39 = arith.mulf %32, %38 : vector<256x256xf32>
    %40 = arith.truncf %39 : vector<256x256xf32> to vector<256x256xbf16>
    %c1_18 = arith.constant 1 : index
    %c0_19 = arith.constant 0 : index
    %c0_20 = arith.constant 0 : index
    %41 = vector.load %arg3[%c1_18, %c0_19, %c0_20] : memref<2x256x64xbf16, #tpu.memory_space<vmem>>, vector<1x256x64xbf16>
    %42 = vector.shape_cast %41 : vector<1x256x64xbf16> to vector<256x64xbf16>
    %cst_21 = arith.constant dense<0.000000e+00> : vector<256x64xf32>
    %43 = tpu.matmul %40, %42, %cst_21 {dimension_numbers = #tpu.dot_dimension_numbers<[1], [0], [0], [1], [0, 0, 1, 1], [], []>} : vector<256x256xbf16>, vector<256x64xbf16>, vector<256x64xf32> -> vector<256x64xf32>
    %c1_22 = arith.constant 1 : index
    %c0_23 = arith.constant 0 : index
    %c0_24 = arith.constant 0 : index
    %44 = vector.load %arg4[%c1_22, %c0_23, %c0_24] : memref<2x256x64xf32, #tpu.memory_space<vmem>>, vector<1x256x64xf32>
    %45 = vector.shape_cast %44 : vector<1x256x64xf32> to vector<256x64xf32>
    %46 = vector.shape_cast %43 : vector<256x64xf32> to vector<1x256x64xf32>
    tpu.vector_store %arg4[%c1_22, %c0_23, %c0_24], %46 {strides = array<i32>} : memref<2x256x64xf32, #tpu.memory_space<vmem>>, vector<1x256x64xf32>,
    return
  }
  func.func @transform_0(%arg0: i32) -> (i32, i32) {
    %c0_i32 = arith.constant 0 : i32
    %c0_i32_0 = arith.constant 0 : i32
    %c0_i32_1 = arith.constant 0 : i32
    return %c0_i32, %c0_i32_0 : i32, i32
  }
  func.func @transform_1(%arg0: i32) -> (i32, i32, i32) {
    %c0_i32 = arith.constant 0 : i32
    %c0_i32_0 = arith.constant 0 : i32
    %c0_i32_1 = arith.constant 0 : i32
    return %arg0, %c0_i32, %c0_i32_0 : i32, i32, i32
  }
  func.func @transform_2(%arg0: i32) -> (i32, i32, i32) {
    %c0_i32 = arith.constant 0 : i32
    %c0_i32_0 = arith.constant 0 : i32
    %c0_i32_1 = arith.constant 0 : i32
    return %arg0, %c0_i32, %c0_i32_0 : i32, i32, i32
  }
  func.func @transform_3(%arg0: i32) -> (i32, i32, i32) {
    %c0_i32 = arith.constant 0 : i32
    %c0_i32_0 = arith.constant 0 : i32
    %c0_i32_1 = arith.constant 0 : i32
    return %arg0, %c0_i32, %c0_i32_0 : i32, i32, i32
  }
}

</mosaic_0001>

<bundles_post_ra>
// kernel: tpu_custom_call.1
= control target key start
LH: loop header
LB: loop body
LE: loop exit
PB: predicated region body
PF: predicated region fallthrough
CT: control target
= control target key end

     0   :  { %8 = vsyncpa [#allocation3], 0  ;;  %s4751_s0 = inlined_call_operand.vmem [shape: f32[1,256], index: 0, kind: input, shape index: {}]   ;;  %s4752_s1 = inlined_call_operand.hbm [shape: f32[4,256,256], index: 1, kind: input, shape index: {}]   ;;  %s4753_s2 = inlined_call_operand.vmem [shape: bf16[4,256,64], index: 2, kind: input, shape index: {}]   ;;  %s4754_s3 = inlined_call_operand.vmem [shape: f32[4,256,64], index: 3, kind: output, shape index: {}]  }
   0x1   :  { %10 = vsyncpa [#allocation3 + $0x1], 0  ;;  %s3191_s12 = smov 0   ;;  %s3193_s13 = smov 0  }
   0x2   :  { %s3195_s14 = smov 0   ;;  %s3197_s15 = smov 0  }
   0x3 LB: > { %s2241_s16 = sadd.s32 4294967295, %s3166_s15   ;;  %s3211_s17 = sadd.s32 1, %s3166_s15   ;;  %s3166_s15 = sphi %s3197_s15, %s5237_s15   ;;  %s3162_s14 = sphi %s3195_s14, %s5236_s14   ;;  %s3158_s13 = sphi %s3193_s13, %s5235_s13   ;;  %s3154_s12 = sphi %s3191_s12, %s5234_s12  }
   0x4   : > { %s41_s18 = ssub.s32 %s3166_s15, %s3211_s17  ;;  %s44_s19 = sadd.s32 1, %s3162_s14 }
   0x5   : > { %p42_p0 = scmp.eq.s32.totalorder %s41_s18, 0  ;;  %p51_p1 = scmp.ne.s32.totalorder %s3162_s14, %s3158_s13 }
   0x6   : > { %p52_p2 = scmp.eq.s32.totalorder %s3166_s15, 0  ;;  %p57_p3 = scmp.ne.s32.totalorder %s3158_s13, %s3154_s12 }
   0x7   : > { %s3221_s20 = scalar_select %p42_p0, %s3162_s14, %s44_s19  }
   0x8   : > { %p53_p4 = por %p52_p2, %p51_p1  ;;  %p58_p5 = scmp.eq.s32.totalorder %s2241_s16, 0 }
   0x9   : > { %p2653_p6 = scmp.lt.s32.totalorder %s3166_s15, 2  ;;  %s136_s22 = sand.u32 1, %s3162_s14  }
   0xa   : > { %p3226_p7 = por %p58_p5, %p57_p3  ;;  %s2245_s23 = sshll.u32 %s136_s22, 10 }
   0xb   : > { %s2420_s24 = sshll.u32 %s3166_s15, 14  ;;  %s140_s28 = scalar_lea.vmem [#allocation2], %s2245_s23 }
   0xc   : > { %s4914_s21 = scalar_select %p3226_p7, 1, 0 }
   0xd   : > { %s3235_s27 = scalar_lea.hbm %s4752_s1, %s2420_s24  ;;  %s148_s29 = sshll.u32 %s140_s28, 4  ;;  %s3237_s29 = int_to_ptr.vmem [resolvable:$true] %s148_s29 }
   0xe   : > { %p3239_p8 = pnand %p2653_p6, %p53_p4  ;;  %s3244_s4 = scalar_lea.sflag [#allocation3], %s136_s22 }
   0xf   : > { %s3104_s5 = scalar_lea.hbm %s3235_s27, 16384  ;;  %s3109_s8 = scalar_lea.hbm %s4752_s1, 32768 }
  0x10   : > { %p3105_p10 = scmp.ne.s32.totalorder %s3235_s27, %s3104_s5  ;;  %p3106_p11 = pneg %p3239_p8 }
  0x11   : > { %p3110_p0 = scmp.lt.s32.totalorder %s3235_s27, %s4752_s1  ;;  %p3111_p1 = scmp.lt.s32.totalorder %s3109_s8, %s3104_s5 }
  0x12   : > { %p3107_p12 = pnand %p3106_p11, %p3105_p10 }
  0x13   : > { %p3112_p2 = por %p3111_p1, %p3110_p0 }
  0x14   : > { %p3108_p13 = pneg %p3107_p12 }
  0x16   : > { %p3113_p3 = pnand %p3112_p2, %p3108_p13 }
  0x18   : > { %3116 = shalt.err (!%p3113_p3)
}
  0x19   : > { %s3117_s11 = scalar_lea.vmem %s3237_s29, 16384  ;;  %s3168_s12 = smov [#allocation2]  }
  0x1a   : > { %p3118_p4 = scmp.ne.s32.totalorder %s3237_s29, %s3117_s11  ;;  %s3122_s18 = sshll.u32 %s3168_s12, 4  ;;  %s3123_s18 = int_to_ptr.vmem [resolvable:$false] %s3122_s18 }
  0x1b   : > { %s3124_s19 = scalar_lea.vmem %s3123_s18, 32768  ;;  %p3125_p10 = scmp.lt.s32.totalorder %s3237_s29, %s3123_s18 }
  0x1c   : > { %p3120_p5 = pnand %p3118_p4, %p3106_p11  ;;  %p3126_p12 = scmp.lt.s32.totalorder %s3124_s19, %s3117_s11 }
  0x1e   : > { %p3121_p6 = pneg %p3120_p5  ;;  %p3127_p9 = por %p3126_p12, %p3125_p10 }
  0x20   : > { %p3128_p7 = pnand %p3127_p9, %p3121_p6 }
  0x22   : > { %3131 = shalt.err (!%p3128_p7)
}
  0x23   : > { %s3169_s22 = smov 256   ;;  %s3170_s23 = smov 16  }
  0x24   : > { %2652 = dma.hbm_to_vmem [thread:$0]  (!%p3239_p8), %s3235_s27, 16384, %s3237_s29, %s3244_s4, %s3169_s22, %s3169_s22, %s3170_s23  }
  0x25   : > { %p166_p11 = scmp.lt.s32.totalorder %s3166_s15, 3  ;;  %p4916_p13 = scmp.ge.s32.totalorder %s3166_s15, 1 }
  0x27   : > { %p167_p0 = pnand %p4916_p13, %p166_p11 }
  0x29   : > { %170 = sbr.rel (%p167_p0) target bundleno = 708 (0x2c4), region = 32 }
  0x2e   : > { %s172_s24 = sand.u32 1, %s3158_s13   ;;  %p4917_p7 = scmp.ne.s32.totalorder %s4914_s21, 0 }
  0x2f   : > { %s2250_s25 = sshll.u32 %s172_s24, 10  ;;  %s173_s26 = scalar_lea.sflag [#allocation3], %s172_s24 }
  0x30   : > { %s3269_s28 = scalar_lea.vmem [#allocation2], %s2250_s25 }
  0x31   : > { %3149 = dma.done.wait (%p4917_p7), %s173_s26, 16384  }
  0x32   : > { %3151 = vsyncadd (%p4917_p7), %s173_s26, 4294950912  ;;  %v288_v0 = vlaneseq  ;;  %v222_v4 = vld [vmem:[%s4751_s0] sm:$0x3]  ;;  %v224_v6 = vld [vmem:[%s3269_s28 + $0x8] sm:$0xff]  ;;  %s2251_s21 = sshll.u32 %s2241_s16, 1  ;;  %vm1163_vm0 = vcmask 523264  }
  0x33   : > { %v223_v5 = vld [vmem:[%s3269_s28] sm:$0xff]  ;;  %v2274_v10 = vld [vmem:[%s3269_s28 + $0x208] sm:$0xff]  ;;  %v225_v11 = vld [vmem:[%s3269_s28 + $0x10] sm:$0xff]  ;;  %p208_p8 = scmp.lt.s32.totalorder %s2251_s21, 3 }
  0x34   : > { %v289_v1 = vshrl.u32 %v288_v0, 7  ;;  %v2273_v9 = vld [vmem:[%s3269_s28 + $0x200] sm:$0xff]  ;;  %v226_v12 = vld [vmem:[%s3269_s28 + $0x18] sm:$0xff]  ;;  %v2275_v13 = vld [vmem:[%s3269_s28 + $0x210] sm:$0xff] }
  0x35   : > { %v2276_v14 = vld [vmem:[%s3269_s28 + $0x218] sm:$0xff]  ;;  %v227_v19 = vld [vmem:[%s3269_s28 + $0x20] sm:$0xff]  ;;  %v228_v20 = vld [vmem:[%s3269_s28 + $0x28] sm:$0xff]  ;;  %s5239_s21 = smov (!%p208_p8, %s2251_s21), 3 }
  0x36   : > { %v290_v2 = vsub.s32 0, %v289_v1  ;;  %v294_v3 = vsub.s32 1, %v289_v1  ;;  %v229_v25 = vld [vmem:[%s3269_s28 + $0x30] sm:$0xff]  ;;  %v230_v26 = vld [vmem:[%s3269_s28 + $0x38] sm:$0xff]  ;;  %v2277_v35 = vld [vmem:[%s3269_s28 + $0x220] sm:$0xff]  ;;  %s2421_s15 = sshll.u32 %s5239_s21, 7 }
  0x37   : > { %v2278_v36 = vld [vmem:[%s3269_s28 + $0x228] sm:$0xff]  ;;  %v2279_v37 = vld [vmem:[%s3269_s28 + $0x230] sm:$0xff]  ;;  %v2280_v38 = vld [vmem:[%s3269_s28 + $0x238] sm:$0xff]  ;;  %s3963_s4 = scalar_lea.vmem %s4753_s2, %s2421_s15  ;;  %s2422_s5 = sshll.u32 %s5239_s21, 8 }
  0x38   : > { %v3280_v7 = vrot.slane %v222_v4, %v290_v2  ;;  %v3282_v8 = vrot.slane %v222_v4, %v294_v3  ;;  %v231_v45 = vld [vmem:[%s3269_s28 + $0x40] sm:$0xff]  ;;  %v232_v46 = vld [vmem:[%s3269_s28 + $0x48] sm:$0xff]  ;;  %v233_v47 = vld [vmem:[%s3269_s28 + $0x50] sm:$0xff]  ;;  %s4608_s8 = scalar_lea.vmem %s4754_s3, %s2422_s5 }
  0x39   : > { %v234_v48 = vld [vmem:[%s3269_s28 + $0x58] sm:$0xff]  ;;  %v2281_v55 = vld [vmem:[%s3269_s28 + $0x240] sm:$0xff]  ;;  %v2282_v56 = vld [vmem:[%s3269_s28 + $0x248] sm:$0xff] }
  0x3a   : > { %v3291_v15 = vadd.f32 %v3280_v7, %v223_v5  ;;  %v3294_v16 = vadd.f32 %v3282_v8, %v224_v6  ;;  %v3297_v17 = vadd.f32 %v2273_v9, %v3280_v7  ;;  %v3300_v18 = vadd.f32 %v2274_v10, %v3282_v8  ;;  %v2283_v57 = vld [vmem:[%s3269_s28 + $0x250] sm:$0xff]  ;;  %v2284_v58 = vld [vmem:[%s3269_s28 + $0x258] sm:$0xff]  ;;  %v235_v1 = vld [vmem:[%s3269_s28 + $0x60] sm:$0xff] }
  0x3b   : > { %v3305_v21 = vadd.f32 %v3280_v7, %v225_v11  ;;  %v3308_v22 = vadd.f32 %v3282_v8, %v226_v12  ;;  %v3311_v23 = vadd.f32 %v2275_v13, %v3280_v7  ;;  %v3314_v24 = vadd.f32 %v2276_v14, %v3282_v8  ;;  %v236_v2 = vld [vmem:[%s3269_s28 + $0x68] sm:$0xff]  ;;  %v237_v3 = vld [vmem:[%s3269_s28 + $0x70] sm:$0xff]  ;;  %v238_v4 = vld [vmem:[%s3269_s28 + $0x78] sm:$0xff] }
  0x3c   : > { %v362_v27 = vmax.f32 %v3291_v15, %v3294_v16  ;;  %v1325_v28 = vmax.f32 %v3297_v17, %v3300_v18  ;;  %v3325_v30 = vadd.f32 %v3280_v7, %v227_v19  ;;  %v3328_v31 = vadd.f32 %v3282_v8, %v228_v20  ;;  %v2285_v13 = vld [vmem:[%s3269_s28 + $0x260] sm:$0xff]  ;;  %v2286_v14 = vld [vmem:[%s3269_s28 + $0x268] sm:$0xff]  ;;  %v2287_v19 = vld [vmem:[%s3269_s28 + $0x270] sm:$0xff] }
  0x3d   : > { %v365_v29 = vmax.f32 %v3305_v21, %v3308_v22  ;;  %v1328_v32 = vmax.f32 %v3311_v23, %v3314_v24  ;;  %v3333_v33 = vadd.f32 %v3280_v7, %v229_v25  ;;  %v3336_v34 = vadd.f32 %v3282_v8, %v230_v26  ;;  %v2288_v20 = vld [vmem:[%s3269_s28 + $0x278] sm:$0xff] }
  0x3e   : > { %363 = vmax.xlane.f32.xlu0 %v362_v27  ;;  %1326 = vmax.xlane.f32.xlu1 %v1325_v28  ;;  %v368_v39 = vmax.f32 %v3325_v30, %v3328_v31  ;;  %v3345_v40 = vadd.f32 %v2277_v35, %v3280_v7  ;;  %v3348_v41 = vadd.f32 %v2278_v36, %v3282_v8  ;;  %v239_v35 = vld [vmem:[%s3269_s28 + $0x80] sm:$0xff]  ;;  %v240_v36 = vld [vmem:[%s3269_s28 + $0x88] sm:$0xff] }
  0x3f   : > { %v371_v42 = vmax.f32 %v3333_v33, %v3336_v34  ;;  %v3353_v43 = vadd.f32 %v2279_v37, %v3280_v7  ;;  %v3356_v44 = vadd.f32 %v2280_v38, %v3282_v8  ;;  %v3365_v50 = vadd.f32 %v3280_v7, %v231_v45  ;;  %v241_v37 = vld [vmem:[%s3269_s28 + $0x90] sm:$0xff]  ;;  %v242_v38 = vld [vmem:[%s3269_s28 + $0x98] sm:$0xff] }
  0x40   : > { %v1331_v49 = vmax.f32 %v3345_v40, %v3348_v41  ;;  %v3368_v51 = vadd.f32 %v3282_v8, %v232_v46  ;;  %v3373_v53 = vadd.f32 %v3280_v7, %v233_v47  ;;  %v3376_v54 = vadd.f32 %v3282_v8, %v234_v48 }
  0x41   : > { %v1334_v52 = vmax.f32 %v3353_v43, %v3356_v44  ;;  %v3383_v59 = vadd.f32 %v2281_v55, %v3280_v7  ;;  %v3386_v60 = vadd.f32 %v2282_v56, %v3282_v8  ;;  %v3389_v61 = vadd.f32 %v2283_v57, %v3280_v7  ;;  %v2291_v55 = vld [vmem:[%s3269_s28 + $0x290] sm:$0xff]  ;;  %v2292_v56 = vld [vmem:[%s3269_s28 + $0x298] sm:$0xff] }
  0x42   : > { %366 = vmax.xlane.f32.xlu0 %v365_v29  ;;  %1329 = vmax.xlane.f32.xlu1 %v1328_v32  ;;  %v374_v62 = vmax.f32 %v3365_v50, %v3368_v51  ;;  %v377_v63 = vmax.f32 %v3373_v53, %v3376_v54  ;;  %v3396_v0 = vadd.f32 %v2284_v58, %v3282_v8 }
  0x43   : > { %v1337_v5 = vmax.f32 %v3383_v59, %v3386_v60  ;;  %v3405_v6 = vadd.f32 %v3280_v7, %v235_v1  ;;  %v3408_v9 = vadd.f32 %v3282_v8, %v236_v2  ;;  %v3413_v11 = vadd.f32 %v3280_v7, %v237_v3  ;;  %v243_v3 = vld [vmem:[%s3269_s28 + $0xa0] sm:$0xff] }
  0x44   : > { %v1340_v10 = vmax.f32 %v3389_v61, %v3396_v0  ;;  %v3416_v12 = vadd.f32 %v3282_v8, %v238_v4  ;;  %v3425_v26 = vadd.f32 %v2285_v13, %v3280_v7  ;;  %v3428_v27 = vadd.f32 %v2286_v14, %v3282_v8  ;;  %v244_v4 = vld [vmem:[%s3269_s28 + $0xa8] sm:$0xff] }
  0x45   : > { %v380_v25 = vmax.f32 %v3405_v6, %v3408_v9  ;;  %v3433_v29 = vadd.f32 %v2287_v19, %v3280_v7  ;;  %v3436_v32 = vadd.f32 %v2288_v20, %v3282_v8  ;;  %v3448_v45 = vadd.f32 %v3282_v8, %v240_v36  ;;  %v2294_v36 = vld [vmem:[%s3269_s28 + $0x2a8] sm:$0xff] }
  0x46   : > { %369 = vmax.xlane.f32.xlu0 %v368_v39  ;;  %372 = vmax.xlane.f32.xlu1 %v371_v42  ;;  %v383_v28 = vmax.f32 %v3413_v11, %v3416_v12  ;;  %v1343_v39 = vmax.f32 %v3425_v26, %v3428_v27  ;;  %v3445_v42 = vadd.f32 %v3280_v7, %v239_v35  ;;  %v2293_v35 = vld [vmem:[%s3269_s28 + $0x2a0] sm:$0xff] }
  0x47   : > { %v1346_v46 = vmax.f32 %v3433_v29, %v3436_v32  ;;  %v3453_v47 = vadd.f32 %v3280_v7, %v241_v37  ;;  %v3456_v48 = vadd.f32 %v3282_v8, %v242_v38  ;;  %v3473_v1 = vadd.f32 %v2291_v55, %v3280_v7  ;;  %v2295_v37 = vld [vmem:[%s3269_s28 + $0x2b0] sm:$0xff]  ;;  %v2296_v38 = vld [vmem:[%s3269_s28 + $0x2b8] sm:$0xff] }
  0x48   : > { %v386_v57 = vmax.f32 %v3445_v42, %v3448_v45  ;;  %v3476_v2 = vadd.f32 %v2292_v56, %v3282_v8  ;;  %v3483_v13 = vadd.f32 %v3280_v7, %v243_v3  ;;  %v3486_v14 = vadd.f32 %v3282_v8, %v244_v4  ;;  %v249_v3 = vld [vmem:[%s3269_s28 + $0xd0] sm:$0xff]  ;;  %v250_v4 = vld [vmem:[%s3269_s28 + $0xd8] sm:$0xff] }
  0x49   : > { %v3513_v55 = vadd.f32 %v2295_v37, %v3280_v7  ;;  %v3516_v56 = vadd.f32 %v2296_v38, %v3282_v8  ;;  %v2297_v37 = vld [vmem:[%s3269_s28 + $0x2c0] sm:$0xff]  ;;  %v2298_v38 = vld [vmem:[%s3269_s28 + $0x2c8] sm:$0xff] }
  0x4a   : > { %1332 = vmax.xlane.f32.xlu0 %v1331_v49  ;;  %1335 = vmax.xlane.f32.xlu1 %v1334_v52  ;;  %v2289_v49 = vld [vmem:[%s3269_s28 + $0x280] sm:$0xff]  ;;  %v2290_v52 = vld [vmem:[%s3269_s28 + $0x288] sm:$0xff] }
  0x4b   : > { %v3465_v58 = vadd.f32 %v2289_v49, %v3280_v7  ;;  %v3508_v49 = vadd.f32 %v2294_v36, %v3282_v8  ;;  %4921 = vst [vmem:[#allocation8_spill] sm:$0xff] %v3513_v55  ;;  %4922 = vst [vmem:[#allocation9_spill] sm:$0xff] %v3516_v56  ;;  %v3536_v36 = vadd.f32 %v3282_v8, %v250_v4 }
  0x4d   : > { %4920 = vst [vmem:[#allocation7_spill] sm:$0xff] %v3508_v49  ;;  %4926 = vst [vmem:[#allocation13_spill] sm:$0xff] %v3536_v36 }
  0x4e   : > { %375 = vmax.xlane.f32.xlu0 %v374_v62  ;;  %378 = vmax.xlane.f32.xlu1 %v377_v63  ;;  %v3468_v62 = vadd.f32 %v2290_v52, %v3282_v8  ;;  %v389_v63 = vmax.f32 %v3453_v47, %v3456_v48 }
  0x50   : > { %v1349_v20 = vmax.f32 %v3465_v58, %v3468_v62 }
  0x52   : > { %1338 = vmax.xlane.f32.xlu0 %v1337_v5  ;;  %1341 = vmax.xlane.f32.xlu1 %v1340_v10  ;;  %v245_v5 = vld [vmem:[%s3269_s28 + $0xb0] sm:$0xff]  ;;  %v246_v10 = vld [vmem:[%s3269_s28 + $0xb8] sm:$0xff] }
  0x53   : > { %v3489_v19 = vadd.f32 %v3280_v7, %v245_v5 }
  0x56   : > { %381 = vmax.xlane.f32.xlu0 %v380_v25  ;;  %384 = vmax.xlane.f32.xlu1 %v383_v28  ;;  %v1352_v25 = vmax.f32 %v3473_v1, %v3476_v2  ;;  %v3496_v28 = vadd.f32 %v3282_v8, %v246_v10 }
  0x58   : > { %4918 = vst [vmem:[#allocation5_spill] sm:$0xff] %v3496_v28  ;;  %v395_v52 = vmax.f32 %v3489_v19, %v3496_v28  ;;  %v2336_v28 = vld [vmem:[%s3269_s28 + $0x3f8] sm:$0xff] }
  0x5a   : > { %1344 = vmax.xlane.f32.xlu0 %v1343_v39  ;;  %1347 = vmax.xlane.f32.xlu1 %v1346_v46  ;;  %v392_v39 = vmax.f32 %v3483_v13, %v3486_v14  ;;  %v3505_v46 = vadd.f32 %v2293_v35, %v3280_v7  ;;  %v3533_v35 = vadd.f32 %v3280_v7, %v249_v3 }
  0x5c   : > { %4919 = vst [vmem:[#allocation6_spill] sm:$0xff] %v3505_v46  ;;  %v1355_v5 = vmax.f32 %v3505_v46, %v3508_v49  ;;  %4925 = vst [vmem:[#allocation12_spill] sm:$0xff] %v3533_v35  ;;  %v401_v3 = vmax.f32 %v3533_v35, %v3536_v36  ;;  %v257_v49 = vld [vmem:[%s3269_s28 + $0x110] sm:$0xff] }
  0x5d   : > { %v2335_v46 = vld [vmem:[%s3269_s28 + $0x3f0] sm:$0xff] }
  0x5e   : > { %387 = vmax.xlane.f32.xlu0 %v386_v57  ;;  %390 = vmax.xlane.f32.xlu1 %v389_v63  ;;  %v247_v57 = vld [vmem:[%s3269_s28 + $0xc0] sm:$0xff]  ;;  %v248_v63 = vld [vmem:[%s3269_s28 + $0xc8] sm:$0xff] }
  0x5f   : > { %v3525_v10 = vadd.f32 %v3280_v7, %v247_v57  ;;  %v2299_v57 = vld [vmem:[%s3269_s28 + $0x2d0] sm:$0xff] }
  0x60   : > { %v3553_v4 = vadd.f32 %v2299_v57, %v3280_v7 }
  0x61   : > { %4923 = vst [vmem:[#allocation10_spill] sm:$0xff] %v3525_v10 }
  0x62   : > { %1350 = vmax.xlane.f32.xlu0 %v1349_v20  ;;  %1353 = vmax.xlane.f32.xlu1 %v1352_v25  ;;  %v3528_v20 = vadd.f32 %v3282_v8, %v248_v63  ;;  %v1358_v25 = vmax.f32 %v3513_v55, %v3516_v56  ;;  %v2300_v63 = vld [vmem:[%s3269_s28 + $0x2d8] sm:$0xff]  ;;  %v3548_v56 = vadd.f32 %v2298_v38, %v3282_v8 }
  0x63   : > { %4929 = vst [vmem:[#allocation16_spill] sm:$0xff] %v3553_v4  ;;  %v3556_v55 = vadd.f32 %v2300_v63, %v3282_v8  ;;  %v254_v38 = vld [vmem:[%s3269_s28 + $0xf8] sm:$0xff] }
  0x64   : > { %4924 = vst [vmem:[#allocation11_spill] sm:$0xff] %v3528_v20  ;;  %4928 = vst [vmem:[#allocation15_spill] sm:$0xff] %v3548_v56  ;;  %v3576_v35 = vadd.f32 %v3282_v8, %v254_v38 }
  0x65   : > { %4930 = vst [vmem:[#allocation17_spill] sm:$0xff] %v3556_v55  ;;  %v1364_v57 = vmax.f32 %v3553_v4, %v3556_v55  ;;  %v256_v4 = vld [vmem:[%s3269_s28 + $0x108] sm:$0xff] }
  0x66   : > { %393 = vmax.xlane.f32.xlu0 %v392_v39  ;;  %396 = vmax.xlane.f32.xlu1 %v395_v52  ;;  %v398_v39 = vmax.f32 %v3525_v10, %v3528_v20  ;;  %v3545_v52 = vadd.f32 %v2297_v37, %v3280_v7  ;;  %v251_v37 = vld [vmem:[%s3269_s28 + $0xe0] sm:$0xff]  ;;  %v252_v20 = vld [vmem:[%s3269_s28 + $0xe8] sm:$0xff]  ;;  %v253_v10 = vld [vmem:[%s3269_s28 + $0xf0] sm:$0xff]  ;;  %4934 = vst [vmem:[#allocation21_spill] sm:$0xff] %v3576_v35 }
  0x67   : > { %v3568_v36 = vadd.f32 %v3282_v8, %v252_v20  ;;  %v3573_v63 = vadd.f32 %v3280_v7, %v253_v10  ;;  %v2304_v20 = vld [vmem:[%s3269_s28 + $0x2f8] sm:$0xff] }
  0x68   : > { %4927 = vst [vmem:[#allocation14_spill] sm:$0xff] %v3545_v52 }
  0x69   : > { %4932 = vst [vmem:[#allocation19_spill] sm:$0xff] %v3568_v36  ;;  %4933 = vst [vmem:[#allocation20_spill] sm:$0xff] %v3573_v63  ;;  %v407_v38 = vmax.f32 %v3573_v63, %v3576_v35  ;;  %v3613_v35 = vadd.f32 %v3280_v7, %v257_v49 }
  0x6a   : > { %1356 = vmax.xlane.f32.xlu0 %v1355_v5  ;;  %1359 = vmax.xlane.f32.xlu1 %v1358_v25  ;;  %v1361_v5 = vmax.f32 %v3545_v52, %v3548_v56  ;;  %v3565_v25 = vadd.f32 %v3280_v7, %v251_v37  ;;  %v2301_v37 = vld [vmem:[%s3269_s28 + $0x2e0] sm:$0xff]  ;;  %v2302_v56 = vld [vmem:[%s3269_s28 + $0x2e8] sm:$0xff]  ;;  %v2303_v52 = vld [vmem:[%s3269_s28 + $0x2f0] sm:$0xff] }
  0x6b   : > { %v3589_v55 = vadd.f32 %v2303_v52, %v3280_v7  ;;  %v258_v52 = vld [vmem:[%s3269_s28 + $0x118] sm:$0xff]  ;;  %4941 = vst [vmem:[#allocation28_spill] sm:$0xff] %v3613_v35 }
  0x6c   : > { %4931 = vst [vmem:[#allocation18_spill] sm:$0xff] %v3565_v25  ;;  %v404_v10 = vmax.f32 %v3565_v25, %v3568_v36  ;;  %v3608_v36 = vadd.f32 %v3282_v8, %v256_v4  ;;  %v3616_v63 = vadd.f32 %v3282_v8, %v258_v52  ;;  %v2308_v4 = vld [vmem:[%s3269_s28 + $0x318] sm:$0xff]  ;;  %v2315_v25 = vld [vmem:[%s3269_s28 + $0x350] sm:$0xff] }
  0x6d   : > { %4937 = vst [vmem:[#allocation24_spill] sm:$0xff] %v3589_v55 }
  0x6e   : > { %399 = vmax.xlane.f32.xlu0 %v398_v39  ;;  %402 = vmax.xlane.f32.xlu1 %v401_v3  ;;  %v3583_v39 = vadd.f32 %v2301_v37, %v3280_v7  ;;  %v3586_v3 = vadd.f32 %v2302_v56, %v3282_v8  ;;  %v3596_v37 = vadd.f32 %v2304_v20, %v3282_v8  ;;  %v255_v56 = vld [vmem:[%s3269_s28 + $0x100] sm:$0xff] }
  0x6f   : > { %4940 = vst [vmem:[#allocation27_spill] sm:$0xff] %v3608_v36  ;;  %4942 = vst [vmem:[#allocation29_spill] sm:$0xff] %v3616_v63  ;;  %v413_v49 = vmax.f32 %v3613_v35, %v3616_v63 }
  0x70   : > { %4935 = vst [vmem:[#allocation22_spill] sm:$0xff] %v3583_v39  ;;  %4936 = vst [vmem:[#allocation23_spill] sm:$0xff] %v3586_v3  ;;  %v1370_v20 = vmax.f32 %v3589_v55, %v3596_v37  ;;  %v3636_v55 = vadd.f32 %v2308_v4, %v3282_v8 }
  0x71   : > { %4938 = vst [vmem:[#allocation25_spill] sm:$0xff] %v3596_v37 }
  0x72   : > { %1362 = vmax.xlane.f32.xlu0 %v1361_v5  ;;  %1365 = vmax.xlane.f32.xlu1 %v1364_v57  ;;  %v1367_v5 = vmax.f32 %v3583_v39, %v3586_v3  ;;  %v3605_v57 = vadd.f32 %v3280_v7, %v255_v56  ;;  %v2305_v56 = vld [vmem:[%s3269_s28 + $0x300] sm:$0xff]  ;;  %v2306_v3 = vld [vmem:[%s3269_s28 + $0x308] sm:$0xff]  ;;  %v2307_v39 = vld [vmem:[%s3269_s28 + $0x310] sm:$0xff]  ;;  %4946 = vst [vmem:[#allocation33_spill] sm:$0xff] %v3636_v55 }
  0x73   : > { %v3628_v37 = vadd.f32 %v2306_v3, %v3282_v8  ;;  %v3633_v52 = vadd.f32 %v2307_v39, %v3280_v7  ;;  %v262_v3 = vld [vmem:[%s3269_s28 + $0x138] sm:$0xff] }
  0x74   : > { %4939 = vst [vmem:[#allocation26_spill] sm:$0xff] %v3605_v57  ;;  %v3656_v35 = vadd.f32 %v3282_v8, %v262_v3 }
  0x75   : > { %4944 = vst [vmem:[#allocation31_spill] sm:$0xff] %v3628_v37  ;;  %4945 = vst [vmem:[#allocation32_spill] sm:$0xff] %v3633_v52  ;;  %v1376_v39 = vmax.f32 %v3633_v52, %v3636_v55 }
  0x76   : > { %405 = vmax.xlane.f32.xlu0 %v404_v10  ;;  %408 = vmax.xlane.f32.xlu1 %v407_v38  ;;  %v410_v10 = vmax.f32 %v3605_v57, %v3608_v36  ;;  %v3625_v38 = vadd.f32 %v2305_v56, %v3280_v7  ;;  %v259_v56 = vld [vmem:[%s3269_s28 + $0x120] sm:$0xff]  ;;  %v260_v36 = vld [vmem:[%s3269_s28 + $0x128] sm:$0xff]  ;;  %v261_v57 = vld [vmem:[%s3269_s28 + $0x130] sm:$0xff]  ;;  %4950 = vst [vmem:[#allocation37_spill] sm:$0xff] %v3656_v35 }
  0x77   : > { %v3648_v63 = vadd.f32 %v3282_v8, %v260_v36  ;;  %v3653_v4 = vadd.f32 %v3280_v7, %v261_v57  ;;  %v2312_v36 = vld [vmem:[%s3269_s28 + $0x338] sm:$0xff] }
  0x78   : > { %4943 = vst [vmem:[#allocation30_spill] sm:$0xff] %v3625_v38  ;;  %v3676_v52 = vadd.f32 %v2312_v36, %v3282_v8 }
  0x79   : > { %4948 = vst [vmem:[#allocation35_spill] sm:$0xff] %v3648_v63  ;;  %4949 = vst [vmem:[#allocation36_spill] sm:$0xff] %v3653_v4  ;;  %v419_v57 = vmax.f32 %v3653_v4, %v3656_v35  ;;  %v2314_v4 = vld [vmem:[%s3269_s28 + $0x348] sm:$0xff] }
  0x7a   : > { %1368 = vmax.xlane.f32.xlu0 %v1367_v5  ;;  %1371 = vmax.xlane.f32.xlu1 %v1370_v20  ;;  %v1373_v5 = vmax.f32 %v3625_v38, %v3628_v37  ;;  %v3645_v20 = vadd.f32 %v3280_v7, %v259_v56  ;;  %v2309_v56 = vld [vmem:[%s3269_s28 + $0x320] sm:$0xff]  ;;  %v2310_v37 = vld [vmem:[%s3269_s28 + $0x328] sm:$0xff]  ;;  %v2311_v38 = vld [vmem:[%s3269_s28 + $0x330] sm:$0xff]  ;;  %4954 = vst [vmem:[#allocation41_spill] sm:$0xff] %v3676_v52 }
  0x7b   : > { %v3668_v55 = vadd.f32 %v2310_v37, %v3282_v8  ;;  %v3673_v3 = vadd.f32 %v2311_v38, %v3280_v7  ;;  %v266_v37 = vld [vmem:[%s3269_s28 + $0x158] sm:$0xff] }
  0x7c   : > { %4947 = vst [vmem:[#allocation34_spill] sm:$0xff] %v3645_v20 }
  0x7d   : > { %4952 = vst [vmem:[#allocation39_spill] sm:$0xff] %v3668_v55  ;;  %4953 = vst [vmem:[#allocation40_spill] sm:$0xff] %v3673_v3  ;;  %v1382_v36 = vmax.f32 %v3673_v3, %v3676_v52  ;;  %v3713_v52 = vadd.f32 %v2315_v25, %v3280_v7 }
  0x7e   : > { %411 = vmax.xlane.f32.xlu0 %v410_v10  ;;  %414 = vmax.xlane.f32.xlu1 %v413_v49  ;;  %v416_v10 = vmax.f32 %v3645_v20, %v3648_v63  ;;  %v3665_v49 = vadd.f32 %v2309_v56, %v3280_v7  ;;  %v263_v56 = vld [vmem:[%s3269_s28 + $0x140] sm:$0xff]  ;;  %v264_v63 = vld [vmem:[%s3269_s28 + $0x148] sm:$0xff]  ;;  %v265_v20 = vld [vmem:[%s3269_s28 + $0x150] sm:$0xff] }
  0x7f   : > { %v3689_v35 = vadd.f32 %v3280_v7, %v265_v20  ;;  %v2316_v20 = vld [vmem:[%s3269_s28 + $0x358] sm:$0xff]  ;;  %4961 = vst [vmem:[#allocation48_spill] sm:$0xff] %v3713_v52 }
  0x80   : > { %4951 = vst [vmem:[#allocation38_spill] sm:$0xff] %v3665_v49  ;;  %v1379_v38 = vmax.f32 %v3665_v49, %v3668_v55  ;;  %v3708_v55 = vadd.f32 %v2314_v4, %v3282_v8  ;;  %v3716_v3 = vadd.f32 %v2316_v20, %v3282_v8  ;;  %v270_v4 = vld [vmem:[%s3269_s28 + $0x178] sm:$0xff]  ;;  %v277_v49 = vld [vmem:[%s3269_s28 + $0x1b0] sm:$0xff] }
  0x81   : > { %4957 = vst [vmem:[#allocation44_spill] sm:$0xff] %v3689_v35 }
  0x82   : > { %1374 = vmax.xlane.f32.xlu0 %v1373_v5  ;;  %1377 = vmax.xlane.f32.xlu1 %v1376_v39  ;;  %v3683_v5 = vadd.f32 %v3280_v7, %v263_v56  ;;  %v3686_v39 = vadd.f32 %v3282_v8, %v264_v63  ;;  %v3696_v56 = vadd.f32 %v3282_v8, %v266_v37  ;;  %v2313_v63 = vld [vmem:[%s3269_s28 + $0x340] sm:$0xff] }
  0x83   : > { %4960 = vst [vmem:[#allocation47_spill] sm:$0xff] %v3708_v55  ;;  %4962 = vst [vmem:[#allocation49_spill] sm:$0xff] %v3716_v3  ;;  %v1388_v25 = vmax.f32 %v3713_v52, %v3716_v3 }
  0x84   : > { %4955 = vst [vmem:[#allocation42_spill] sm:$0xff] %v3683_v5  ;;  %4956 = vst [vmem:[#allocation43_spill] sm:$0xff] %v3686_v39  ;;  %v425_v37 = vmax.f32 %v3689_v35, %v3696_v56  ;;  %v3736_v35 = vadd.f32 %v3282_v8, %v270_v4 }
  0x85   : > { %4958 = vst [vmem:[#allocation45_spill] sm:$0xff] %v3696_v56 }
  0x86   : > { %417 = vmax.xlane.f32.xlu0 %v416_v10  ;;  %420 = vmax.xlane.f32.xlu1 %v419_v57  ;;  %v422_v10 = vmax.f32 %v3683_v5, %v3686_v39  ;;  %v3705_v57 = vadd.f32 %v2313_v63, %v3280_v7  ;;  %v267_v63 = vld [vmem:[%s3269_s28 + $0x160] sm:$0xff]  ;;  %v268_v39 = vld [vmem:[%s3269_s28 + $0x168] sm:$0xff]  ;;  %v269_v5 = vld [vmem:[%s3269_s28 + $0x170] sm:$0xff]  ;;  %4966 = vst [vmem:[#allocation53_spill] sm:$0xff] %v3736_v35 }
  0x87   : > { %v3728_v56 = vadd.f32 %v3282_v8, %v268_v39  ;;  %v3733_v20 = vadd.f32 %v3280_v7, %v269_v5  ;;  %v2320_v39 = vld [vmem:[%s3269_s28 + $0x378] sm:$0xff] }
  0x88   : > { %4959 = vst [vmem:[#allocation46_spill] sm:$0xff] %v3705_v57  ;;  %v3756_v52 = vadd.f32 %v2320_v39, %v3282_v8 }
  0x89   : > { %4964 = vst [vmem:[#allocation51_spill] sm:$0xff] %v3728_v56  ;;  %4965 = vst [vmem:[#allocation52_spill] sm:$0xff] %v3733_v20  ;;  %v431_v5 = vmax.f32 %v3733_v20, %v3736_v35 }
  0x8a   : > { %1380 = vmax.xlane.f32.xlu0 %v1379_v38  ;;  %1383 = vmax.xlane.f32.xlu1 %v1382_v36  ;;  %v1385_v38 = vmax.f32 %v3705_v57, %v3708_v55  ;;  %v3725_v36 = vadd.f32 %v3280_v7, %v267_v63  ;;  %v2317_v63 = vld [vmem:[%s3269_s28 + $0x360] sm:$0xff]  ;;  %v2318_v55 = vld [vmem:[%s3269_s28 + $0x368] sm:$0xff]  ;;  %v2319_v57 = vld [vmem:[%s3269_s28 + $0x370] sm:$0xff]  ;;  %4970 = vst [vmem:[#allocation57_spill] sm:$0xff] %v3756_v52 }
  0x8b   : > { %v3748_v3 = vadd.f32 %v2318_v55, %v3282_v8  ;;  %v3753_v4 = vadd.f32 %v2319_v57, %v3280_v7  ;;  %v274_v55 = vld [vmem:[%s3269_s28 + $0x198] sm:$0xff] }
  0x8c   : > { %4963 = vst [vmem:[#allocation50_spill] sm:$0xff] %v3725_v36  ;;  %v3776_v20 = vadd.f32 %v3282_v8, %v274_v55 }
  0x8d   : > { %4968 = vst [vmem:[#allocation55_spill] sm:$0xff] %v3748_v3  ;;  %4969 = vst [vmem:[#allocation56_spill] sm:$0xff] %v3753_v4  ;;  %v1394_v57 = vmax.f32 %v3753_v4, %v3756_v52  ;;  %v276_v4 = vld [vmem:[%s3269_s28 + $0x1a8] sm:$0xff] }
  0x8e   : > { %423 = vmax.xlane.f32.xlu0 %v422_v10  ;;  %426 = vmax.xlane.f32.xlu1 %v425_v37  ;;  %v428_v10 = vmax.f32 %v3725_v36, %v3728_v56  ;;  %v3745_v37 = vadd.f32 %v2317_v63, %v3280_v7  ;;  %v271_v63 = vld [vmem:[%s3269_s28 + $0x180] sm:$0xff]  ;;  %v272_v56 = vld [vmem:[%s3269_s28 + $0x188] sm:$0xff]  ;;  %v273_v36 = vld [vmem:[%s3269_s28 + $0x190] sm:$0xff]  ;;  %4974 = vst [vmem:[#allocation61_spill] sm:$0xff] %v3776_v20 }
  0x8f   : > { %v3768_v35 = vadd.f32 %v3282_v8, %v272_v56  ;;  %v3773_v39 = vadd.f32 %v3280_v7, %v273_v36  ;;  %v2324_v56 = vld [vmem:[%s3269_s28 + $0x398] sm:$0xff] }
  0x90   : > { %4967 = vst [vmem:[#allocation54_spill] sm:$0xff] %v3745_v37 }
  0x91   : > { %4972 = vst [vmem:[#allocation59_spill] sm:$0xff] %v3768_v35  ;;  %4973 = vst [vmem:[#allocation60_spill] sm:$0xff] %v3773_v39  ;;  %v437_v55 = vmax.f32 %v3773_v39, %v3776_v20  ;;  %v3813_v20 = vadd.f32 %v3280_v7, %v277_v49 }
  0x92   : > { %1386 = vmax.xlane.f32.xlu0 %v1385_v38  ;;  %1389 = vmax.xlane.f32.xlu1 %v1388_v25  ;;  %v1391_v38 = vmax.f32 %v3745_v37, %v3748_v3  ;;  %v3765_v25 = vadd.f32 %v3280_v7, %v271_v63  ;;  %v2321_v63 = vld [vmem:[%s3269_s28 + $0x380] sm:$0xff]  ;;  %v2322_v3 = vld [vmem:[%s3269_s28 + $0x388] sm:$0xff]  ;;  %v2323_v37 = vld [vmem:[%s3269_s28 + $0x390] sm:$0xff] }
  0x93   : > { %v3789_v52 = vadd.f32 %v2323_v37, %v3280_v7  ;;  %v278_v37 = vld [vmem:[%s3269_s28 + $0x1b8] sm:$0xff]  ;;  %4981 = vst [vmem:[#allocation68_spill] sm:$0xff] %v3813_v20 }
  0x94   : > { %4971 = vst [vmem:[#allocation58_spill] sm:$0xff] %v3765_v25  ;;  %v434_v36 = vmax.f32 %v3765_v25, %v3768_v35  ;;  %v3808_v35 = vadd.f32 %v3282_v8, %v276_v4  ;;  %v3816_v39 = vadd.f32 %v3282_v8, %v278_v37  ;;  %v2328_v4 = vld [vmem:[%s3269_s28 + $0x3b8] sm:$0xff]  ;;  %v2333_v25 = vld [vmem:[%s3269_s28 + $0x3e0] sm:$0xff] }
  0x95   : > { %4977 = vst [vmem:[#allocation64_spill] sm:$0xff] %v3789_v52 }
  0x96   : > { %429 = vmax.xlane.f32.xlu0 %v428_v10  ;;  %432 = vmax.xlane.f32.xlu1 %v431_v5  ;;  %v3783_v10 = vadd.f32 %v2321_v63, %v3280_v7  ;;  %v3786_v5 = vadd.f32 %v2322_v3, %v3282_v8  ;;  %v3796_v63 = vadd.f32 %v2324_v56, %v3282_v8  ;;  %v275_v3 = vld [vmem:[%s3269_s28 + $0x1a0] sm:$0xff] }
  0x97   : > { %4980 = vst [vmem:[#allocation67_spill] sm:$0xff] %v3808_v35  ;;  %4982 = vst [vmem:[#allocation69_spill] sm:$0xff] %v3816_v39  ;;  %v443_v49 = vmax.f32 %v3813_v20, %v3816_v39 }
  0x98   : > { %4975 = vst [vmem:[#allocation62_spill] sm:$0xff] %v3783_v10  ;;  %4976 = vst [vmem:[#allocation63_spill] sm:$0xff] %v3786_v5  ;;  %v1400_v56 = vmax.f32 %v3789_v52, %v3796_v63  ;;  %v3836_v52 = vadd.f32 %v2328_v4, %v3282_v8 }
  0x99   : > { %4978 = vst [vmem:[#allocation65_spill] sm:$0xff] %v3796_v63 }
  0x9a   : > { %1392 = vmax.xlane.f32.xlu0 %v1391_v38  ;;  %1395 = vmax.xlane.f32.xlu1 %v1394_v57  ;;  %v1397_v38 = vmax.f32 %v3783_v10, %v3786_v5  ;;  %v3805_v57 = vadd.f32 %v3280_v7, %v275_v3  ;;  %v2325_v3 = vld [vmem:[%s3269_s28 + $0x3a0] sm:$0xff]  ;;  %v2326_v5 = vld [vmem:[%s3269_s28 + $0x3a8] sm:$0xff]  ;;  %v2327_v10 = vld [vmem:[%s3269_s28 + $0x3b0] sm:$0xff]  ;;  %4986 = vst [vmem:[#allocation73_spill] sm:$0xff] %v3836_v52 }
  0x9b   : > { %v3828_v63 = vadd.f32 %v2326_v5, %v3282_v8  ;;  %v3833_v37 = vadd.f32 %v2327_v10, %v3280_v7  ;;  %v282_v5 = vld [vmem:[%s3269_s28 + $0x1d8] sm:$0xff] }
  0x9c   : > { %4979 = vst [vmem:[#allocation66_spill] sm:$0xff] %v3805_v57  ;;  %v3856_v20 = vadd.f32 %v3282_v8, %v282_v5 }
  0x9d   : > { %4984 = vst [vmem:[#allocation71_spill] sm:$0xff] %v3828_v63  ;;  %4985 = vst [vmem:[#allocation72_spill] sm:$0xff] %v3833_v37  ;;  %v1406_v10 = vmax.f32 %v3833_v37, %v3836_v52 }
  0x9e   : > { %435 = vmax.xlane.f32.xlu0 %v434_v36  ;;  %438 = vmax.xlane.f32.xlu1 %v437_v55  ;;  %v440_v36 = vmax.f32 %v3805_v57, %v3808_v35  ;;  %v3825_v55 = vadd.f32 %v2325_v3, %v3280_v7  ;;  %v279_v3 = vld [vmem:[%s3269_s28 + $0x1c0] sm:$0xff]  ;;  %v280_v35 = vld [vmem:[%s3269_s28 + $0x1c8] sm:$0xff]  ;;  %v281_v57 = vld [vmem:[%s3269_s28 + $0x1d0] sm:$0xff]  ;;  %4990 = vst [vmem:[#allocation77_spill] sm:$0xff] %v3856_v20 }
  0x9f   : > { %v3848_v39 = vadd.f32 %v3282_v8, %v280_v35  ;;  %v3853_v4 = vadd.f32 %v3280_v7, %v281_v57  ;;  %v2332_v35 = vld [vmem:[%s3269_s28 + $0x3d8] sm:$0xff] }
  0xa0   : > { %4983 = vst [vmem:[#allocation70_spill] sm:$0xff] %v3825_v55  ;;  %v3876_v37 = vadd.f32 %v2332_v35, %v3282_v8 }
  0xa1   : > { %4988 = vst [vmem:[#allocation75_spill] sm:$0xff] %v3848_v39  ;;  %4989 = vst [vmem:[#allocation76_spill] sm:$0xff] %v3853_v4  ;;  %v449_v57 = vmax.f32 %v3853_v4, %v3856_v20 }
  0xa2   : > { %1398 = vmax.xlane.f32.xlu0 %v1397_v38  ;;  %1401 = vmax.xlane.f32.xlu1 %v1400_v56  ;;  %v1403_v38 = vmax.f32 %v3825_v55, %v3828_v63  ;;  %v3845_v56 = vadd.f32 %v3280_v7, %v279_v3  ;;  %v2329_v3 = vld [vmem:[%s3269_s28 + $0x3c0] sm:$0xff]  ;;  %v2330_v63 = vld [vmem:[%s3269_s28 + $0x3c8] sm:$0xff]  ;;  %v2331_v55 = vld [vmem:[%s3269_s28 + $0x3d0] sm:$0xff]  ;;  %4991 = vst [vmem:[#allocation78_spill] sm:$0xff] %v3876_v37 }
  0xa3   : > { %v3868_v52 = vadd.f32 %v2330_v63, %v3282_v8  ;;  %v3873_v5 = vadd.f32 %v2331_v55, %v3280_v7  ;;  %v286_v63 = vld [vmem:[%s3269_s28 + $0x1f8] sm:$0xff] }
  0xa4   : > { %4987 = vst [vmem:[#allocation74_spill] sm:$0xff] %v3845_v56  ;;  %v3896_v4 = vadd.f32 %v3282_v8, %v286_v63  ;;  %v3913_v63 = vadd.f32 %v2335_v46, %v3280_v7 }
  0xa5   : > { %v1412_v35 = vmax.f32 %v3873_v5, %v3876_v37  ;;  %v3916_v37 = vadd.f32 %v2336_v28, %v3282_v8 }
  0xa6   : > { %441 = vmax.xlane.f32.xlu0 %v440_v36  ;;  %444 = vmax.xlane.f32.xlu1 %v443_v49  ;;  %v446_v36 = vmax.f32 %v3845_v56, %v3848_v39  ;;  %v3865_v49 = vadd.f32 %v2329_v3, %v3280_v7  ;;  %v283_v3 = vld [vmem:[%s3269_s28 + $0x1e0] sm:$0xff]  ;;  %v284_v39 = vld [vmem:[%s3269_s28 + $0x1e8] sm:$0xff]  ;;  %v285_v56 = vld [vmem:[%s3269_s28 + $0x1f0] sm:$0xff]  ;;  %4993 = vst [vmem:[#allocation80_spill] sm:$0xff] %v3896_v4 }
  0xa7   : > { %v3889_v20 = vadd.f32 %v3280_v7, %v285_v56  ;;  %v3905_v56 = vadd.f32 %v2333_v25, %v3280_v7  ;;  %4996 = vst [vmem:[#allocation83_spill] sm:$0xff] %v3916_v37 }
  0xa8   : > { %v1409_v55 = vmax.f32 %v3865_v49, %v3868_v52 }
  0xa9   : > { %4992 = vst [vmem:[#allocation79_spill] sm:$0xff] %v3889_v20  ;;  %4994 = vst [vmem:[#allocation81_spill] sm:$0xff] %v3905_v56 }
  0xaa   : > { %1404 = vmax.xlane.f32.xlu0 %v1403_v38  ;;  %1407 = vmax.xlane.f32.xlu1 %v1406_v10  ;;  %v3883_v38 = vadd.f32 %v3280_v7, %v283_v3  ;;  %v3886_v10 = vadd.f32 %v3282_v8, %v284_v39  ;;  %v2334_v3 = vld [vmem:[%s3269_s28 + $0x3e8] sm:$0xff] }
  0xac   : > { %v452_v39 = vmax.f32 %v3883_v38, %v3886_v10 }
  0xae   : > { %447 = vmax.xlane.f32.xlu0 %v446_v36  ;;  %450 = vmax.xlane.f32.xlu1 %v449_v57  ;;  %v3908_v36 = vadd.f32 %v2334_v3, %v3282_v8  ;;  %v455_v57 = vmax.f32 %v3889_v20, %v3896_v4  ;;  %v1418_v3 = vmax.f32 %v3913_v63, %v3916_v37 }
  0xb0   : > { %4995 = vst [vmem:[#allocation82_spill] sm:$0xff] %v3908_v36  ;;  %v1415_v25 = vmax.f32 %v3905_v56, %v3908_v36 }
  0xb2   : > { %1410 = vmax.xlane.f32.xlu0 %v1409_v55  ;;  %1413 = vmax.xlane.f32.xlu1 %v1412_v35 }
  0xb6   : > { %453 = vmax.xlane.f32.xlu0 %v452_v39  ;;  %456 = vmax.xlane.f32.xlu1 %v455_v57 }
  0xba   : > { %1416 = vmax.xlane.f32.xlu0 %v1415_v25  ;;  %1419 = vmax.xlane.f32.xlu1 %v1418_v3 }
  0xc7   : > { %v364_v55 = vpop.xlane.xlu0 %363  ;;  %v1327_v35 = vpop.xlane.xlu1 %1326 }
  0xc8   : > { %v458_v4 = vsub.f32 %v3291_v15, %v364_v55  ;;  %v459_v7 = vsub.f32 %v3294_v16, %v364_v55  ;;  %v1421_v46 = vsub.f32 %v3297_v17, %v1327_v35  ;;  %v1422_v8 = vsub.f32 %v3300_v18, %v1327_v35 }
  0xca   : > { %v522_v28 = vmul.f32 1.442695, %v458_v4  ;;  %v524_v39 = vmul.f32 1.442695, %v459_v7  ;;  %v1485_v57 = vmul.f32 1.442695, %v1421_v46 }
  0xcb   : > { %v1487_v20 = vmul.f32 1.442695, %v1422_v8  ;;  %v367_v36 = vpop.xlane.xlu0 %366  ;;  %v1330_v56 = vpop.xlane.xlu1 %1329 }
  0xcc   : > { %2720 = vpow2.f32 %v522_v28  ;;  %v460_v25 = vsub.f32 %v3305_v21, %v367_v36  ;;  %v461_v3 = vsub.f32 %v3308_v22, %v367_v36  ;;  %v1423_v37 = vsub.f32 %v3311_v23, %v1330_v56 }
  0xcd   : > { %2722 = vpow2.f32 %v524_v39  ;;  %v1424_v15 = vsub.f32 %v3314_v24, %v1330_v56 }
  0xce   : > { %2724 = vpow2.f32 %v1485_v57  ;;  %v526_v16 = vmul.f32 1.442695, %v460_v25  ;;  %v528_v17 = vmul.f32 1.442695, %v461_v3  ;;  %v1489_v18 = vmul.f32 1.442695, %v1423_v37 }
  0xcf   : > { %2726 = vpow2.f32 %v1487_v20  ;;  %v1491_v4 = vmul.f32 1.442695, %v1424_v15  ;;  %v370_v55 = vpop.xlane.xlu0 %369  ;;  %v373_v35 = vpop.xlane.xlu1 %372 }
  0xd0   : > { %2728 = vpow2.f32 %v526_v16  ;;  %v462_v7 = vsub.f32 %v3325_v30, %v370_v55  ;;  %v463_v21 = vsub.f32 %v3328_v31, %v370_v55  ;;  %v464_v22 = vsub.f32 %v3333_v33, %v373_v35 }
  0xd1   : > { %2730 = vpow2.f32 %v528_v17  ;;  %v465_v23 = vsub.f32 %v3336_v34, %v373_v35 }
  0xd2   : > { %2732 = vpow2.f32 %v1489_v18  ;;  %v530_v24 = vmul.f32 1.442695, %v462_v7  ;;  %v532_v56 = vmul.f32 1.442695, %v463_v21  ;;  %v534_v36 = vmul.f32 1.442695, %v464_v22 }
  0xd3   : > { %2734 = vpow2.f32 %v1491_v4  ;;  %v536_v20 = vmul.f32 1.442695, %v465_v23  ;;  %v1333_v37 = vpop.xlane.xlu0 %1332  ;;  %v1336_v46 = vpop.xlane.xlu1 %1335 }
  0xd4   : > { %2736 = vpow2.f32 %v530_v24  ;;  %v1425_v8 = vsub.f32 %v3345_v40, %v1333_v37  ;;  %v1426_v30 = vsub.f32 %v3348_v41, %v1333_v37  ;;  %v1427_v31 = vsub.f32 %v3353_v43, %v1336_v46 }
  0xd5   : > { %2738 = vpow2.f32 %v532_v56  ;;  %v1428_v33 = vsub.f32 %v3356_v44, %v1336_v46 }
  0xd6   : > { %2740 = vpow2.f32 %v534_v36  ;;  %v1493_v34 = vmul.f32 1.442695, %v1425_v8  ;;  %v1495_v28 = vmul.f32 1.442695, %v1426_v30  ;;  %v1497_v39 = vmul.f32 1.442695, %v1427_v31 }
  0xd7   : > { %2742 = vpow2.f32 %v536_v20  ;;  %v1499_v57 = vmul.f32 1.442695, %v1428_v33  ;;  %v376_v25 = vpop.xlane.xlu0 %375  ;;  %v379_v3 = vpop.xlane.xlu1 %378 }
  0xd8   : > { %2744 = vpow2.f32 %v1493_v34  ;;  %v466_v40 = vsub.f32 %v3365_v50, %v376_v25  ;;  %v467_v41 = vsub.f32 %v3368_v51, %v376_v25  ;;  %v468_v43 = vsub.f32 %v3373_v53, %v379_v3 }
  0xd9   : > { %v3943_v15 = vpop.eup %2720  ;;  %2746 = vpow2.f32 %v1495_v28  ;;  %v469_v44 = vsub.f32 %v3376_v54, %v379_v3 }
  0xda   : > { %v3948_v16 = vpop.eup %2722  ;;  %2748 = vpow2.f32 %v1497_v39  ;;  %v538_v17 = vmul.f32 1.442695, %v466_v40  ;;  %v540_v18 = vmul.f32 1.442695, %v467_v41  ;;  %v542_v4 = vmul.f32 1.442695, %v468_v43 }
  0xdb   : > { %v3950_v55 = vpop.eup %2724  ;;  %2750 = vpow2.f32 %v1499_v57  ;;  %v544_v50 = vmul.f32 1.442695, %v469_v44  ;;  %v1339_v51 = vpop.xlane.xlu0 %1338  ;;  %v650_v53 = vadd.f32 %v3948_v16, %v3943_v15  ;;  %v2689_v39 = vld [vmem:[%s3963_s4 + $0x38] sm:$0xff]   ;;  %v2690_v40 = vld [vmem:[%s3963_s4 + $0x70] sm:$0xff]  }
  0xdc   : > { %v1342_v35 = vpop.xlane.xlu1 %1341  ;;  %v3955_v54 = vpop.eup %2726  ;;  %2752 = vpow2.f32 %v538_v17  ;;  %v1429_v7 = vsub.f32 %v3383_v59, %v1339_v51  ;;  %v1430_v21 = vsub.f32 %v3386_v60, %v1339_v51  ;;  %v2688_v59 = vld [vmem:[%s3963_s4 + $0x78] sm:$0xff]  }
  0xdd   : > { %v1431_v22 = vsub.f32 %v3389_v61, %v1342_v35  ;;  %v3965_v23 = vpop.eup %2728  ;;  %2754 = vpow2.f32 %v540_v18  ;;  %651 = vadd.xlane.f32.xlu0 %v650_v53  ;;  %v1432_v24 = vsub.f32 %v3396_v0, %v1342_v35  ;;  %v1613_v56 = vadd.f32 %v3955_v54, %v3950_v55  ;;  %2423 = vmatprep.subr.bf16.mxu0 %v2688_v59 }
  0xde   : > { %v3971_v36 = vpop.eup %2730  ;;  %2756 = vpow2.f32 %v542_v4  ;;  %v1501_v60 = vmul.f32 1.442695, %v1429_v7  ;;  %v1503_v61 = vmul.f32 1.442695, %v1430_v21  ;;  %2424 = vmatpush3.bf16.msra.mxu0 %v2689_v39  ;;  %v2691_v4 = vld [vmem:[%s3963_s4 + $0xf8] sm:$0xff]  }
  0xdf   : > { %v1505_v20 = vmul.f32 1.442695, %v1431_v22  ;;  %v3973_v37 = vpop.eup %2732  ;;  %2758 = vpow2.f32 %v544_v50  ;;  %v1507_v46 = vmul.f32 1.442695, %v1432_v24  ;;  %v382_v8 = vpop.xlane.xlu0 %381  ;;  %v653_v0 = vadd.f32 %v3971_v36, %v3965_v23  ;;  %2425 = vmatprep.subr.bf16.mxu0 %v2690_v40  ;;  %v2692_v50 = vld [vmem:[%s3963_s4 + $0x30] sm:$0xff]   ;;  %2535 = vmatprep.subr.bf16.mxu1 %v2691_v4  ;;  %v2696_v40 = vld [vmem:[%s3963_s4 + $0x28] sm:$0xff]  }
  0xe0   : > { %v385_v30 = vpop.xlane.xlu1 %384  ;;  %v3977_v31 = vpop.eup %2734  ;;  %2760 = vpow2.f32 %v1501_v60  ;;  %v470_v33 = vsub.f32 %v3405_v6, %v382_v8  ;;  %v471_v34 = vsub.f32 %v3408_v9, %v382_v8  ;;  %v2694_v8 = vld [vmem:[%s3963_s4 + $0x68] sm:$0xff]  }
  0xe1   : > { %v472_v28 = vsub.f32 %v3413_v11, %v385_v30  ;;  %v3983_v57 = vpop.eup %2736  ;;  %2762 = vpow2.f32 %v1503_v61  ;;  %1614 = vadd.xlane.f32.xlu0 %v1613_v56  ;;  %654 = vadd.xlane.f32.xlu1 %v653_v0  ;;  %v473_v25 = vsub.f32 %v3416_v12, %v385_v30  ;;  %v1616_v3 = vadd.f32 %v3977_v31, %v3973_v37  ;;  %v2693_v56 = vld [vmem:[%s3963_s4 + $0xb8] sm:$0xff]   ;;  %v2695_v0 = vld [vmem:[%s3963_s4 + $0xf0] sm:$0xff]  }
  0xe2   : > { %v3989_v41 = vpop.eup %2738  ;;  %2764 = vpow2.f32 %v1505_v20  ;;  %v546_v6 = vmul.f32 1.442695, %v470_v33  ;;  %v548_v9 = vmul.f32 1.442695, %v471_v34  ;;  %2426 = vmatpush3.bf16.msra.mxu0 %v2692_v50  ;;  %2536 = vmatpush3.bf16.msra.mxu1 %v2693_v56  ;;  %v2699_v56 = vld [vmem:[%s3963_s4 + $0xe8] sm:$0xff]  }
  0xe3   : > { %v550_v11 = vmul.f32 1.442695, %v472_v28  ;;  %v3991_v43 = vpop.eup %2740  ;;  %2766 = vpow2.f32 %v1507_v46  ;;  %v552_v44 = vmul.f32 1.442695, %v473_v25  ;;  %v1345_v17 = vpop.xlane.xlu0 %1344  ;;  %v656_v12 = vadd.f32 %v3989_v41, %v3983_v57  ;;  %2427 = vmatprep.subr.bf16.mxu0 %v2694_v8  ;;  %2537 = vmatprep.subr.bf16.mxu1 %v2695_v0 }
  0xe4   : > { %v1348_v18 = vpop.xlane.xlu1 %1347  ;;  %v3997_v51 = vpop.eup %2742  ;;  %2768 = vpow2.f32 %v546_v6  ;;  %v1433_v53 = vsub.f32 %v3425_v26, %v1345_v17  ;;  %v1434_v35 = vsub.f32 %v3428_v27, %v1345_v17 }
  0xe5   : > { %v1435_v7 = vsub.f32 %v3433_v29, %v1348_v18  ;;  %v4002_v21 = vpop.eup %2744  ;;  %2770 = vpow2.f32 %v548_v9  ;;  %1617 = vadd.xlane.f32.xlu1 %v1616_v3  ;;  %657 = vadd.xlane.f32.xlu0 %v656_v12  ;;  %v1436_v22 = vsub.f32 %v3436_v32, %v1348_v18  ;;  %v659_v24 = vadd.f32 %v3997_v51, %v3991_v43  ;;  %v2697_v12 = vld [vmem:[%s3963_s4 + $0xb0] sm:$0xff]   ;;  %v2698_v18 = vld [vmem:[%s3963_s4 + $0x60] sm:$0xff]  }
  0xe6   : > { %v4008_v59 = vpop.eup %2746  ;;  %2772 = vpow2.f32 %v550_v11  ;;  %v1509_v26 = vmul.f32 1.442695, %v1433_v53  ;;  %v1511_v27 = vmul.f32 1.442695, %v1434_v35  ;;  %2428 = vmatpush3.bf16.msra.mxu0 %v2696_v40  ;;  %2538 = vmatpush3.bf16.msra.mxu1 %v2697_v12  ;;  %v2703_v12 = vld [vmem:[%s3963_s4 + $0xe0] sm:$0xff]  }
  0xe7   : > { %v1513_v60 = vmul.f32 1.442695, %v1435_v7  ;;  %v4010_v29 = vpop.eup %2748  ;;  %2774 = vpow2.f32 %v552_v44  ;;  %v1515_v61 = vmul.f32 1.442695, %v1436_v22  ;;  %v388_v20 = vpop.xlane.xlu0 %387  ;;  %v1619_v32 = vadd.f32 %v4008_v59, %v4002_v21  ;;  %2429 = vmatprep.subr.bf16.mxu0 %v2698_v18  ;;  %2539 = vmatprep.subr.bf16.mxu1 %v2699_v56  ;;  %v2704_v18 = vld [vmem:[%s3963_s4 + $0x18] sm:$0xff]  }
  0xe8   : > { %v391_v46 = vpop.xlane.xlu1 %390  ;;  %v4016_v30 = vpop.eup %2750  ;;  %2776 = vpow2.f32 %v1509_v26  ;;  %v474_v33 = vsub.f32 %v3445_v42, %v388_v20  ;;  %v475_v34 = vsub.f32 %v3448_v45, %v388_v20  ;;  %v5000_v56 = vld [vmem:[#allocation8_spill] sm:$0xff] }
  0xe9   : > { %v476_v28 = vsub.f32 %v3453_v47, %v391_v46  ;;  %v4021_v39 = vpop.eup %2752  ;;  %2778 = vpow2.f32 %v1511_v27  ;;  %660 = vadd.xlane.f32.xlu1 %v659_v24  ;;  %1620 = vadd.xlane.f32.xlu0 %v1619_v32  ;;  %v477_v25 = vsub.f32 %v3456_v48, %v391_v46  ;;  %v1622_v3 = vadd.f32 %v4016_v30, %v4010_v29  ;;  %v2700_v32 = vld [vmem:[%s3963_s4 + $0x20] sm:$0xff]   ;;  %v2701_v46 = vld [vmem:[%s3963_s4 + $0xa8] sm:$0xff]  }
  0xea   : > { %v4027_v6 = vpop.eup %2754  ;;  %2780 = vpow2.f32 %v1513_v60  ;;  %v554_v42 = vmul.f32 1.442695, %v474_v33  ;;  %v556_v45 = vmul.f32 1.442695, %v475_v34  ;;  %2430 = vmatpush3.bf16.msra.mxu0 %v2700_v32  ;;  %2540 = vmatpush3.bf16.msra.mxu1 %v2701_v46 }
  0xeb   : > { %v558_v9 = vmul.f32 1.442695, %v476_v28  ;;  %v4029_v47 = vpop.eup %2756  ;;  %2782 = vpow2.f32 %v1515_v61  ;;  %v560_v11 = vmul.f32 1.442695, %v477_v25  ;;  %v1351_v44 = vpop.xlane.xlu0 %1350  ;;  %v662_v48 = vadd.f32 %v4027_v6, %v4021_v39  ;;  %v4997_v25 = vld [vmem:[#allocation5_spill] sm:$0xff]  ;;  %2541 = vmatprep.subr.bf16.mxu1 %v2703_v12  ;;  %v5004_v12 = vld [vmem:[#allocation12_spill] sm:$0xff] }
  0xec   : > { %v1354_v17 = vpop.xlane.xlu1 %1353  ;;  %v4035_v4 = vpop.eup %2758  ;;  %2784 = vpow2.f32 %v554_v42  ;;  %v1437_v50 = vsub.f32 %v3465_v58, %v1351_v44  ;;  %v1438_v53 = vsub.f32 %v3468_v62, %v1351_v44  ;;  %v2702_v42 = vld [vmem:[%s3963_s4 + $0x58] sm:$0xff]  }
  0xed   : > { %v1439_v35 = vsub.f32 %v3473_v1, %v1354_v17  ;;  %v4040_v7 = vpop.eup %2760  ;;  %2786 = vpow2.f32 %v556_v45  ;;  %1623 = vadd.xlane.f32.xlu1 %v1622_v3  ;;  %663 = vadd.xlane.f32.xlu0 %v662_v48  ;;  %v1440_v22 = vsub.f32 %v3476_v2, %v1354_v17  ;;  %v665_v24 = vadd.f32 %v4035_v4, %v4029_v47 }
  0xee   : > { %v4046_v26 = vpop.eup %2762  ;;  %2788 = vpow2.f32 %v558_v9  ;;  %v1517_v58 = vmul.f32 1.442695, %v1437_v50  ;;  %v1519_v62 = vmul.f32 1.442695, %v1438_v53  ;;  %2431 = vmatprep.subr.bf16.mxu0 %v2702_v42  ;;  %v4998_v53 = vld [vmem:[#allocation6_spill] sm:$0xff]  ;;  %v2706_v42 = vld [vmem:[%s3963_s4 + $0x50] sm:$0xff]  }
  0xef   : > { %v1521_v27 = vmul.f32 1.442695, %v1439_v35  ;;  %v4048_v1 = vpop.eup %2764  ;;  %2790 = vpow2.f32 %v560_v11  ;;  %v1523_v60 = vmul.f32 1.442695, %v1440_v22  ;;  %v394_v61 = vpop.xlane.xlu0 %393  ;;  %v1625_v2 = vadd.f32 %v4046_v26, %v4040_v7  ;;  %v4999_v22 = vld [vmem:[#allocation7_spill] sm:$0xff]  ;;  %2432 = vmatpush3.bf16.msra.mxu0 %v2704_v18 }
  0xf0   : > { %v397_v20 = vpop.xlane.xlu1 %396  ;;  %v4054_v8 = vpop.eup %2766  ;;  %2792 = vpow2.f32 %v1517_v58  ;;  %v478_v0 = vsub.f32 %v3483_v13, %v394_v61  ;;  %v479_v33 = vsub.f32 %v3486_v14, %v394_v61  ;;  %2433 = vmatprep.subr.bf16.mxu0 %v2706_v42  ;;  %v5009_v42 = vld [vmem:[#allocation15_spill] sm:$0xff] }
  0xf1   : > { %v480_v34 = vsub.f32 %v3489_v19, %v397_v20  ;;  %v4059_v28 = vpop.eup %2768  ;;  %2794 = vpow2.f32 %v1519_v62  ;;  %666 = vadd.xlane.f32.xlu1 %v665_v24  ;;  %1626 = vadd.xlane.f32.xlu0 %v1625_v2  ;;  %v481_v3 = vsub.f32 %v4997_v25, %v397_v20  ;;  %v1628_v40 = vadd.f32 %v4054_v8, %v4048_v1  ;;  %v2705_v2 = vld [vmem:[%s3963_s4 + $0xa0] sm:$0xff]  }
  0xf2   : > { %v4065_v45 = vpop.eup %2770  ;;  %2796 = vpow2.f32 %v1521_v27  ;;  %v562_v13 = vmul.f32 1.442695, %v478_v0  ;;  %v564_v14 = vmul.f32 1.442695, %v479_v33  ;;  %v5001_v27 = vld [vmem:[#allocation9_spill] sm:$0xff]  ;;  %2542 = vmatpush3.bf16.msra.mxu1 %v2705_v2 }
  0xf3   : > { %v566_v9 = vmul.f32 1.442695, %v480_v34  ;;  %v4067_v19 = vpop.eup %2772  ;;  %2798 = vpow2.f32 %v1523_v60  ;;  %v568_v11 = vmul.f32 1.442695, %v481_v3  ;;  %v1357_v44 = vpop.xlane.xlu0 %1356  ;;  %v668_v48 = vadd.f32 %v4065_v45, %v4059_v28 }
  0xf4   : > { %v1360_v17 = vpop.xlane.xlu1 %1359  ;;  %v4073_v50 = vpop.eup %2774  ;;  %2800 = vpow2.f32 %v562_v13  ;;  %v1441_v35 = vsub.f32 %v4998_v53, %v1357_v44  ;;  %v1442_v24 = vsub.f32 %v4999_v22, %v1357_v44  ;;  %v2707_v13 = vld [vmem:[%s3963_s4 + $0xd8] sm:$0xff]   ;;  %v5006_v53 = vld [vmem:[#allocation13_spill] sm:$0xff] }
  0xf5   : > { %v1443_v58 = vsub.f32 %v5000_v56, %v1360_v17  ;;  %v4078_v62 = vpop.eup %2776  ;;  %2802 = vpow2.f32 %v564_v14  ;;  %1629 = vadd.xlane.f32.xlu1 %v1628_v40  ;;  %669 = vadd.xlane.f32.xlu0 %v668_v48  ;;  %v1444_v60 = vsub.f32 %v5001_v27, %v1360_v17  ;;  %v671_v61 = vadd.f32 %v4073_v50, %v4067_v19  ;;  %v5003_v48 = vld [vmem:[#allocation11_spill] sm:$0xff] }
  0xf6   : > { %v4084_v20 = vpop.eup %2778  ;;  %2804 = vpow2.f32 %v566_v9  ;;  %v1525_v32 = vmul.f32 1.442695, %v1441_v35  ;;  %v1527_v46 = vmul.f32 1.442695, %v1442_v24  ;;  %v5002_v9 = vld [vmem:[#allocation10_spill] sm:$0xff]  ;;  %v2708_v24 = vld [vmem:[%s3963_s4 + $0x10] sm:$0xff]   ;;  %2543 = vmatprep.subr.bf16.mxu1 %v2707_v13 }
  0xf7   : > { %v1529_v0 = vmul.f32 1.442695, %v1443_v58  ;;  %v4086_v33 = vpop.eup %2780  ;;  %2806 = vpow2.f32 %v568_v11  ;;  %v1531_v34 = vmul.f32 1.442695, %v1444_v60  ;;  %v400_v25 = vpop.xlane.xlu0 %399  ;;  %v1631_v3 = vadd.f32 %v4084_v20, %v4078_v62  ;;  %2434 = vmatpush3.bf16.msra.mxu0 %v2708_v24 }
  0xf8   : > { %v403_v40 = vpop.xlane.xlu1 %402  ;;  %v4092_v14 = vpop.eup %2782  ;;  %2808 = vpow2.f32 %v1525_v32  ;;  %v482_v44 = vsub.f32 %v5002_v9, %v400_v25  ;;  %v483_v17 = vsub.f32 %v5003_v48, %v400_v25  ;;  %v5010_v48 = vld [vmem:[#allocation16_spill] sm:$0xff] }
  0xf9   : > { %v484_v18 = vsub.f32 %v5004_v12, %v403_v40  ;;  %v4097_v11 = vpop.eup %2784  ;;  %2810 = vpow2.f32 %v1527_v46  ;;  %672 = vadd.xlane.f32.xlu1 %v671_v61  ;;  %1632 = vadd.xlane.f32.xlu0 %v1631_v3  ;;  %v485_v35 = vsub.f32 %v5006_v53, %v403_v40  ;;  %v1634_v22 = vadd.f32 %v4092_v14, %v4086_v33  ;;  %v2709_v3 = vld [vmem:[%s3963_s4 + $0x98] sm:$0xff]   ;;  %v2710_v40 = vld [vmem:[%s3963_s4 + $0x48] sm:$0xff]   ;;  %v5012_v12 = vld [vmem:[#allocation17_spill] sm:$0xff] }
  0xfa   : > { %5005 = vst [vmem:[#allocation5_spill] sm:$0xff] %v4097_v11  ;;  %v4103_v56 = vpop.eup %2786  ;;  %2812 = vpow2.f32 %v1529_v0  ;;  %v570_v58 = vmul.f32 1.442695, %v482_v44  ;;  %v572_v27 = vmul.f32 1.442695, %v483_v17  ;;  %v5008_v0 = vld [vmem:[#allocation14_spill] sm:$0xff]  ;;  %2544 = vmatpush3.bf16.msra.mxu1 %v2709_v3  ;;  %2435 = vmatprep.subr.bf16.mxu0 %v2710_v40 }
  0xfb   : > { %v574_v60 = vmul.f32 1.442695, %v484_v18  ;;  %v4105_v2 = vpop.eup %2788  ;;  %2814 = vpow2.f32 %v1531_v34  ;;  %v576_v61 = vmul.f32 1.442695, %v485_v35  ;;  %v1363_v32 = vpop.xlane.xlu0 %1362  ;;  %v674_v46 = vadd.f32 %v4103_v56, %v4097_v11  ;;  %v2711_v35 = vld [vmem:[%s3963_s4 + $0xd0] sm:$0xff]  }
  0xfc   : > { %5007 = vst [vmem:[#allocation6_spill] sm:$0xff] %v4105_v2  ;;  %v1366_v25 = vpop.xlane.xlu1 %1365  ;;  %v4111_v9 = vpop.eup %2790  ;;  %2816 = vpow2.f32 %v570_v58  ;;  %v1445_v44 = vsub.f32 %v5008_v0, %v1363_v32  ;;  %v1446_v13 = vsub.f32 %v5009_v42, %v1363_v32  ;;  %2545 = vmatprep.subr.bf16.mxu1 %v2711_v35  ;;  %v5017_v3 = vld [vmem:[#allocation19_spill] sm:$0xff] }
  0xfd   : > { %v1447_v17 = vsub.f32 %v5010_v48, %v1366_v25  ;;  %v4116_v34 = vpop.eup %2792  ;;  %2818 = vpow2.f32 %v572_v27  ;;  %1635 = vadd.xlane.f32.xlu1 %v1634_v22  ;;  %675 = vadd.xlane.f32.xlu0 %v674_v46  ;;  %v1448_v18 = vsub.f32 %v5012_v12, %v1366_v25  ;;  %v677_v53 = vadd.f32 %v4111_v9, %v4105_v2  ;;  %v2712_v48 = vld [vmem:[%s3963_s4 + $0x8] sm:$0xff]   ;;  %v2713_v12 = vld [vmem:[%s3963_s4 + $0x90] sm:$0xff]  }
  0xfe   : > { %5011 = vst [vmem:[#allocation7_spill] sm:$0xff] %v4116_v34  ;;  %v4122_v24 = vpop.eup %2794  ;;  %2820 = vpow2.f32 %v574_v60  ;;  %v1533_v58 = vmul.f32 1.442695, %v1445_v44  ;;  %v1535_v32 = vmul.f32 1.442695, %v1446_v13  ;;  %v5016_v60 = vld [vmem:[#allocation18_spill] sm:$0xff]  ;;  %2436 = vmatpush3.bf16.msra.mxu0 %v2712_v48  ;;  %2546 = vmatpush3.bf16.msra.mxu1 %v2713_v12 }
  0xff   : > { %5013 = vst [vmem:[#allocation8_spill] sm:$0xff] %v4122_v24  ;;  %v1537_v0 = vmul.f32 1.442695, %v1447_v17  ;;  %v4124_v42 = vpop.eup %2796  ;;  %2822 = vpow2.f32 %v576_v61  ;;  %v1539_v22 = vmul.f32 1.442695, %v1448_v18  ;;  %v406_v27 = vpop.xlane.xlu0 %405  ;;  %v1637_v46 = vadd.f32 %v4122_v24, %v4116_v34  ;;  %v5018_v13 = vld [vmem:[#allocation20_spill] sm:$0xff] }
 0x100   : > { %5014 = vst [vmem:[#allocation9_spill] sm:$0xff] %v4124_v42  ;;  %v409_v25 = vpop.xlane.xlu1 %408  ;;  %v4130_v2 = vpop.eup %2798  ;;  %2824 = vpow2.f32 %v1533_v58  ;;  %v486_v44 = vsub.f32 %v5016_v60, %v406_v27  ;;  %v487_v40 = vsub.f32 %v5017_v3, %v406_v27  ;;  %v5020_v18 = vld [vmem:[#allocation21_spill] sm:$0xff]  ;;  %v5025_v48 = vld [vmem:[#allocation23_spill] sm:$0xff] }
 0x101   : > { %5015 = vst [vmem:[#allocation10_spill] sm:$0xff] %v4130_v2  ;;  %v488_v17 = vsub.f32 %v5018_v13, %v409_v25  ;;  %v4135_v61 = vpop.eup %2800  ;;  %2826 = vpow2.f32 %v1535_v32  ;;  %678 = vadd.xlane.f32.xlu1 %v677_v53  ;;  %1638 = vadd.xlane.f32.xlu0 %v1637_v46  ;;  %v489_v34 = vsub.f32 %v5020_v18, %v409_v25  ;;  %v2714_v24 = vld [vmem:[%s3963_s4 + $0x40] sm:$0xff]   ;;  %v2715_v18 = vld [vmem:[%s3963_s4 + $0xc8] sm:$0xff]  }
 0x102   : > { %5019 = vst [vmem:[#allocation11_spill] sm:$0xff] %v4135_v61  ;;  %v1640_v35 = vadd.f32 %v4130_v2, %v4124_v42  ;;  %v4141_v58 = vpop.eup %2802  ;;  %2828 = vpow2.f32 %v1537_v0  ;;  %v578_v60 = vmul.f32 1.442695, %v486_v44  ;;  %v580_v27 = vmul.f32 1.442695, %v487_v40  ;;  %2437 = vmatprep.subr.bf16.mxu0 %v2714_v24  ;;  %v2716_v42 = vld [vmem:[%s3963_s4] sm:$0xff]   ;;  %2547 = vmatprep.subr.bf16.mxu1 %v2715_v18 }
 0x103   : > { %5021 = vst [vmem:[#allocation12_spill] sm:$0xff] %v4141_v58  ;;  %v582_v3 = vmul.f32 1.442695, %v488_v17  ;;  %v4143_v13 = vpop.eup %2804  ;;  %2830 = vpow2.f32 %v1539_v22  ;;  %v584_v53 = vmul.f32 1.442695, %v489_v34  ;;  %v1369_v32 = vpop.xlane.xlu0 %1368  ;;  %v680_v46 = vadd.f32 %v4141_v58, %v4135_v61  ;;  %v5024_v0 = vld [vmem:[#allocation22_spill] sm:$0xff]  ;;  %2438 = vmatpush3.bf16.msra.mxu0 %v2716_v42 }
 0x104   : > { %5022 = vst [vmem:[#allocation13_spill] sm:$0xff] %v4143_v13  ;;  %v1372_v25 = vpop.xlane.xlu1 %1371  ;;  %v4149_v2 = vpop.eup %2806  ;;  %2832 = vpow2.f32 %v578_v60  ;;  %v1449_v44 = vsub.f32 %v5024_v0, %v1369_v32  ;;  %v1450_v12 = vsub.f32 %v5025_v48, %v1369_v32  ;;  %v5026_v40 = vld [vmem:[#allocation24_spill] sm:$0xff]  ;;  %v5028_v34 = vld [vmem:[#allocation25_spill] sm:$0xff]  ;;  %v2717_v58 = vld [vmem:[%s3963_s4 + $0x88] sm:$0xff]  }
 0x105   : > { %5023 = vst [vmem:[#allocation14_spill] sm:$0xff] %v4149_v2  ;;  %v1451_v17 = vsub.f32 %v5026_v40, %v1372_v25  ;;  %v4154_v22 = vpop.eup %2808  ;;  %2834 = vpow2.f32 %v580_v27  ;;  %1641 = vadd.xlane.f32.xlu1 %v1640_v35  ;;  %681 = vadd.xlane.f32.xlu0 %v680_v46  ;;  %v1452_v61 = vsub.f32 %v5028_v34, %v1372_v25  ;;  %v2718_v34 = vld [vmem:[%s3963_s4 + $0xc0] sm:$0xff]   ;;  %v5033_v42 = vld [vmem:[#allocation28_spill] sm:$0xff] }
 0x106   : > { %5027 = vst [vmem:[#allocation15_spill] sm:$0xff] %v4154_v22  ;;  %v683_v24 = vadd.f32 %v4149_v2, %v4143_v13  ;;  %v4160_v60 = vpop.eup %2810  ;;  %2836 = vpow2.f32 %v582_v3  ;;  %v1541_v0 = vmul.f32 1.442695, %v1449_v44  ;;  %v1543_v32 = vmul.f32 1.442695, %v1450_v12  ;;  %2548 = vmatpush3.bf16.msra.mxu1 %v2717_v58  ;;  %v2719_v13 = vld [vmem:[%s3963_s4 + $0x80] sm:$0xff]  }
 0x107   : > { %5029 = vst [vmem:[#allocation16_spill] sm:$0xff] %v4160_v60  ;;  %v1545_v48 = vmul.f32 1.442695, %v1451_v17  ;;  %v4162_v40 = vpop.eup %2812  ;;  %2838 = vpow2.f32 %v584_v53  ;;  %v1547_v35 = vmul.f32 1.442695, %v1452_v61  ;;  %v412_v27 = vpop.xlane.xlu0 %411  ;;  %v1643_v46 = vadd.f32 %v4160_v60, %v4154_v22  ;;  %v5031_v3 = vld [vmem:[#allocation26_spill] sm:$0xff]  ;;  %2549 = vmatprep.subr.bf16.mxu1 %v2718_v34 }
 0x108   : > { %5030 = vst [vmem:[#allocation17_spill] sm:$0xff] %v4162_v40  ;;  %v415_v25 = vpop.xlane.xlu1 %414  ;;  %v4168_v2 = vpop.eup %2814  ;;  %2840 = vpow2.f32 %v1541_v0  ;;  %v490_v44 = vsub.f32 %v5031_v3, %v412_v27  ;;  %v5032_v12 = vld [vmem:[#allocation27_spill] sm:$0xff]  ;;  %v5035_v61 = vld [vmem:[#allocation29_spill] sm:$0xff] }
 0x109   : > { %v491_v18 = vsub.f32 %v5032_v12, %v412_v27  ;;  %v492_v17 = vsub.f32 %v5033_v42, %v415_v25  ;;  %v4173_v11 = vpop.eup %2816  ;;  %2842 = vpow2.f32 %v1543_v32  ;;  %684 = vadd.xlane.f32.xlu1 %v683_v24  ;;  %1644 = vadd.xlane.f32.xlu0 %v1643_v46  ;;  %v493_v53 = vsub.f32 %v5035_v61, %v415_v25  ;;  %v5039_v25 = vld [vmem:[#allocation30_spill] sm:$0xff] }
 0x10a   : > { %5034 = vst [vmem:[#allocation18_spill] sm:$0xff] %v4173_v11  ;;  %v1646_v58 = vadd.f32 %v4168_v2, %v4162_v40  ;;  %v4178_v22 = vpop.eup %2818  ;;  %2844 = vpow2.f32 %v1545_v48  ;;  %v586_v0 = vmul.f32 1.442695, %v490_v44  ;;  %2550 = vmatpush3.bf16.msra.mxu1 %v2719_v13  ;;  %v5040_v48 = vld [vmem:[#allocation31_spill] sm:$0xff] }
 0x10b   : > { %5036 = vst [vmem:[#allocation19_spill] sm:$0xff] %v4178_v22  ;;  %v588_v60 = vmul.f32 1.442695, %v491_v18  ;;  %v590_v3 = vmul.f32 1.442695, %v492_v17  ;;  %v4180_v27 = vpop.eup %2820  ;;  %2846 = vpow2.f32 %v1547_v35  ;;  %v1375_v42 = vpop.xlane.xlu0 %1374  ;;  %v686_v24 = vadd.f32 %v4178_v22, %v4173_v11  ;;  %v5041_v18 = vld [vmem:[#allocation32_spill] sm:$0xff] }
 0x10c   : > { %5037 = vst [vmem:[#allocation20_spill] sm:$0xff] %v4180_v27  ;;  %v592_v12 = vmul.f32 1.442695, %v493_v53  ;;  %v1378_v32 = vpop.xlane.xlu1 %1377  ;;  %v4184_v46 = vpop.eup %2822  ;;  %2848 = vpow2.f32 %v586_v0  ;;  %v1453_v61 = vsub.f32 %v5039_v25, %v1375_v42  ;;  %v1454_v44 = vsub.f32 %v5040_v48, %v1375_v42  ;;  %v5043_v35 = vld [vmem:[#allocation33_spill] sm:$0xff] }
 0x10d   : > { %5038 = vst [vmem:[#allocation21_spill] sm:$0xff] %v4184_v46  ;;  %v1455_v17 = vsub.f32 %v5041_v18, %v1378_v32  ;;  %v4189_v34 = vpop.eup %2824  ;;  %2850 = vpow2.f32 %v588_v60  ;;  %1647 = vadd.xlane.f32.xlu1 %v1646_v58  ;;  %687 = vadd.xlane.f32.xlu0 %v686_v24  ;;  %v1456_v53 = vsub.f32 %v5043_v35, %v1378_v32  ;;  %v5047_v32 = vld [vmem:[#allocation34_spill] sm:$0xff]  ;;  %v5048_v35 = vld [vmem:[#allocation35_spill] sm:$0xff] }
 0x10e   : > { %5042 = vst [vmem:[#allocation22_spill] sm:$0xff] %v4189_v34  ;;  %v689_v11 = vadd.f32 %v4184_v46, %v4180_v27  ;;  %v4194_v13 = vpop.eup %2826  ;;  %2852 = vpow2.f32 %v590_v3  ;;  %v1549_v0 = vmul.f32 1.442695, %v1453_v61  ;;  %v1551_v22 = vmul.f32 1.442695, %v1454_v44  ;;  %v5049_v3 = vld [vmem:[#allocation36_spill] sm:$0xff] }
 0x10f   : > { %5044 = vst [vmem:[#allocation23_spill] sm:$0xff] %v4194_v13  ;;  %v1553_v25 = vmul.f32 1.442695, %v1455_v17  ;;  %v4196_v40 = vpop.eup %2828  ;;  %2854 = vpow2.f32 %v592_v12  ;;  %v1555_v42 = vmul.f32 1.442695, %v1456_v53  ;;  %v418_v48 = vpop.xlane.xlu0 %417  ;;  %v1649_v60 = vadd.f32 %v4194_v13, %v4189_v34  ;;  %v5051_v12 = vld [vmem:[#allocation37_spill] sm:$0xff] }
 0x110   : > { %5045 = vst [vmem:[#allocation24_spill] sm:$0xff] %v4196_v40  ;;  %v421_v58 = vpop.xlane.xlu1 %420  ;;  %v4200_v24 = vpop.eup %2830  ;;  %2856 = vpow2.f32 %v1549_v0  ;;  %v494_v18 = vsub.f32 %v5047_v32, %v418_v48  ;;  %v495_v27 = vsub.f32 %v5048_v35, %v418_v48 }
 0x111   : > { %5046 = vst [vmem:[#allocation25_spill] sm:$0xff] %v4200_v24  ;;  %v496_v61 = vsub.f32 %v5049_v3, %v421_v58  ;;  %v4205_v44 = vpop.eup %2832  ;;  %2858 = vpow2.f32 %v1551_v22  ;;  %690 = vadd.xlane.f32.xlu1 %v689_v11  ;;  %1650 = vadd.xlane.f32.xlu0 %v1649_v60  ;;  %v497_v17 = vsub.f32 %v5051_v12, %v421_v58  ;;  %v5055_v58 = vld [vmem:[#allocation38_spill] sm:$0xff]  ;;  %v5056_v12 = vld [vmem:[#allocation39_spill] sm:$0xff] }
 0x112   : > { %5050 = vst [vmem:[#allocation26_spill] sm:$0xff] %v4205_v44  ;;  %v1652_v53 = vadd.f32 %v4200_v24, %v4196_v40  ;;  %v4210_v34 = vpop.eup %2834  ;;  %2860 = vpow2.f32 %v1553_v25  ;;  %v594_v0 = vmul.f32 1.442695, %v494_v18  ;;  %v596_v13 = vmul.f32 1.442695, %v495_v27  ;;  %v5057_v25 = vld [vmem:[#allocation40_spill] sm:$0xff] }
 0x113   : > { %5052 = vst [vmem:[#allocation27_spill] sm:$0xff] %v4210_v34  ;;  %v598_v32 = vmul.f32 1.442695, %v496_v61  ;;  %v4212_v46 = vpop.eup %2836  ;;  %2862 = vpow2.f32 %v1555_v42  ;;  %v600_v48 = vmul.f32 1.442695, %v497_v17  ;;  %v1381_v35 = vpop.xlane.xlu0 %1380  ;;  %v692_v11 = vadd.f32 %v4210_v34, %v4205_v44  ;;  %v5059_v42 = vld [vmem:[#allocation41_spill] sm:$0xff] }
 0x114   : > { %5053 = vst [vmem:[#allocation28_spill] sm:$0xff] %v4212_v46  ;;  %v1384_v22 = vpop.xlane.xlu1 %1383  ;;  %v4216_v60 = vpop.eup %2838  ;;  %2864 = vpow2.f32 %v594_v0  ;;  %v1457_v3 = vsub.f32 %v5055_v58, %v1381_v35  ;;  %v1458_v40 = vsub.f32 %v5056_v12, %v1381_v35 }
 0x115   : > { %5054 = vst [vmem:[#allocation29_spill] sm:$0xff] %v4216_v60  ;;  %v1459_v18 = vsub.f32 %v5057_v25, %v1384_v22  ;;  %v4221_v27 = vpop.eup %2840  ;;  %2866 = vpow2.f32 %v596_v13  ;;  %1653 = vadd.xlane.f32.xlu1 %v1652_v53  ;;  %693 = vadd.xlane.f32.xlu0 %v692_v11  ;;  %v1460_v61 = vsub.f32 %v5059_v42, %v1384_v22  ;;  %v5063_v22 = vld [vmem:[#allocation42_spill] sm:$0xff]  ;;  %v5064_v42 = vld [vmem:[#allocation43_spill] sm:$0xff] }
 0x116   : > { %5058 = vst [vmem:[#allocation30_spill] sm:$0xff] %v4221_v27  ;;  %v695_v17 = vadd.f32 %v4216_v60, %v4212_v46  ;;  %v4226_v44 = vpop.eup %2842  ;;  %2868 = vpow2.f32 %v598_v32  ;;  %v1557_v0 = vmul.f32 1.442695, %v1457_v3  ;;  %v1559_v34 = vmul.f32 1.442695, %v1458_v40  ;;  %v5065_v32 = vld [vmem:[#allocation44_spill] sm:$0xff] }
 0x117   : > { %5060 = vst [vmem:[#allocation31_spill] sm:$0xff] %v4226_v44  ;;  %v1561_v58 = vmul.f32 1.442695, %v1459_v18  ;;  %v4228_v24 = vpop.eup %2844  ;;  %2870 = vpow2.f32 %v600_v48  ;;  %v1563_v35 = vmul.f32 1.442695, %v1460_v61  ;;  %v424_v12 = vpop.xlane.xlu0 %423  ;;  %v1655_v13 = vadd.f32 %v4226_v44, %v4221_v27  ;;  %v5067_v48 = vld [vmem:[#allocation45_spill] sm:$0xff] }
 0x118   : > { %5061 = vst [vmem:[#allocation32_spill] sm:$0xff] %v4228_v24  ;;  %v427_v53 = vpop.xlane.xlu1 %426  ;;  %v4232_v11 = vpop.eup %2846  ;;  %2872 = vpow2.f32 %v1557_v0  ;;  %v498_v25 = vsub.f32 %v5063_v22, %v424_v12  ;;  %v499_v46 = vsub.f32 %v5064_v42, %v424_v12 }
 0x119   : > { %5062 = vst [vmem:[#allocation33_spill] sm:$0xff] %v4232_v11  ;;  %v500_v3 = vsub.f32 %v5065_v32, %v427_v53  ;;  %v4237_v40 = vpop.eup %2848  ;;  %2874 = vpow2.f32 %v1559_v34  ;;  %696 = vadd.xlane.f32.xlu1 %v695_v17  ;;  %1656 = vadd.xlane.f32.xlu0 %v1655_v13  ;;  %v501_v18 = vsub.f32 %v5067_v48, %v427_v53  ;;  %v5071_v53 = vld [vmem:[#allocation46_spill] sm:$0xff]  ;;  %v5072_v48 = vld [vmem:[#allocation47_spill] sm:$0xff] }
 0x11a   : > { %5066 = vst [vmem:[#allocation34_spill] sm:$0xff] %v4237_v40  ;;  %v1658_v61 = vadd.f32 %v4232_v11, %v4228_v24  ;;  %v4242_v27 = vpop.eup %2850  ;;  %2876 = vpow2.f32 %v1561_v58  ;;  %v602_v0 = vmul.f32 1.442695, %v498_v25  ;;  %v604_v44 = vmul.f32 1.442695, %v499_v46  ;;  %v5073_v58 = vld [vmem:[#allocation48_spill] sm:$0xff] }
 0x11b   : > { %5068 = vst [vmem:[#allocation35_spill] sm:$0xff] %v4242_v27  ;;  %v606_v22 = vmul.f32 1.442695, %v500_v3  ;;  %v4244_v60 = vpop.eup %2852  ;;  %2878 = vpow2.f32 %v1563_v35  ;;  %v608_v12 = vmul.f32 1.442695, %v501_v18  ;;  %v1387_v42 = vpop.xlane.xlu0 %1386  ;;  %v698_v34 = vadd.f32 %v4242_v27, %v4237_v40  ;;  %v5075_v35 = vld [vmem:[#allocation49_spill] sm:$0xff] }
 0x11c   : > { %5069 = vst [vmem:[#allocation36_spill] sm:$0xff] %v4244_v60  ;;  %v1390_v17 = vpop.xlane.xlu1 %1389  ;;  %v4248_v13 = vpop.eup %2854  ;;  %2880 = vpow2.f32 %v602_v0  ;;  %v1461_v32 = vsub.f32 %v5071_v53, %v1387_v42  ;;  %v1462_v24 = vsub.f32 %v5072_v48, %v1387_v42 }
 0x11d   : > { %5070 = vst [vmem:[#allocation37_spill] sm:$0xff] %v4248_v13  ;;  %v1463_v25 = vsub.f32 %v5073_v58, %v1390_v17  ;;  %v4253_v46 = vpop.eup %2856  ;;  %2882 = vpow2.f32 %v604_v44  ;;  %1659 = vadd.xlane.f32.xlu1 %v1658_v61  ;;  %699 = vadd.xlane.f32.xlu0 %v698_v34  ;;  %v1464_v3 = vsub.f32 %v5075_v35, %v1390_v17  ;;  %v5079_v17 = vld [vmem:[#allocation50_spill] sm:$0xff]  ;;  %v5080_v35 = vld [vmem:[#allocation51_spill] sm:$0xff] }
 0x11e   : > { %5074 = vst [vmem:[#allocation38_spill] sm:$0xff] %v4253_v46  ;;  %v701_v18 = vadd.f32 %v4248_v13, %v4244_v60  ;;  %v4258_v40 = vpop.eup %2858  ;;  %2884 = vpow2.f32 %v606_v22  ;;  %v1565_v0 = vmul.f32 1.442695, %v1461_v32  ;;  %v1567_v27 = vmul.f32 1.442695, %v1462_v24  ;;  %v5081_v22 = vld [vmem:[#allocation52_spill] sm:$0xff] }
 0x11f   : > { %5076 = vst [vmem:[#allocation39_spill] sm:$0xff] %v4258_v40  ;;  %v1569_v53 = vmul.f32 1.442695, %v1463_v25  ;;  %v4260_v11 = vpop.eup %2860  ;;  %2886 = vpow2.f32 %v608_v12  ;;  %v1571_v42 = vmul.f32 1.442695, %v1464_v3  ;;  %v430_v48 = vpop.xlane.xlu0 %429  ;;  %v1661_v44 = vadd.f32 %v4258_v40, %v4253_v46  ;;  %v5083_v12 = vld [vmem:[#allocation53_spill] sm:$0xff] }
 0x120   : > { %5077 = vst [vmem:[#allocation40_spill] sm:$0xff] %v4260_v11  ;;  %v433_v61 = vpop.xlane.xlu1 %432  ;;  %v4264_v34 = vpop.eup %2862  ;;  %2888 = vpow2.f32 %v1565_v0  ;;  %v502_v58 = vsub.f32 %v5079_v17, %v430_v48  ;;  %v503_v60 = vsub.f32 %v5080_v35, %v430_v48 }
 0x121   : > { %5078 = vst [vmem:[#allocation41_spill] sm:$0xff] %v4264_v34  ;;  %v504_v32 = vsub.f32 %v5081_v22, %v433_v61  ;;  %v4269_v24 = vpop.eup %2864  ;;  %2890 = vpow2.f32 %v1567_v27  ;;  %702 = vadd.xlane.f32.xlu1 %v701_v18  ;;  %1662 = vadd.xlane.f32.xlu0 %v1661_v44  ;;  %v505_v25 = vsub.f32 %v5083_v12, %v433_v61  ;;  %v5087_v61 = vld [vmem:[#allocation54_spill] sm:$0xff]  ;;  %v5088_v12 = vld [vmem:[#allocation55_spill] sm:$0xff] }
 0x122   : > { %5082 = vst [vmem:[#allocation42_spill] sm:$0xff] %v4269_v24  ;;  %v1664_v3 = vadd.f32 %v4264_v34, %v4260_v11  ;;  %v4274_v46 = vpop.eup %2866  ;;  %2892 = vpow2.f32 %v1569_v53  ;;  %v610_v0 = vmul.f32 1.442695, %v502_v58  ;;  %v612_v40 = vmul.f32 1.442695, %v503_v60  ;;  %v5089_v53 = vld [vmem:[#allocation56_spill] sm:$0xff] }
 0x123   : > { %5084 = vst [vmem:[#allocation43_spill] sm:$0xff] %v4274_v46  ;;  %v614_v17 = vmul.f32 1.442695, %v504_v32  ;;  %v4276_v13 = vpop.eup %2868  ;;  %2894 = vpow2.f32 %v1571_v42  ;;  %v616_v48 = vmul.f32 1.442695, %v505_v25  ;;  %v1393_v35 = vpop.xlane.xlu0 %1392  ;;  %v704_v27 = vadd.f32 %v4274_v46, %v4269_v24  ;;  %v5091_v42 = vld [vmem:[#allocation57_spill] sm:$0xff] }
 0x124   : > { %5085 = vst [vmem:[#allocation44_spill] sm:$0xff] %v4276_v13  ;;  %v1396_v18 = vpop.xlane.xlu1 %1395  ;;  %v4280_v44 = vpop.eup %2870  ;;  %2896 = vpow2.f32 %v610_v0  ;;  %v1465_v22 = vsub.f32 %v5087_v61, %v1393_v35  ;;  %v1466_v11 = vsub.f32 %v5088_v12, %v1393_v35 }
 0x125   : > { %5086 = vst [vmem:[#allocation45_spill] sm:$0xff] %v4280_v44  ;;  %v1467_v58 = vsub.f32 %v5089_v53, %v1396_v18  ;;  %v4285_v60 = vpop.eup %2872  ;;  %2898 = vpow2.f32 %v612_v40  ;;  %1665 = vadd.xlane.f32.xlu1 %v1664_v3  ;;  %705 = vadd.xlane.f32.xlu0 %v704_v27  ;;  %v1468_v32 = vsub.f32 %v5091_v42, %v1396_v18  ;;  %v5095_v18 = vld [vmem:[#allocation58_spill] sm:$0xff]  ;;  %v5096_v42 = vld [vmem:[#allocation59_spill] sm:$0xff] }
 0x126   : > { %5090 = vst [vmem:[#allocation46_spill] sm:$0xff] %v4285_v60  ;;  %v707_v25 = vadd.f32 %v4280_v44, %v4276_v13  ;;  %v4290_v24 = vpop.eup %2874  ;;  %2900 = vpow2.f32 %v614_v17  ;;  %v1573_v0 = vmul.f32 1.442695, %v1465_v22  ;;  %v1575_v46 = vmul.f32 1.442695, %v1466_v11  ;;  %v5097_v17 = vld [vmem:[#allocation60_spill] sm:$0xff] }
 0x127   : > { %5092 = vst [vmem:[#allocation47_spill] sm:$0xff] %v4290_v24  ;;  %v1577_v61 = vmul.f32 1.442695, %v1467_v58  ;;  %v4292_v34 = vpop.eup %2876  ;;  %2902 = vpow2.f32 %v616_v48  ;;  %v1579_v35 = vmul.f32 1.442695, %v1468_v32  ;;  %v436_v12 = vpop.xlane.xlu0 %435  ;;  %v1667_v40 = vadd.f32 %v4290_v24, %v4285_v60  ;;  %v5099_v48 = vld [vmem:[#allocation61_spill] sm:$0xff] }
 0x128   : > { %5093 = vst [vmem:[#allocation48_spill] sm:$0xff] %v4292_v34  ;;  %v439_v3 = vpop.xlane.xlu1 %438  ;;  %v4296_v27 = vpop.eup %2878  ;;  %2904 = vpow2.f32 %v1573_v0  ;;  %v506_v53 = vsub.f32 %v5095_v18, %v436_v12  ;;  %v507_v13 = vsub.f32 %v5096_v42, %v436_v12 }
 0x129   : > { %5094 = vst [vmem:[#allocation49_spill] sm:$0xff] %v4296_v27  ;;  %v508_v22 = vsub.f32 %v5097_v17, %v439_v3  ;;  %v4301_v11 = vpop.eup %2880  ;;  %2906 = vpow2.f32 %v1575_v46  ;;  %708 = vadd.xlane.f32.xlu1 %v707_v25  ;;  %1668 = vadd.xlane.f32.xlu0 %v1667_v40  ;;  %v509_v58 = vsub.f32 %v5099_v48, %v439_v3  ;;  %v5103_v3 = vld [vmem:[#allocation62_spill] sm:$0xff]  ;;  %v5104_v48 = vld [vmem:[#allocation63_spill] sm:$0xff] }
 0x12a   : > { %5098 = vst [vmem:[#allocation50_spill] sm:$0xff] %v4301_v11  ;;  %v1670_v32 = vadd.f32 %v4296_v27, %v4292_v34  ;;  %v4306_v60 = vpop.eup %2882  ;;  %2908 = vpow2.f32 %v1577_v61  ;;  %v618_v0 = vmul.f32 1.442695, %v506_v53  ;;  %v620_v24 = vmul.f32 1.442695, %v507_v13  ;;  %v5105_v61 = vld [vmem:[#allocation64_spill] sm:$0xff] }
 0x12b   : > { %5100 = vst [vmem:[#allocation51_spill] sm:$0xff] %v4306_v60  ;;  %v622_v18 = vmul.f32 1.442695, %v508_v22  ;;  %v4308_v44 = vpop.eup %2884  ;;  %2910 = vpow2.f32 %v1579_v35  ;;  %v624_v12 = vmul.f32 1.442695, %v509_v58  ;;  %v1399_v42 = vpop.xlane.xlu0 %1398  ;;  %v710_v46 = vadd.f32 %v4306_v60, %v4301_v11  ;;  %v5107_v35 = vld [vmem:[#allocation65_spill] sm:$0xff] }
 0x12c   : > { %5101 = vst [vmem:[#allocation52_spill] sm:$0xff] %v4308_v44  ;;  %v1402_v25 = vpop.xlane.xlu1 %1401  ;;  %v4312_v40 = vpop.eup %2886  ;;  %2912 = vpow2.f32 %v618_v0  ;;  %v1469_v17 = vsub.f32 %v5103_v3, %v1399_v42  ;;  %v1470_v34 = vsub.f32 %v5104_v48, %v1399_v42 }
 0x12d   : > { %5102 = vst [vmem:[#allocation53_spill] sm:$0xff] %v4312_v40  ;;  %v1471_v53 = vsub.f32 %v5105_v61, %v1402_v25  ;;  %v4317_v13 = vpop.eup %2888  ;;  %2914 = vpow2.f32 %v620_v24  ;;  %1671 = vadd.xlane.f32.xlu1 %v1670_v32  ;;  %711 = vadd.xlane.f32.xlu0 %v710_v46  ;;  %v1472_v22 = vsub.f32 %v5107_v35, %v1402_v25  ;;  %v5111_v25 = vld [vmem:[#allocation66_spill] sm:$0xff]  ;;  %v5112_v35 = vld [vmem:[#allocation67_spill] sm:$0xff] }
 0x12e   : > { %5106 = vst [vmem:[#allocation54_spill] sm:$0xff] %v4317_v13  ;;  %v713_v58 = vadd.f32 %v4312_v40, %v4308_v44  ;;  %v4322_v11 = vpop.eup %2890  ;;  %2916 = vpow2.f32 %v622_v18  ;;  %v1581_v0 = vmul.f32 1.442695, %v1469_v17  ;;  %v1583_v60 = vmul.f32 1.442695, %v1470_v34  ;;  %v5113_v18 = vld [vmem:[#allocation68_spill] sm:$0xff] }
 0x12f   : > { %5108 = vst [vmem:[#allocation55_spill] sm:$0xff] %v4322_v11  ;;  %v1585_v3 = vmul.f32 1.442695, %v1471_v53  ;;  %v4324_v27 = vpop.eup %2892  ;;  %2918 = vpow2.f32 %v624_v12  ;;  %v1587_v42 = vmul.f32 1.442695, %v1472_v22  ;;  %v442_v48 = vpop.xlane.xlu0 %441  ;;  %v1673_v24 = vadd.f32 %v4322_v11, %v4317_v13  ;;  %v5115_v12 = vld [vmem:[#allocation69_spill] sm:$0xff] }
 0x130   : > { %5109 = vst [vmem:[#allocation56_spill] sm:$0xff] %v4324_v27  ;;  %v445_v32 = vpop.xlane.xlu1 %444  ;;  %v4328_v46 = vpop.eup %2894  ;;  %2920 = vpow2.f32 %v1581_v0  ;;  %v510_v61 = vsub.f32 %v5111_v25, %v442_v48  ;;  %v511_v44 = vsub.f32 %v5112_v35, %v442_v48 }
 0x131   : > { %5110 = vst [vmem:[#allocation57_spill] sm:$0xff] %v4328_v46  ;;  %v512_v17 = vsub.f32 %v5113_v18, %v445_v32  ;;  %v4333_v34 = vpop.eup %2896  ;;  %2922 = vpow2.f32 %v1583_v60  ;;  %714 = vadd.xlane.f32.xlu1 %v713_v58  ;;  %1674 = vadd.xlane.f32.xlu0 %v1673_v24  ;;  %v513_v53 = vsub.f32 %v5115_v12, %v445_v32  ;;  %v5119_v32 = vld [vmem:[#allocation70_spill] sm:$0xff]  ;;  %v5120_v12 = vld [vmem:[#allocation71_spill] sm:$0xff] }
 0x132   : > { %5114 = vst [vmem:[#allocation58_spill] sm:$0xff] %v4333_v34  ;;  %v1676_v22 = vadd.f32 %v4328_v46, %v4324_v27  ;;  %v4338_v13 = vpop.eup %2898  ;;  %2924 = vpow2.f32 %v1585_v3  ;;  %v626_v0 = vmul.f32 1.442695, %v510_v61  ;;  %v628_v11 = vmul.f32 1.442695, %v511_v44  ;;  %v5121_v3 = vld [vmem:[#allocation72_spill] sm:$0xff] }
 0x133   : > { %5116 = vst [vmem:[#allocation59_spill] sm:$0xff] %v4338_v13  ;;  %v630_v25 = vmul.f32 1.442695, %v512_v17  ;;  %v4340_v40 = vpop.eup %2900  ;;  %2926 = vpow2.f32 %v1587_v42  ;;  %v632_v48 = vmul.f32 1.442695, %v513_v53  ;;  %v1405_v35 = vpop.xlane.xlu0 %1404  ;;  %v716_v60 = vadd.f32 %v4338_v13, %v4333_v34  ;;  %v5123_v42 = vld [vmem:[#allocation73_spill] sm:$0xff] }
 0x134   : > { %5117 = vst [vmem:[#allocation60_spill] sm:$0xff] %v4340_v40  ;;  %v1408_v58 = vpop.xlane.xlu1 %1407  ;;  %v4344_v24 = vpop.eup %2902  ;;  %2928 = vpow2.f32 %v626_v0  ;;  %v1473_v18 = vsub.f32 %v5119_v32, %v1405_v35  ;;  %v1474_v27 = vsub.f32 %v5120_v12, %v1405_v35 }
 0x135   : > { %5118 = vst [vmem:[#allocation61_spill] sm:$0xff] %v4344_v24  ;;  %v1475_v61 = vsub.f32 %v5121_v3, %v1408_v58  ;;  %v4349_v44 = vpop.eup %2904  ;;  %2930 = vpow2.f32 %v628_v11  ;;  %1677 = vadd.xlane.f32.xlu1 %v1676_v22  ;;  %717 = vadd.xlane.f32.xlu0 %v716_v60  ;;  %v1476_v17 = vsub.f32 %v5123_v42, %v1408_v58  ;;  %v5125_v58 = vld [vmem:[#allocation74_spill] sm:$0xff]  ;;  %v5126_v42 = vld [vmem:[#allocation75_spill] sm:$0xff] }
 0x136   : > { %5122 = vst [vmem:[#allocation62_spill] sm:$0xff] %v4349_v44  ;;  %v719_v53 = vadd.f32 %v4344_v24, %v4340_v40  ;;  %v4354_v34 = vpop.eup %2906  ;;  %2932 = vpow2.f32 %v630_v25  ;;  %v1589_v0 = vmul.f32 1.442695, %v1473_v18  ;;  %v1591_v13 = vmul.f32 1.442695, %v1474_v27  ;;  %v5127_v25 = vld [vmem:[#allocation76_spill] sm:$0xff] }
 0x137   : > { %5124 = vst [vmem:[#allocation63_spill] sm:$0xff] %v4354_v34  ;;  %v1593_v32 = vmul.f32 1.442695, %v1475_v61  ;;  %v4356_v46 = vpop.eup %2908  ;;  %2934 = vpow2.f32 %v632_v48  ;;  %v1595_v35 = vmul.f32 1.442695, %v1476_v17  ;;  %v448_v12 = vpop.xlane.xlu0 %447  ;;  %v1679_v11 = vadd.f32 %v4354_v34, %v4349_v44  ;;  %v5129_v48 = vld [vmem:[#allocation77_spill] sm:$0xff] }
 0x138   : > { %v451_v22 = vpop.xlane.xlu1 %450  ;;  %v4360_v60 = vpop.eup %2910  ;;  %2936 = vpow2.f32 %v1589_v0  ;;  %v514_v3 = vsub.f32 %v5125_v58, %v448_v12  ;;  %v515_v40 = vsub.f32 %v5126_v42, %v448_v12 }
 0x139   : > { %v516_v18 = vsub.f32 %v5127_v25, %v451_v22  ;;  %v4365_v27 = vpop.eup %2912  ;;  %2938 = vpow2.f32 %v1591_v13  ;;  %720 = vadd.xlane.f32.xlu1 %v719_v53  ;;  %1680 = vadd.xlane.f32.xlu0 %v1679_v11  ;;  %v517_v61 = vsub.f32 %v5129_v48, %v451_v22  ;;  %v1682_v17 = vadd.f32 %v4360_v60, %v4356_v46 }
 0x13a   : > { %5128 = vst [vmem:[#allocation64_spill] sm:$0xff] %v4365_v27  ;;  %v4370_v44 = vpop.eup %2914  ;;  %2940 = vpow2.f32 %v1593_v32  ;;  %v634_v0 = vmul.f32 1.442695, %v514_v3  ;;  %v636_v34 = vmul.f32 1.442695, %v515_v40 }
 0x13b   : > { %v638_v58 = vmul.f32 1.442695, %v516_v18  ;;  %v4372_v24 = vpop.eup %2916  ;;  %2942 = vpow2.f32 %v1595_v35  ;;  %v640_v12 = vmul.f32 1.442695, %v517_v61  ;;  %v1411_v42 = vpop.xlane.xlu0 %1410  ;;  %v722_v13 = vadd.f32 %v4370_v44, %v4365_v27  ;;  %v5131_v35 = vld [vmem:[#allocation78_spill] sm:$0xff] }
 0x13c   : > { %v1414_v53 = vpop.xlane.xlu1 %1413  ;;  %v4376_v11 = vpop.eup %2918  ;;  %2944 = vpow2.f32 %v634_v0  ;;  %v1477_v22 = vsub.f32 %v3865_v49, %v1411_v42  ;;  %v1478_v25 = vsub.f32 %v3868_v52, %v1411_v42 }
 0x13d   : > { %v1479_v32 = vsub.f32 %v3873_v5, %v1414_v53  ;;  %v4381_v40 = vpop.eup %2920  ;;  %2946 = vpow2.f32 %v636_v34  ;;  %1683 = vadd.xlane.f32.xlu1 %v1682_v17  ;;  %723 = vadd.xlane.f32.xlu0 %v722_v13  ;;  %v1480_v3 = vsub.f32 %v5131_v35, %v1414_v53  ;;  %v725_v18 = vadd.f32 %v4376_v11, %v4372_v24 }
 0x13e   : > { %5130 = vst [vmem:[#allocation65_spill] sm:$0xff] %v4381_v40  ;;  %v4386_v48 = vpop.eup %2922  ;;  %2948 = vpow2.f32 %v638_v58  ;;  %v1597_v61 = vmul.f32 1.442695, %v1477_v22  ;;  %v1599_v0 = vmul.f32 1.442695, %v1478_v25  ;;  %v5134_v58 = vld [vmem:[#allocation79_spill] sm:$0xff] }
 0x13f   : > { %5132 = vst [vmem:[#allocation66_spill] sm:$0xff] %v4386_v48  ;;  %v1601_v49 = vmul.f32 1.442695, %v1479_v32  ;;  %v4388_v27 = vpop.eup %2924  ;;  %2950 = vpow2.f32 %v640_v12  ;;  %v1603_v52 = vmul.f32 1.442695, %v1480_v3  ;;  %v454_v5 = vpop.xlane.xlu0 %453  ;;  %v1685_v34 = vadd.f32 %v4386_v48, %v4381_v40  ;;  %v5136_v12 = vld [vmem:[#allocation80_spill] sm:$0xff] }
 0x140   : > { %5133 = vst [vmem:[#allocation67_spill] sm:$0xff] %v4388_v27  ;;  %v457_v17 = vpop.xlane.xlu1 %456  ;;  %v4392_v42 = vpop.eup %2926  ;;  %2952 = vpow2.f32 %v1597_v61  ;;  %v518_v13 = vsub.f32 %v3883_v38, %v454_v5  ;;  %v519_v53 = vsub.f32 %v3886_v10, %v454_v5 }
 0x141   : > { %v520_v22 = vsub.f32 %v5134_v58, %v457_v17  ;;  %v4397_v25 = vpop.eup %2928  ;;  %2954 = vpow2.f32 %v1599_v0  ;;  %726 = vadd.xlane.f32.xlu1 %v725_v18  ;;  %1686 = vadd.xlane.f32.xlu0 %v1685_v34  ;;  %v521_v32 = vsub.f32 %v5136_v12, %v457_v17  ;;  %v1688_v35 = vadd.f32 %v4392_v42, %v4388_v27  ;;  %v5138_v17 = vld [vmem:[#allocation81_spill] sm:$0xff]  ;;  %v5139_v12 = vld [vmem:[#allocation82_spill] sm:$0xff] }
 0x142   : > { %5135 = vst [vmem:[#allocation68_spill] sm:$0xff] %v4397_v25  ;;  %v4402_v3 = vpop.eup %2930  ;;  %2956 = vpow2.f32 %v1601_v49  ;;  %v642_v61 = vmul.f32 1.442695, %v518_v13  ;;  %v644_v40 = vmul.f32 1.442695, %v519_v53 }
 0x143   : > { %5137 = vst [vmem:[#allocation69_spill] sm:$0xff] %v4402_v3  ;;  %v646_v38 = vmul.f32 1.442695, %v520_v22  ;;  %v4404_v48 = vpop.eup %2932  ;;  %2958 = vpow2.f32 %v1603_v52  ;;  %v648_v10 = vmul.f32 1.442695, %v521_v32  ;;  %v1417_v5 = vpop.xlane.xlu0 %1416  ;;  %v728_v18 = vadd.f32 %v4402_v3, %v4397_v25  ;;  %v5140_v52 = vld [vmem:[#allocation83_spill] sm:$0xff] }
 0x144   : > { %v1420_v0 = vpop.xlane.xlu1 %1419  ;;  %v4408_v34 = vpop.eup %2934  ;;  %2960 = vpow2.f32 %v642_v61  ;;  %v1481_v58 = vsub.f32 %v5138_v17, %v1417_v5  ;;  %v1482_v27 = vsub.f32 %v5139_v12, %v1417_v5 }
 0x145   : > { %v1483_v49 = vsub.f32 %v3913_v63, %v1420_v0  ;;  %v4413_v13 = vpop.eup %2936  ;;  %2962 = vpow2.f32 %v644_v40  ;;  %1689 = vadd.xlane.f32.xlu1 %v1688_v35  ;;  %729 = vadd.xlane.f32.xlu0 %v728_v18  ;;  %v1484_v53 = vsub.f32 %v5140_v52, %v1420_v0  ;;  %v731_v22 = vadd.f32 %v4408_v34, %v4404_v48 }
 0x146   : > { %v4418_v32 = vpop.eup %2938  ;;  %2964 = vpow2.f32 %v646_v38  ;;  %v1605_v61 = vmul.f32 1.442695, %v1481_v58  ;;  %v1607_v25 = vmul.f32 1.442695, %v1482_v27 }
 0x147   : > { %v1609_v17 = vmul.f32 1.442695, %v1483_v49  ;;  %v4420_v3 = vpop.eup %2940  ;;  %2966 = vpow2.f32 %v648_v10  ;;  %v1611_v63 = vmul.f32 1.442695, %v1484_v53  ;;  %v1691_v40 = vadd.f32 %v4418_v32, %v4413_v13 }
 0x148   : > { %v4424_v35 = vpop.eup %2942  ;;  %2968 = vpow2.f32 %v1605_v61 }
 0x149   : > { %v4426_v5 = vpop.eup %2944  ;;  %2970 = vpow2.f32 %v1607_v25  ;;  %732 = vadd.xlane.f32.xlu1 %v731_v22  ;;  %1692 = vadd.xlane.f32.xlu0 %v1691_v40  ;;  %v1694_v38 = vadd.f32 %v4424_v35, %v4420_v3 }
 0x14a   : > { %5141 = vst [vmem:[#allocation70_spill] sm:$0xff] %v4426_v5  ;;  %v4430_v27 = vpop.eup %2946  ;;  %2972 = vpow2.f32 %v1609_v17 }
 0x14b   : > { %v4432_v18 = vpop.eup %2948  ;;  %2974 = vpow2.f32 %v1611_v63  ;;  %v734_v10 = vadd.f32 %v4430_v27, %v4426_v5 }
 0x14c   : > { %5142 = vst [vmem:[#allocation71_spill] sm:$0xff] %v4432_v18  ;;  %v4436_v0 = vpop.eup %2950 }
 0x14d   : > { %v4438_v58 = vpop.eup %2952  ;;  %1695 = vadd.xlane.f32.xlu1 %v1694_v38  ;;  %735 = vadd.xlane.f32.xlu0 %v734_v10  ;;  %v737_v25 = vadd.f32 %v4436_v0, %v4432_v18 }
 0x14e   : > { %5143 = vst [vmem:[#allocation72_spill] sm:$0xff] %v4438_v58  ;;  %v4442_v12 = vpop.eup %2954 }
 0x14f   : > { %5144 = vst [vmem:[#allocation73_spill] sm:$0xff] %v4442_v12  ;;  %v4444_v49 = vpop.eup %2956  ;;  %v1697_v52 = vadd.f32 %v4442_v12, %v4438_v58 }
 0x150   : > { %5145 = vst [vmem:[#allocation74_spill] sm:$0xff] %v4444_v49  ;;  %v4448_v53 = vpop.eup %2958 }
 0x151   : > { %5146 = vst [vmem:[#allocation75_spill] sm:$0xff] %v4448_v53  ;;  %v4450_v22 = vpop.eup %2960  ;;  %738 = vadd.xlane.f32.xlu1 %v737_v25  ;;  %1698 = vadd.xlane.f32.xlu0 %v1697_v52  ;;  %v1700_v61 = vadd.f32 %v4448_v53, %v4444_v49 }
 0x152   : > { %5147 = vst [vmem:[#allocation76_spill] sm:$0xff] %v4450_v22  ;;  %v4454_v17 = vpop.eup %2962 }
 0x153   : > { %5148 = vst [vmem:[#allocation77_spill] sm:$0xff] %v4454_v17  ;;  %v4456_v63 = vpop.eup %2964  ;;  %v740_v40 = vadd.f32 %v4454_v17, %v4450_v22 }
 0x154   : > { %5149 = vst [vmem:[#allocation78_spill] sm:$0xff] %v4456_v63  ;;  %v4460_v38 = vpop.eup %2966 }
 0x155   : > { %5150 = vst [vmem:[#allocation79_spill] sm:$0xff] %v4460_v38  ;;  %v4462_v10 = vpop.eup %2968  ;;  %1701 = vadd.xlane.f32.xlu1 %v1700_v61  ;;  %741 = vadd.xlane.f32.xlu0 %v740_v40  ;;  %v743_v25 = vadd.f32 %v4460_v38, %v4456_v63 }
 0x156   : > { %5151 = vst [vmem:[#allocation80_spill] sm:$0xff] %v4462_v10  ;;  %v4466_v52 = vpop.eup %2970 }
 0x157   : > { %5152 = vst [vmem:[#allocation81_spill] sm:$0xff] %v4466_v52  ;;  %v4468_v58 = vpop.eup %2972  ;;  %v1703_v49 = vadd.f32 %v4466_v52, %v4462_v10 }
 0x158   : > { %5153 = vst [vmem:[#allocation82_spill] sm:$0xff] %v4468_v58  ;;  %v4472_v53 = vpop.eup %2974 }
 0x159   : > { %5154 = vst [vmem:[#allocation83_spill] sm:$0xff] %v4472_v53  ;;  %744 = vadd.xlane.f32.xlu1 %v743_v25  ;;  %1704 = vadd.xlane.f32.xlu0 %v1703_v49  ;;  %v1706_v22 = vadd.f32 %v4472_v53, %v4468_v58 }
 0x15d   : > { %1707 = vadd.xlane.f32.xlu1 %v1706_v22 }
 0x166   : > { %v652_v61 = vpop.xlane.xlu0 %651 }
 0x167   : > { %2976 = vrcp.f32 %v652_v61 }
 0x16a   : > { %v655_v40 = vpop.xlane.xlu1 %654  ;;  %v1615_v17 = vpop.xlane.xlu0 %1614 }
 0x16b   : > { %2978 = vrcp.f32 %v655_v40 }
 0x16c   : > { %2980 = vrcp.f32 %v1615_v17 }
 0x16e   : > { %v1618_v63 = vpop.xlane.xlu1 %1617  ;;  %v658_v38 = vpop.xlane.xlu0 %657 }
 0x16f   : > { %2982 = vrcp.f32 %v1618_v63 }
 0x170   : > { %2984 = vrcp.f32 %v658_v38 }
 0x172   : > { %v661_v12 = vpop.xlane.xlu1 %660  ;;  %v1621_v10 = vpop.xlane.xlu0 %1620 }
 0x173   : > { %2986 = vrcp.f32 %v661_v12 }
 0x174   : > { %2988 = vrcp.f32 %v1621_v10  ;;  %v2977_v25 = vpop.eup %2976 }
 0x175   : > { %v779_v22 = vmul.f32 %v2977_v25, %v3948_v16  ;;  %v778_v17 = vmul.f32 %v2977_v25, %v3943_v15 }
 0x176   : > { %v1624_v49 = vpop.xlane.xlu1 %1623  ;;  %v664_v52 = vpop.xlane.xlu0 %663 }
 0x177   : > { %2990 = vrcp.f32 %v1624_v49 }
 0x178   : > { %v2979_v58 = vpop.eup %2978  ;;  %2992 = vrcp.f32 %v664_v52 }
 0x179   : > { %v2981_v61 = vpop.eup %2980  ;;  %v781_v40 = vmul.f32 %v2979_v58, %v3971_v36  ;;  %v780_v63 = vmul.f32 %v2979_v58, %v3965_v23 }
 0x17a   : > { %v667_v38 = vpop.xlane.xlu1 %666  ;;  %v1627_v53 = vpop.xlane.xlu0 %1626  ;;  %v1742_v5 = vmul.f32 %v2981_v61, %v3955_v54  ;;  %v1741_v52 = vmul.f32 %v2981_v61, %v3950_v55 }
 0x17b   : > { %2994 = vrcp.f32 %v667_v38  ;;  %v843_v12 = vpack.c.bf16 %v781_v40, %v779_v22  ;;  %v842_v10 = vpack.c.bf16 %v780_v63, %v778_v17 }
 0x17c   : > { %v2983_v18 = vpop.eup %2982  ;;  %2996 = vrcp.f32 %v1627_v53 }
 0x17d   : > { %v2985_v49 = vpop.eup %2984  ;;  %1034 = vmatprep.mubr.bf16.mxu0 %v843_v12  ;;  %v1744_v16 = vmul.f32 %v2983_v18, %v3977_v31  ;;  %v1743_v36 = vmul.f32 %v2983_v18, %v3973_v37 }
 0x17e   : > { %v1630_v15 = vpop.xlane.xlu1 %1629  ;;  %1035 = vmatmul.mubr.bf16.vlgmr.msra.gmra.mxu0 %v842_v10  ;;  %v670_v23 = vpop.xlane.xlu0 %669  ;;  %v783_v40 = vmul.f32 %v2985_v49, %v3989_v41  ;;  %v782_v31 = vmul.f32 %v2985_v49, %v3983_v57 }
 0x17f   : > { %2998 = vrcp.f32 %v1630_v15  ;;  %v1806_v58 = vpack.c.bf16 %v1744_v16, %v1742_v5  ;;  %v1805_v25 = vpack.c.bf16 %v1743_v36, %v1741_v52 }
 0x180   : > { %v2987_v22 = vpop.eup %2986  ;;  %3000 = vrcp.f32 %v670_v23 }
 0x181   : > { %v2989_v17 = vpop.eup %2988  ;;  %1998 = vmatprep.mubr.bf16.mxu1 %v1806_v58  ;;  %v785_v54 = vmul.f32 %v2987_v22, %v3997_v51  ;;  %v784_v55 = vmul.f32 %v2987_v22, %v3991_v43 }
 0x182   : > { %v673_v53 = vpop.xlane.xlu1 %672  ;;  %1999 = vmatmul.mubr.bf16.vlgmr.msra.gmra.mxu1 %v1805_v25  ;;  %v1633_v37 = vpop.xlane.xlu0 %1632  ;;  %v1746_v63 = vmul.f32 %v2989_v17, %v4008_v59  ;;  %v1745_v38 = vmul.f32 %v2989_v17, %v4002_v21 }
 0x183   : > { %3002 = vrcp.f32 %v673_v53  ;;  %v845_v18 = vpack.c.bf16 %v785_v54, %v783_v40  ;;  %v844_v61 = vpack.c.bf16 %v784_v55, %v782_v31 }
 0x184   : > { %v2991_v5 = vpop.eup %2990  ;;  %3004 = vrcp.f32 %v1633_v37 }
 0x185   : > { %1042 = vmatprep.mubr.bf16.mxu0 %v845_v18  ;;  %v1748_v41 = vmul.f32 %v2991_v5, %v4016_v30  ;;  %v1747_v51 = vmul.f32 %v2991_v5, %v4010_v29  ;;  %v2993_v57 = vpop.eup %2992 }
 0x186   : > { %v1636_v12 = vpop.xlane.xlu1 %1635  ;;  %1043 = vmatmul.mubr.bf16.gmra.mxu0 %v844_v61  ;;  %v676_v43 = vpop.xlane.xlu0 %675  ;;  %v787_v59 = vmul.f32 %v2993_v57, %v4027_v6  ;;  %v786_v30 = vmul.f32 %v2993_v57, %v4021_v39 }
 0x187   : > { %3006 = vrcp.f32 %v1636_v12  ;;  %v1808_v10 = vpack.c.bf16 %v1748_v41, %v1746_v63  ;;  %v1807_v49 = vpack.c.bf16 %v1747_v51, %v1745_v38 }
 0x188   : > { %v2995_v16 = vpop.eup %2994  ;;  %3008 = vrcp.f32 %v676_v43 }
 0x189   : > { %2006 = vmatprep.mubr.bf16.mxu1 %v1808_v10  ;;  %v789_v52 = vmul.f32 %v2995_v16, %v4035_v4  ;;  %v788_v21 = vmul.f32 %v2995_v16, %v4029_v47  ;;  %v2997_v36 = vpop.eup %2996  ;;  %v5155_v16 = vld [vmem:[#allocation5_spill] sm:$0xff] }
 0x18a   : > { %v679_v29 = vpop.xlane.xlu1 %678  ;;  %2007 = vmatmul.mubr.bf16.gmra.mxu1 %v1807_v49  ;;  %v1639_v15 = vpop.xlane.xlu0 %1638  ;;  %v1750_v22 = vmul.f32 %v2997_v36, %v4046_v26  ;;  %v1749_v4 = vmul.f32 %v2997_v36, %v4040_v7 }
 0x18b   : > { %3010 = vrcp.f32 %v679_v29  ;;  %v847_v23 = vpack.c.bf16 %v789_v52, %v787_v59  ;;  %v846_v58 = vpack.c.bf16 %v788_v21, %v786_v30  ;;  %v5156_v59 = vld [vmem:[#allocation6_spill] sm:$0xff]  ;;  %v5157_v29 = vld [vmem:[#allocation8_spill] sm:$0xff] }
 0x18c   : > { %v2999_v25 = vpop.eup %2998  ;;  %3012 = vrcp.f32 %v1639_v15 }
 0x18d   : > { %1050 = vmatprep.mubr.bf16.mxu0 %v847_v23  ;;  %v1752_v6 = vmul.f32 %v2999_v25, %v4054_v8  ;;  %v1751_v39 = vmul.f32 %v2999_v25, %v4048_v1  ;;  %v3001_v40 = vpop.eup %3000  ;;  %v5159_v25 = vld [vmem:[#allocation7_spill] sm:$0xff] }
 0x18e   : > { %v1642_v47 = vpop.xlane.xlu1 %1641  ;;  %1051 = vmatmul.mubr.bf16.gmra.mxu0 %v846_v58  ;;  %v682_v17 = vpop.xlane.xlu0 %681  ;;  %v791_v53 = vmul.f32 %v3001_v40, %v4065_v45  ;;  %v790_v8 = vmul.f32 %v3001_v40, %v4059_v28 }
 0x18f   : > { %3014 = vrcp.f32 %v1642_v47  ;;  %v1810_v54 = vpack.c.bf16 %v1752_v6, %v1750_v22  ;;  %v1809_v31 = vpack.c.bf16 %v1751_v39, %v1749_v4  ;;  %v5160_v22 = vld [vmem:[#allocation9_spill] sm:$0xff] }
 0x190   : > { %v3003_v55 = vpop.eup %3002  ;;  %3016 = vrcp.f32 %v682_v17 }
 0x191   : > { %2014 = vmatprep.mubr.bf16.mxu1 %v1810_v54  ;;  %v793_v26 = vmul.f32 %v3003_v55, %v4073_v50  ;;  %v792_v7 = vmul.f32 %v3003_v55, %v4067_v19  ;;  %v3005_v37 = vpop.eup %3004  ;;  %v5161_v54 = vld [vmem:[#allocation12_spill] sm:$0xff] }
 0x192   : > { %v685_v1 = vpop.xlane.xlu1 %684  ;;  %2015 = vmatmul.mubr.bf16.gmra.mxu1 %v1809_v31  ;;  %v1645_v18 = vpop.xlane.xlu0 %1644  ;;  %v1754_v38 = vmul.f32 %v3005_v37, %v4084_v20  ;;  %v1753_v50 = vmul.f32 %v3005_v37, %v4078_v62  ;;  %v5164_v37 = vld [vmem:[#allocation13_spill] sm:$0xff] }
 0x193   : > { %3018 = vrcp.f32 %v685_v1  ;;  %v849_v61 = vpack.c.bf16 %v793_v26, %v791_v53  ;;  %v848_v5 = vpack.c.bf16 %v792_v7, %v790_v8  ;;  %v5162_v53 = vld [vmem:[#allocation14_spill] sm:$0xff]  ;;  %v5163_v8 = vld [vmem:[#allocation11_spill] sm:$0xff] }
 0x194   : > { %v3007_v63 = vpop.eup %3006  ;;  %3020 = vrcp.f32 %v1645_v18 }
 0x195   : > { %v3009_v41 = vpop.eup %3008  ;;  %1058 = vmatprep.mubr.bf16.mxu0 %v849_v61  ;;  %v1756_v45 = vmul.f32 %v3007_v63, %v4092_v14  ;;  %v1755_v28 = vmul.f32 %v3007_v63, %v4086_v33 }
 0x196   : > { %v1648_v19 = vpop.xlane.xlu1 %1647  ;;  %1059 = vmatmul.mubr.bf16.gmra.mxu0 %v848_v5  ;;  %v688_v51 = vpop.xlane.xlu0 %687  ;;  %v795_v10 = vmul.f32 %v3009_v41, %v4103_v56  ;;  %v794_v14 = vmul.f32 %v3009_v41, %v5155_v16  ;;  %v5158_v56 = vld [vmem:[#allocation10_spill] sm:$0xff] }
 0x197   : > { %3022 = vrcp.f32 %v1648_v19  ;;  %v1812_v57 = vpack.c.bf16 %v1756_v45, %v1754_v38  ;;  %v1811_v12 = vpack.c.bf16 %v1755_v28, %v1753_v50  ;;  %v5165_v38 = vld [vmem:[#allocation16_spill] sm:$0xff]  ;;  %v5166_v28 = vld [vmem:[#allocation15_spill] sm:$0xff] }
 0x198   : > { %v3011_v43 = vpop.eup %3010  ;;  %3024 = vrcp.f32 %v688_v51  ;;  %v5167_v51 = vld [vmem:[#allocation17_spill] sm:$0xff] }
 0x199   : > { %v3013_v49 = vpop.eup %3012  ;;  %2022 = vmatprep.mubr.bf16.mxu1 %v1812_v57  ;;  %v797_v20 = vmul.f32 %v3011_v43, %v4111_v9  ;;  %v796_v62 = vmul.f32 %v3011_v43, %v5156_v59 }
 0x19a   : > { %v691_v52 = vpop.xlane.xlu1 %690  ;;  %2023 = vmatmul.mubr.bf16.gmra.mxu1 %v1811_v12  ;;  %v1651_v33 = vpop.xlane.xlu0 %1650  ;;  %v1758_v15 = vmul.f32 %v3013_v49, %v5157_v29  ;;  %v1757_v9 = vmul.f32 %v3013_v49, %v5159_v25  ;;  %v5172_v25 = vld [vmem:[#allocation23_spill] sm:$0xff] }
 0x19b   : > { %3026 = vrcp.f32 %v691_v52  ;;  %v851_v30 = vpack.c.bf16 %v797_v20, %v795_v10  ;;  %v850_v21 = vpack.c.bf16 %v796_v62, %v794_v14  ;;  %v5168_v14 = vld [vmem:[#allocation19_spill] sm:$0xff]  ;;  %v5169_v62 = vld [vmem:[#allocation21_spill] sm:$0xff] }
 0x19c   : > { %v3015_v36 = vpop.eup %3014  ;;  %3028 = vrcp.f32 %v1651_v33  ;;  %v5170_v33 = vld [vmem:[#allocation18_spill] sm:$0xff] }
 0x19d   : > { %v3017_v23 = vpop.eup %3016  ;;  %1066 = vmatprep.mubr.bf16.mxu0 %v851_v30  ;;  %v1760_v58 = vmul.f32 %v3015_v36, %v5158_v56  ;;  %v1759_v6 = vmul.f32 %v3015_v36, %v5160_v22  ;;  %v5171_v30 = vld [vmem:[#allocation20_spill] sm:$0xff]  ;;  %v5173_v22 = vld [vmem:[#allocation25_spill] sm:$0xff] }
 0x19e   : > { %v1654_v4 = vpop.xlane.xlu1 %1653  ;;  %1067 = vmatmul.mubr.bf16.gmra.mxu0 %v850_v21  ;;  %v694_v39 = vpop.xlane.xlu0 %693  ;;  %v799_v31 = vmul.f32 %v3017_v23, %v5161_v54  ;;  %v798_v7 = vmul.f32 %v3017_v23, %v5163_v8  ;;  %v5176_v8 = vld [vmem:[#allocation27_spill] sm:$0xff] }
 0x19f   : > { %3030 = vrcp.f32 %v1654_v4  ;;  %v1814_v40 = vpack.c.bf16 %v1760_v58, %v1758_v15  ;;  %v1813_v47 = vpack.c.bf16 %v1759_v6, %v1757_v9  ;;  %v5174_v4 = vld [vmem:[#allocation22_spill] sm:$0xff] }
 0x1a0   : > { %v3019_v17 = vpop.eup %3018  ;;  %3032 = vrcp.f32 %v694_v39 }
 0x1a1   : > { %v3021_v55 = vpop.eup %3020  ;;  %2030 = vmatprep.mubr.bf16.mxu1 %v1814_v40  ;;  %v801_v26 = vmul.f32 %v3019_v17, %v5162_v53  ;;  %v800_v1 = vmul.f32 %v3019_v17, %v5164_v37  ;;  %v5175_v40 = vld [vmem:[#allocation24_spill] sm:$0xff]  ;;  %v5177_v37 = vld [vmem:[#allocation29_spill] sm:$0xff] }
 0x1a2   : > { %v697_v18 = vpop.xlane.xlu1 %696  ;;  %2031 = vmatmul.mubr.bf16.gmra.mxu1 %v1813_v47  ;;  %v1657_v61 = vpop.xlane.xlu0 %1656  ;;  %v1762_v45 = vmul.f32 %v3021_v55, %v5165_v38  ;;  %v1761_v19 = vmul.f32 %v3021_v55, %v5166_v28 }
 0x1a3   : > { %3034 = vrcp.f32 %v697_v18  ;;  %v853_v5 = vpack.c.bf16 %v801_v26, %v799_v31  ;;  %v852_v63 = vpack.c.bf16 %v800_v1, %v798_v7  ;;  %v5178_v18 = vld [vmem:[#allocation26_spill] sm:$0xff] }
 0x1a4   : > { %v3023_v41 = vpop.eup %3022  ;;  %3036 = vrcp.f32 %v1657_v61 }
 0x1a5   : > { %1074 = vmatprep.mubr.bf16.mxu0 %v853_v5  ;;  %v1764_v50 = vmul.f32 %v3023_v41, %v4168_v2  ;;  %v1763_v57 = vmul.f32 %v3023_v41, %v5167_v51  ;;  %v3025_v12 = vpop.eup %3024  ;;  %v5179_v5 = vld [vmem:[#allocation28_spill] sm:$0xff] }
 0x1a6   : > { %v1660_v43 = vpop.xlane.xlu1 %1659  ;;  %1075 = vmatmul.mubr.bf16.gmra.mxu0 %v852_v63  ;;  %v700_v10 = vpop.xlane.xlu0 %699  ;;  %v803_v59 = vmul.f32 %v3025_v12, %v5168_v14  ;;  %v802_v2 = vmul.f32 %v3025_v12, %v5170_v33 }
 0x1a7   : > { %3038 = vrcp.f32 %v1660_v43  ;;  %v1816_v49 = vpack.c.bf16 %v1764_v50, %v1762_v45  ;;  %v1815_v20 = vpack.c.bf16 %v1763_v57, %v1761_v19  ;;  %v5180_v57 = vld [vmem:[#allocation31_spill] sm:$0xff]  ;;  %v5181_v43 = vld [vmem:[#allocation33_spill] sm:$0xff] }
 0x1a8   : > { %v3027_v16 = vpop.eup %3026  ;;  %3040 = vrcp.f32 %v700_v10 }
 0x1a9   : > { %2038 = vmatprep.mubr.bf16.mxu1 %v1816_v49  ;;  %v805_v52 = vmul.f32 %v3027_v16, %v5169_v62  ;;  %v804_v21 = vmul.f32 %v3027_v16, %v5171_v30  ;;  %v3029_v36 = vpop.eup %3028  ;;  %v5182_v49 = vld [vmem:[#allocation30_spill] sm:$0xff]  ;;  %v5183_v16 = vld [vmem:[#allocation32_spill] sm:$0xff]  ;;  %v5184_v30 = vld [vmem:[#allocation35_spill] sm:$0xff] }
 0x1aa   : > { %v703_v29 = vpop.xlane.xlu1 %702  ;;  %2039 = vmatmul.mubr.bf16.gmra.mxu1 %v1815_v20  ;;  %v1663_v15 = vpop.xlane.xlu0 %1662  ;;  %v1766_v9 = vmul.f32 %v3029_v36, %v5172_v25  ;;  %v1765_v39 = vmul.f32 %v3029_v36, %v5174_v4 }
 0x1ab   : > { %3042 = vrcp.f32 %v703_v29  ;;  %v855_v23 = vpack.c.bf16 %v805_v52, %v803_v59  ;;  %v854_v56 = vpack.c.bf16 %v804_v21, %v802_v2  ;;  %v5185_v29 = vld [vmem:[#allocation37_spill] sm:$0xff] }
 0x1ac   : > { %v3031_v58 = vpop.eup %3030  ;;  %3044 = vrcp.f32 %v1663_v15 }
 0x1ad   : > { %1082 = vmatprep.mubr.bf16.mxu0 %v855_v23  ;;  %v1768_v6 = vmul.f32 %v3031_v58, %v5173_v22  ;;  %v1767_v47 = vmul.f32 %v3031_v58, %v5175_v40  ;;  %v3033_v17 = vpop.eup %3032  ;;  %v5186_v23 = vld [vmem:[#allocation34_spill] sm:$0xff]  ;;  %v5187_v58 = vld [vmem:[#allocation36_spill] sm:$0xff]  ;;  %v5188_v40 = vld [vmem:[#allocation39_spill] sm:$0xff] }
 0x1ae   : > { %v1666_v54 = vpop.xlane.xlu1 %1665  ;;  %1083 = vmatmul.mubr.bf16.gmra.mxu0 %v854_v56  ;;  %v706_v31 = vpop.xlane.xlu0 %705  ;;  %v807_v7 = vmul.f32 %v3033_v17, %v5176_v8  ;;  %v806_v61 = vmul.f32 %v3033_v17, %v5178_v18 }
 0x1af   : > { %3046 = vrcp.f32 %v1666_v54  ;;  %v1818_v55 = vpack.c.bf16 %v1768_v6, %v1766_v9  ;;  %v1817_v53 = vpack.c.bf16 %v1767_v47, %v1765_v39  ;;  %v5189_v54 = vld [vmem:[#allocation41_spill] sm:$0xff] }
 0x1b0   : > { %v3035_v26 = vpop.eup %3034  ;;  %3048 = vrcp.f32 %v706_v31 }
 0x1b1   : > { %2046 = vmatprep.mubr.bf16.mxu1 %v1818_v55  ;;  %v809_v1 = vmul.f32 %v3035_v26, %v5177_v37  ;;  %v808_v63 = vmul.f32 %v3035_v26, %v5179_v5  ;;  %v3037_v41 = vpop.eup %3036  ;;  %v5190_v55 = vld [vmem:[#allocation38_spill] sm:$0xff]  ;;  %v5191_v26 = vld [vmem:[#allocation40_spill] sm:$0xff]  ;;  %v5192_v5 = vld [vmem:[#allocation43_spill] sm:$0xff] }
 0x1b2   : > { %v709_v38 = vpop.xlane.xlu1 %708  ;;  %2047 = vmatmul.mubr.bf16.gmra.mxu1 %v1817_v53  ;;  %v1669_v45 = vpop.xlane.xlu0 %1668  ;;  %v1770_v12 = vmul.f32 %v3037_v41, %v5180_v57  ;;  %v1769_v20 = vmul.f32 %v3037_v41, %v5182_v49 }
 0x1b3   : > { %3050 = vrcp.f32 %v709_v38  ;;  %v857_v50 = vpack.c.bf16 %v809_v1, %v807_v7  ;;  %v856_v28 = vpack.c.bf16 %v808_v63, %v806_v61  ;;  %v5193_v38 = vld [vmem:[#allocation45_spill] sm:$0xff] }
 0x1b4   : > { %v3039_v19 = vpop.eup %3038  ;;  %3052 = vrcp.f32 %v1669_v45 }
 0x1b5   : > { %v3041_v51 = vpop.eup %3040  ;;  %1090 = vmatprep.mubr.bf16.mxu0 %v857_v50  ;;  %v1772_v10 = vmul.f32 %v3039_v19, %v5181_v43  ;;  %v1771_v14 = vmul.f32 %v3039_v19, %v5183_v16  ;;  %v5194_v50 = vld [vmem:[#allocation42_spill] sm:$0xff]  ;;  %v5195_v19 = vld [vmem:[#allocation44_spill] sm:$0xff] }
 0x1b6   : > { %v1672_v59 = vpop.xlane.xlu1 %1671  ;;  %1091 = vmatmul.mubr.bf16.gmra.mxu0 %v856_v28  ;;  %v712_v62 = vpop.xlane.xlu0 %711  ;;  %v811_v21 = vmul.f32 %v3041_v51, %v5184_v30  ;;  %v810_v56 = vmul.f32 %v3041_v51, %v5186_v23 }
 0x1b7   : > { %3054 = vrcp.f32 %v1672_v59  ;;  %v1820_v52 = vpack.c.bf16 %v1772_v10, %v1770_v12  ;;  %v1819_v33 = vpack.c.bf16 %v1771_v14, %v1769_v20  ;;  %v5196_v20 = vld [vmem:[#allocation47_spill] sm:$0xff]  ;;  %v5197_v14 = vld [vmem:[#allocation49_spill] sm:$0xff] }
 0x1b8   : > { %v3043_v2 = vpop.eup %3042  ;;  %3056 = vrcp.f32 %v712_v62  ;;  %v5198_v62 = vld [vmem:[#allocation46_spill] sm:$0xff] }
 0x1b9   : > { %v3045_v36 = vpop.eup %3044  ;;  %2054 = vmatprep.mubr.bf16.mxu1 %v1820_v52  ;;  %v813_v15 = vmul.f32 %v3043_v2, %v5185_v29  ;;  %v812_v25 = vmul.f32 %v3043_v2, %v5187_v58 }
 0x1ba   : > { %v715_v9 = vpop.xlane.xlu1 %714  ;;  %2055 = vmatmul.mubr.bf16.gmra.mxu1 %v1819_v33  ;;  %v1675_v22 = vpop.xlane.xlu0 %1674  ;;  %v1774_v47 = vmul.f32 %v3045_v36, %v5188_v40  ;;  %v1773_v53 = vmul.f32 %v3045_v36, %v5190_v55  ;;  %v5199_v33 = vld [vmem:[#allocation48_spill] sm:$0xff] }
 0x1bb   : > { %3058 = vrcp.f32 %v715_v9  ;;  %v859_v6 = vpack.c.bf16 %v813_v15, %v811_v21  ;;  %v858_v4 = vpack.c.bf16 %v812_v25, %v810_v56  ;;  %v5200_v56 = vld [vmem:[#allocation51_spill] sm:$0xff]  ;;  %v5201_v25 = vld [vmem:[#allocation53_spill] sm:$0xff] }
 0x1bc   : > { %v3047_v39 = vpop.eup %3046  ;;  %3060 = vrcp.f32 %v1675_v22  ;;  %v5202_v22 = vld [vmem:[#allocation50_spill] sm:$0xff] }
 0x1bd   : > { %v3049_v17 = vpop.eup %3048  ;;  %1098 = vmatprep.mubr.bf16.mxu0 %v859_v6  ;;  %v1776_v31 = vmul.f32 %v3047_v39, %v5189_v54  ;;  %v1775_v8 = vmul.f32 %v3047_v39, %v5191_v26 }
 0x1be   : > { %v1678_v7 = vpop.xlane.xlu1 %1677  ;;  %1099 = vmatmul.mubr.bf16.gmra.mxu0 %v858_v4  ;;  %v718_v37 = vpop.xlane.xlu0 %717  ;;  %v815_v63 = vmul.f32 %v3049_v17, %v5192_v5  ;;  %v814_v28 = vmul.f32 %v3049_v17, %v5194_v50  ;;  %v5203_v4 = vld [vmem:[#allocation52_spill] sm:$0xff] }
 0x1bf   : > { %3062 = vrcp.f32 %v1678_v7  ;;  %v1822_v1 = vpack.c.bf16 %v1776_v31, %v1774_v47  ;;  %v1821_v18 = vpack.c.bf16 %v1775_v8, %v1773_v53  ;;  %v5204_v53 = vld [vmem:[#allocation55_spill] sm:$0xff]  ;;  %v5205_v8 = vld [vmem:[#allocation57_spill] sm:$0xff] }
 0x1c0   : > { %v3051_v61 = vpop.eup %3050  ;;  %3064 = vrcp.f32 %v718_v37  ;;  %v5206_v37 = vld [vmem:[#allocation54_spill] sm:$0xff] }
 0x1c1   : > { %v3053_v41 = vpop.eup %3052  ;;  %2062 = vmatprep.mubr.bf16.mxu1 %v1822_v1  ;;  %v817_v45 = vmul.f32 %v3051_v61, %v5193_v38  ;;  %v816_v51 = vmul.f32 %v3051_v61, %v5195_v19 }
 0x1c2   : > { %v721_v57 = vpop.xlane.xlu1 %720  ;;  %2063 = vmatmul.mubr.bf16.gmra.mxu1 %v1821_v18  ;;  %v1681_v12 = vpop.xlane.xlu0 %1680  ;;  %v1778_v16 = vmul.f32 %v3053_v41, %v5196_v20  ;;  %v1777_v52 = vmul.f32 %v3053_v41, %v5198_v62  ;;  %v5207_v18 = vld [vmem:[#allocation56_spill] sm:$0xff] }
 0x1c3   : > { %3066 = vrcp.f32 %v721_v57  ;;  %v861_v43 = vpack.c.bf16 %v817_v45, %v815_v63  ;;  %v860_v10 = vpack.c.bf16 %v816_v51, %v814_v28  ;;  %v5208_v28 = vld [vmem:[#allocation59_spill] sm:$0xff]  ;;  %v5209_v51 = vld [vmem:[#allocation61_spill] sm:$0xff] }
 0x1c4   : > { %v3055_v49 = vpop.eup %3054  ;;  %3068 = vrcp.f32 %v1681_v12  ;;  %v5210_v12 = vld [vmem:[#allocation58_spill] sm:$0xff] }
 0x1c5   : > { %1106 = vmatprep.mubr.bf16.mxu0 %v861_v43  ;;  %v1780_v59 = vmul.f32 %v3055_v49, %v5197_v14  ;;  %v1779_v2 = vmul.f32 %v3055_v49, %v5199_v33  ;;  %v3057_v30 = vpop.eup %3056 }
 0x1c6   : > { %v1684_v21 = vpop.xlane.xlu1 %1683  ;;  %1107 = vmatmul.mubr.bf16.gmra.mxu0 %v860_v10  ;;  %v724_v36 = vpop.xlane.xlu0 %723  ;;  %v819_v58 = vmul.f32 %v3057_v30, %v5200_v56  ;;  %v818_v6 = vmul.f32 %v3057_v30, %v5202_v22  ;;  %v5211_v10 = vld [vmem:[#allocation60_spill] sm:$0xff] }
 0x1c7   : > { %3070 = vrcp.f32 %v1684_v21  ;;  %v1824_v29 = vpack.c.bf16 %v1780_v59, %v1778_v16  ;;  %v1823_v15 = vpack.c.bf16 %v1779_v2, %v1777_v52  ;;  %v5212_v2 = vld [vmem:[#allocation63_spill] sm:$0xff] }
 0x1c8   : > { %v3059_v23 = vpop.eup %3058  ;;  %3072 = vrcp.f32 %v724_v36  ;;  %v5213_v36 = vld [vmem:[#allocation62_spill] sm:$0xff] }
 0x1c9   : > { %2070 = vmatprep.mubr.bf16.mxu1 %v1824_v29  ;;  %v821_v9 = vmul.f32 %v3059_v23, %v5201_v25  ;;  %v820_v39 = vmul.f32 %v3059_v23, %v5203_v4  ;;  %v3061_v40 = vpop.eup %3060 }
 0x1ca   : > { %v727_v47 = vpop.xlane.xlu1 %726  ;;  %2071 = vmatmul.mubr.bf16.gmra.mxu1 %v1823_v15  ;;  %v1687_v17 = vpop.xlane.xlu0 %1686  ;;  %v1782_v26 = vmul.f32 %v3061_v40, %v5204_v53  ;;  %v1781_v1 = vmul.f32 %v3061_v40, %v5206_v37 }
 0x1cb   : > { %3074 = vrcp.f32 %v727_v47  ;;  %v863_v54 = vpack.c.bf16 %v821_v9, %v819_v58  ;;  %v862_v31 = vpack.c.bf16 %v820_v39, %v818_v6  ;;  %v5214_v39 = vld [vmem:[#allocation64_spill] sm:$0xff] }
 0x1cc   : > { %v3063_v55 = vpop.eup %3062  ;;  %3076 = vrcp.f32 %v1687_v17 }
 0x1cd   : > { %1114 = vmatprep.mubr.bf16.mxu0 %v863_v54  ;;  %v1784_v7 = vmul.f32 %v3063_v55, %v5205_v8  ;;  %v1783_v61 = vmul.f32 %v3063_v55, %v5207_v18  ;;  %v3065_v5 = vpop.eup %3064  ;;  %v5215_v55 = vld [vmem:[#allocation66_spill] sm:$0xff]  ;;  %v5216_v8 = vld [vmem:[#allocation65_spill] sm:$0xff] }
 0x1ce   : > { %v1690_v63 = vpop.xlane.xlu1 %1689  ;;  %1115 = vmatmul.mubr.bf16.gmra.mxu0 %v862_v31  ;;  %v730_v41 = vpop.xlane.xlu0 %729  ;;  %v823_v19 = vmul.f32 %v3065_v5, %v5208_v28  ;;  %v822_v43 = vmul.f32 %v3065_v5, %v5210_v12 }
 0x1cf   : > { %3078 = vrcp.f32 %v1690_v63  ;;  %v1826_v38 = vpack.c.bf16 %v1784_v7, %v1782_v26  ;;  %v1825_v45 = vpack.c.bf16 %v1783_v61, %v1781_v1  ;;  %v5217_v7 = vld [vmem:[#allocation67_spill] sm:$0xff]  ;;  %v5218_v63 = vld [vmem:[#allocation69_spill] sm:$0xff] }
 0x1d0   : > { %v3067_v50 = vpop.eup %3066  ;;  %3080 = vrcp.f32 %v730_v41 }
 0x1d1   : > { %2078 = vmatprep.mubr.bf16.mxu1 %v1826_v38  ;;  %v825_v57 = vmul.f32 %v3067_v50, %v5209_v51  ;;  %v824_v49 = vmul.f32 %v3067_v50, %v5211_v10  ;;  %v3069_v20 = vpop.eup %3068  ;;  %v5219_v50 = vld [vmem:[#allocation68_spill] sm:$0xff] }
 0x1d2   : > { %v733_v16 = vpop.xlane.xlu1 %732  ;;  %2079 = vmatmul.mubr.bf16.gmra.mxu1 %v1825_v45  ;;  %v1693_v14 = vpop.xlane.xlu0 %1692  ;;  %v1786_v30 = vmul.f32 %v3069_v20, %v5212_v2  ;;  %v1785_v29 = vmul.f32 %v3069_v20, %v5213_v36 }
 0x1d3   : > { %3082 = vrcp.f32 %v733_v16  ;;  %v865_v59 = vpack.c.bf16 %v825_v57, %v823_v19  ;;  %v864_v62 = vpack.c.bf16 %v824_v49, %v822_v43 }
 0x1d4   : > { %v3071_v52 = vpop.eup %3070  ;;  %3084 = vrcp.f32 %v1693_v14 }
 0x1d5   : > { %v3073_v33 = vpop.eup %3072  ;;  %1122 = vmatprep.mubr.bf16.mxu0 %v865_v59  ;;  %v1788_v21 = vmul.f32 %v3071_v52, %v4360_v60  ;;  %v1787_v15 = vmul.f32 %v3071_v52, %v4356_v46 }
 0x1d6   : > { %v1696_v23 = vpop.xlane.xlu1 %1695  ;;  %1123 = vmatmul.mubr.bf16.gmra.mxu0 %v864_v62  ;;  %v736_v56 = vpop.xlane.xlu0 %735  ;;  %v827_v22 = vmul.f32 %v3073_v33, %v4370_v44  ;;  %v826_v60 = vmul.f32 %v3073_v33, %v5214_v39  ;;  %v5220_v33 = vld [vmem:[#allocation70_spill] sm:$0xff]  ;;  %v5226_v39 = vld [vmem:[#allocation77_spill] sm:$0xff] }
 0x1d7   : > { %3086 = vrcp.f32 %v1696_v23  ;;  %v1828_v58 = vpack.c.bf16 %v1788_v21, %v1786_v30  ;;  %v1827_v25 = vpack.c.bf16 %v1787_v15, %v1785_v29  ;;  %v5221_v30 = vld [vmem:[#allocation71_spill] sm:$0xff]  ;;  %v5222_v29 = vld [vmem:[#allocation73_spill] sm:$0xff] }
 0x1d8   : > { %v3075_v9 = vpop.eup %3074  ;;  %3088 = vrcp.f32 %v736_v56  ;;  %v5223_v23 = vld [vmem:[#allocation75_spill] sm:$0xff] }
 0x1d9   : > { %v3077_v6 = vpop.eup %3076  ;;  %2086 = vmatprep.mubr.bf16.mxu1 %v1828_v58  ;;  %v829_v4 = vmul.f32 %v3075_v9, %v4376_v11  ;;  %v828_v40 = vmul.f32 %v3075_v9, %v4372_v24  ;;  %v5224_v58 = vld [vmem:[#allocation72_spill] sm:$0xff]  ;;  %v5225_v9 = vld [vmem:[#allocation74_spill] sm:$0xff] }
 0x1da   : > { %v739_v47 = vpop.xlane.xlu1 %738  ;;  %2087 = vmatmul.mubr.bf16.gmra.mxu1 %v1827_v25  ;;  %v1699_v46 = vpop.xlane.xlu0 %1698  ;;  %v1790_v53 = vmul.f32 %v3077_v6, %v5215_v55  ;;  %v1789_v11 = vmul.f32 %v3077_v6, %v5216_v8  ;;  %v5230_v8 = vld [vmem:[#allocation81_spill] sm:$0xff] }
 0x1db   : > { %3090 = vrcp.f32 %v739_v47  ;;  %v867_v17 = vpack.c.bf16 %v829_v4, %v827_v22  ;;  %v866_v54 = vpack.c.bf16 %v828_v40, %v826_v60  ;;  %v5227_v40 = vld [vmem:[#allocation79_spill] sm:$0xff] }
 0x1dc   : > { %v3079_v31 = vpop.eup %3078  ;;  %3092 = vrcp.f32 %v1699_v46  ;;  %v5228_v46 = vld [vmem:[#allocation76_spill] sm:$0xff] }
 0x1dd   : > { %v3081_v26 = vpop.eup %3080  ;;  %1130 = vmatprep.mubr.bf16.mxu0 %v867_v17  ;;  %v1792_v44 = vmul.f32 %v3079_v31, %v4392_v42  ;;  %v1791_v37 = vmul.f32 %v3079_v31, %v5217_v7  ;;  %v5231_v7 = vld [vmem:[#allocation83_spill] sm:$0xff] }
 0x1de   : > { %v1702_v1 = vpop.xlane.xlu1 %1701  ;;  %1131 = vmatmul.mubr.bf16.gmra.mxu0 %v866_v54  ;;  %v742_v24 = vpop.xlane.xlu0 %741  ;;  %v831_v41 = vmul.f32 %v3081_v26, %v5218_v63  ;;  %v830_v42 = vmul.f32 %v3081_v26, %v5219_v50  ;;  %v5229_v54 = vld [vmem:[#allocation78_spill] sm:$0xff] }
 0x1df   : > { %3094 = vrcp.f32 %v1702_v1  ;;  %v1830_v18 = vpack.c.bf16 %v1792_v44, %v1790_v53  ;;  %v1829_v61 = vpack.c.bf16 %v1791_v37, %v1789_v11  ;;  %v5232_v1 = vld [vmem:[#allocation80_spill] sm:$0xff] }
 0x1e0   : > { %v3083_v5 = vpop.eup %3082  ;;  %3096 = vrcp.f32 %v742_v24 }
 0x1e1   : > { %v3085_v38 = vpop.eup %3084  ;;  %2094 = vmatprep.mubr.bf16.mxu1 %v1830_v18  ;;  %v833_v45 = vmul.f32 %v3083_v5, %v4408_v34  ;;  %v832_v28 = vmul.f32 %v3083_v5, %v4404_v48  ;;  %v5233_v18 = vld [vmem:[#allocation82_spill] sm:$0xff] }
 0x1e2   : > { %v745_v19 = vpop.xlane.xlu1 %744  ;;  %2095 = vmatmul.mubr.bf16.gmra.mxu1 %v1829_v61  ;;  %v1705_v51 = vpop.xlane.xlu0 %1704  ;;  %v1794_v10 = vmul.f32 %v3085_v38, %v4418_v32  ;;  %v1793_v20 = vmul.f32 %v3085_v38, %v4413_v13 }
 0x1e3   : > { %3098 = vrcp.f32 %v745_v19  ;;  %v869_v57 = vpack.c.bf16 %v833_v45, %v831_v41  ;;  %v868_v12 = vpack.c.bf16 %v832_v28, %v830_v42 }
 0x1e4   : > { %v3087_v43 = vpop.eup %3086  ;;  %3100 = vrcp.f32 %v1705_v51 }
 0x1e5   : > { %1138 = vmatprep.mubr.bf16.mxu0 %v869_v57  ;;  %v1796_v49 = vmul.f32 %v3087_v43, %v4424_v35  ;;  %v1795_v34 = vmul.f32 %v3087_v43, %v4420_v3  ;;  %v3089_v16 = vpop.eup %3088 }
 0x1e6   : > { %v1708_v14 = vpop.xlane.xlu1 %1707  ;;  %1139 = vmatmul.mubr.bf16.gmra.mxu0 %v868_v12  ;;  %v835_v52 = vmul.f32 %v3089_v16, %v4430_v27  ;;  %v834_v2 = vmul.f32 %v3089_v16, %v5220_v33 }
 0x1e7   : > { %3102 = vrcp.f32 %v1708_v14  ;;  %v1832_v48 = vpack.c.bf16 %v1796_v49, %v1794_v10  ;;  %v1831_v59 = vpack.c.bf16 %v1795_v34, %v1793_v20 }
 0x1e8   : > { %v3091_v62 = vpop.eup %3090 }
 0x1e9   : > { %2102 = vmatprep.mubr.bf16.mxu1 %v1832_v48  ;;  %v837_v32 = vmul.f32 %v3091_v62, %v4436_v0  ;;  %v836_v35 = vmul.f32 %v3091_v62, %v5221_v30  ;;  %v3093_v21 = vpop.eup %3092 }
 0x1ea   : > { %2103 = vmatmul.mubr.bf16.gmra.mxu1 %v1831_v59  ;;  %v1798_v15 = vmul.f32 %v3093_v21, %v5222_v29  ;;  %v1797_v25 = vmul.f32 %v3093_v21, %v5224_v58 }
 0x1eb   : > { %v871_v13 = vpack.c.bf16 %v837_v32, %v835_v52  ;;  %v870_v3 = vpack.c.bf16 %v836_v35, %v834_v2 }
 0x1ec   : > { %v3095_v36 = vpop.eup %3094 }
 0x1ed   : > { %1146 = vmatprep.mubr.bf16.mxu0 %v871_v13  ;;  %v1800_v56 = vmul.f32 %v3095_v36, %v5223_v23  ;;  %v1799_v27 = vmul.f32 %v3095_v36, %v5225_v9  ;;  %v3097_v22 = vpop.eup %3096 }
 0x1ee   : > { %1147 = vmatmul.mubr.bf16.gmra.mxu0 %v870_v3  ;;  %v839_v60 = vmul.f32 %v3097_v22, %v5226_v39  ;;  %v838_v17 = vmul.f32 %v3097_v22, %v5228_v46 }
 0x1ef   : > { %v1834_v0 = vpack.c.bf16 %v1800_v56, %v1798_v15  ;;  %v1833_v6 = vpack.c.bf16 %v1799_v27, %v1797_v25 }
 0x1f0   : > { %v3099_v4 = vpop.eup %3098 }
 0x1f1   : > { %2110 = vmatprep.mubr.bf16.mxu1 %v1834_v0  ;;  %v841_v47 = vmul.f32 %v3099_v4, %v5227_v40  ;;  %v840_v31 = vmul.f32 %v3099_v4, %v5229_v54  ;;  %v3101_v55 = vpop.eup %3100 }
 0x1f2   : > { %2111 = vmatmul.mubr.bf16.gmra.mxu1 %v1833_v6  ;;  %v1802_v11 = vmul.f32 %v3101_v55, %v5230_v8  ;;  %v1801_v24 = vmul.f32 %v3101_v55, %v5232_v1 }
 0x1f3   : > { %v873_v53 = vpack.c.bf16 %v841_v47, %v839_v60  ;;  %v872_v26 = vpack.c.bf16 %v840_v31, %v838_v17 }
 0x1f4   : > { %v3103_v44 = vpop.eup %3102 }
 0x1f5   : > { %1154 = vmatprep.mubr.bf16.mxu0 %v873_v53  ;;  %v1804_v37 = vmul.f32 %v3103_v44, %v5231_v7  ;;  %v1803_v61 = vmul.f32 %v3103_v44, %v5233_v18 }
 0x1f6   : > { %1155 = vmatmul.mubr.bf16.gmra.mxu0 %v872_v26 }
 0x1f7   : > { %v1836_v5 = vpack.c.bf16 %v1804_v37, %v1802_v11  ;;  %v1835_v63 = vpack.c.bf16 %v1803_v61, %v1801_v24 }
 0x1f9   : > { %2118 = vmatprep.mubr.bf16.mxu1 %v1836_v5 }
 0x1fa   : > { %2119 = vmatmul.mubr.bf16.gmra.mxu1 %v1835_v63 }
 0x23e   : > { %v2439_v41 = vpop.f32.mrf.mxu0 }
 0x240   : > { %v2440_v38 = vpop.f32.mrf.mxu0 }
 0x241   : > { %v2441_v45 = vadd.f32 %v2440_v38, %v2439_v41 }
 0x242   : > { %v2442_v50 = vpop.f32.mrf.mxu0  ;;  %v2551_v42 = vpop.f32.mrf.mxu1 }
 0x243   : > { %1164 = vst.msk [vmem:[%s4608_s8] sm:$0xff] %vm1163_vm0, %v2441_v45 }
 0x244   : > { %v2443_v28 = vpop.f32.mrf.mxu0  ;;  %v2552_v19 = vpop.f32.mrf.mxu1 }
 0x245   : > { %v2444_v51 = vadd.f32 %v2443_v28, %v2442_v50  ;;  %v2553_v57 = vadd.f32 %v2552_v19, %v2551_v42 }
 0x246   : > { %v2445_v12 = vpop.f32.mrf.mxu0  ;;  %v2554_v43 = vpop.f32.mrf.mxu1 }
 0x247   : > { %1165 = vst.msk [vmem:[%s4608_s8 + $0x8] sm:$0xff] %vm1163_vm0, %v2444_v51  ;;  %2385 = vst.msk [vmem:[%s4608_s8 + $0x100] sm:$0xff] %vm1163_vm0, %v2553_v57 }
 0x248   : > { %v2446_v10 = vpop.f32.mrf.mxu0  ;;  %v2555_v49 = vpop.f32.mrf.mxu1 }
 0x249   : > { %v2447_v20 = vadd.f32 %v2446_v10, %v2445_v12  ;;  %v2556_v34 = vadd.f32 %v2555_v49, %v2554_v43 }
 0x24a   : > { %v2448_v16 = vpop.f32.mrf.mxu0  ;;  %v2557_v14 = vpop.f32.mrf.mxu1 }
 0x24b   : > { %1166 = vst.msk [vmem:[%s4608_s8 + $0x10] sm:$0xff] %vm1163_vm0, %v2447_v20  ;;  %2386 = vst.msk [vmem:[%s4608_s8 + $0x108] sm:$0xff] %vm1163_vm0, %v2556_v34 }
 0x24c   : > { %v2449_v48 = vpop.f32.mrf.mxu0  ;;  %v2558_v59 = vpop.f32.mrf.mxu1 }
 0x24d   : > { %v2450_v62 = vadd.f32 %v2449_v48, %v2448_v16  ;;  %v2559_v52 = vadd.f32 %v2558_v59, %v2557_v14 }
 0x24e   : > { %v2451_v32 = vpop.f32.mrf.mxu0  ;;  %v2560_v33 = vpop.f32.mrf.mxu1 }
 0x24f   : > { %1167 = vst.msk [vmem:[%s4608_s8 + $0x18] sm:$0xff] %vm1163_vm0, %v2450_v62  ;;  %2387 = vst.msk [vmem:[%s4608_s8 + $0x110] sm:$0xff] %vm1163_vm0, %v2559_v52 }
 0x250   : > { %v2452_v2 = vpop.f32.mrf.mxu0  ;;  %v2561_v30 = vpop.f32.mrf.mxu1 }
 0x251   : > { %v2453_v35 = vadd.f32 %v2452_v2, %v2451_v32  ;;  %v2562_v21 = vadd.f32 %v2561_v30, %v2560_v33 }
 0x252   : > { %v2454_v13 = vpop.f32.mrf.mxu0  ;;  %v2563_v3 = vpop.f32.mrf.mxu1 }
 0x253   : > { %1168 = vst.msk [vmem:[%s4608_s8 + $0x20] sm:$0xff] %vm1163_vm0, %v2453_v35  ;;  %2388 = vst.msk [vmem:[%s4608_s8 + $0x118] sm:$0xff] %vm1163_vm0, %v2562_v21 }
 0x254   : > { %v2455_v36 = vpop.f32.mrf.mxu0  ;;  %v2564_v29 = vpop.f32.mrf.mxu1 }
 0x255   : > { %v2456_v15 = vadd.f32 %v2455_v36, %v2454_v13  ;;  %v2565_v23 = vadd.f32 %v2564_v29, %v2563_v3 }
 0x256   : > { %v2457_v56 = vpop.f32.mrf.mxu0  ;;  %v2566_v58 = vpop.f32.mrf.mxu1 }
 0x257   : > { %1169 = vst.msk [vmem:[%s4608_s8 + $0x28] sm:$0xff] %vm1163_vm0, %v2456_v15  ;;  %2389 = vst.msk [vmem:[%s4608_s8 + $0x120] sm:$0xff] %vm1163_vm0, %v2565_v23 }
 0x258   : > { %v2458_v25 = vpop.f32.mrf.mxu0  ;;  %v2567_v9 = vpop.f32.mrf.mxu1 }
 0x259   : > { %v2459_v27 = vadd.f32 %v2458_v25, %v2457_v56  ;;  %v2568_v22 = vadd.f32 %v2567_v9, %v2566_v58 }
 0x25a   : > { %v2460_v0 = vpop.f32.mrf.mxu0  ;;  %v2569_v6 = vpop.f32.mrf.mxu1 }
 0x25b   : > { %1170 = vst.msk [vmem:[%s4608_s8 + $0x30] sm:$0xff] %vm1163_vm0, %v2459_v27  ;;  %2390 = vst.msk [vmem:[%s4608_s8 + $0x128] sm:$0xff] %vm1163_vm0, %v2568_v22 }
 0x25c   : > { %v2461_v4 = vpop.f32.mrf.mxu0  ;;  %v2570_v39 = vpop.f32.mrf.mxu1 }
 0x25d   : > { %v2462_v60 = vadd.f32 %v2461_v4, %v2460_v0  ;;  %v2571_v40 = vadd.f32 %v2570_v39, %v2569_v6 }
 0x25e   : > { %v2463_v47 = vpop.f32.mrf.mxu0  ;;  %v2572_v46 = vpop.f32.mrf.mxu1 }
 0x25f   : > { %1171 = vst.msk [vmem:[%s4608_s8 + $0x38] sm:$0xff] %vm1163_vm0, %v2462_v60  ;;  %2391 = vst.msk [vmem:[%s4608_s8 + $0x130] sm:$0xff] %vm1163_vm0, %v2571_v40 }
 0x260   : > { %v2464_v17 = vpop.f32.mrf.mxu0  ;;  %v2573_v54 = vpop.f32.mrf.mxu1 }
 0x261   : > { %v2465_v31 = vadd.f32 %v2464_v17, %v2463_v47  ;;  %v2574_v55 = vadd.f32 %v2573_v54, %v2572_v46 }
 0x262   : > { %v2466_v53 = vpop.f32.mrf.mxu0  ;;  %v2575_v26 = vpop.f32.mrf.mxu1 }
 0x263   : > { %1172 = vst.msk [vmem:[%s4608_s8 + $0x40] sm:$0xff] %vm1163_vm0, %v2465_v31  ;;  %2392 = vst.msk [vmem:[%s4608_s8 + $0x138] sm:$0xff] %vm1163_vm0, %v2574_v55 }
 0x264   : > { %v2467_v44 = vpop.f32.mrf.mxu0  ;;  %v2576_v8 = vpop.f32.mrf.mxu1 }
 0x265   : > { %v2468_v11 = vadd.f32 %v2467_v44, %v2466_v53  ;;  %v2577_v7 = vadd.f32 %v2576_v8, %v2575_v26 }
 0x266   : > { %v2469_v37 = vpop.f32.mrf.mxu0  ;;  %v2578_v1 = vpop.f32.mrf.mxu1 }
 0x267   : > { %1173 = vst.msk [vmem:[%s4608_s8 + $0x48] sm:$0xff] %vm1163_vm0, %v2468_v11  ;;  %2393 = vst.msk [vmem:[%s4608_s8 + $0x140] sm:$0xff] %vm1163_vm0, %v2577_v7 }
 0x268   : > { %v2470_v24 = vpop.f32.mrf.mxu0  ;;  %v2579_v18 = vpop.f32.mrf.mxu1 }
 0x269   : > { %v2471_v61 = vadd.f32 %v2470_v24, %v2469_v37  ;;  %v2580_v5 = vadd.f32 %v2579_v18, %v2578_v1 }
 0x26a   : > { %v2472_v63 = vpop.f32.mrf.mxu0  ;;  %v2581_v41 = vpop.f32.mrf.mxu1 }
 0x26b   : > { %1174 = vst.msk [vmem:[%s4608_s8 + $0x50] sm:$0xff] %vm1163_vm0, %v2471_v61  ;;  %2394 = vst.msk [vmem:[%s4608_s8 + $0x148] sm:$0xff] %vm1163_vm0, %v2580_v5 }
 0x26c   : > { %v2473_v38 = vpop.f32.mrf.mxu0  ;;  %v2582_v45 = vpop.f32.mrf.mxu1 }
 0x26d   : > { %v2474_v50 = vadd.f32 %v2473_v38, %v2472_v63  ;;  %v2583_v42 = vadd.f32 %v2582_v45, %v2581_v41 }
 0x26e   : > { %v2475_v28 = vpop.f32.mrf.mxu0  ;;  %v2584_v19 = vpop.f32.mrf.mxu1 }
 0x26f   : > { %1175 = vst.msk [vmem:[%s4608_s8 + $0x58] sm:$0xff] %vm1163_vm0, %v2474_v50  ;;  %2395 = vst.msk [vmem:[%s4608_s8 + $0x150] sm:$0xff] %vm1163_vm0, %v2583_v42 }
 0x270   : > { %v2476_v51 = vpop.f32.mrf.mxu0  ;;  %v2585_v57 = vpop.f32.mrf.mxu1 }
 0x271   : > { %v2477_v12 = vadd.f32 %v2476_v51, %v2475_v28  ;;  %v2586_v43 = vadd.f32 %v2585_v57, %v2584_v19 }
 0x272   : > { %v2478_v10 = vpop.f32.mrf.mxu0  ;;  %v2587_v49 = vpop.f32.mrf.mxu1 }
 0x273   : > { %1176 = vst.msk [vmem:[%s4608_s8 + $0x60] sm:$0xff] %vm1163_vm0, %v2477_v12  ;;  %2396 = vst.msk [vmem:[%s4608_s8 + $0x158] sm:$0xff] %vm1163_vm0, %v2586_v43 }
 0x274   : > { %v2479_v20 = vpop.f32.mrf.mxu0  ;;  %v2588_v34 = vpop.f32.mrf.mxu1 }
 0x275   : > { %v2480_v16 = vadd.f32 %v2479_v20, %v2478_v10  ;;  %v2589_v14 = vadd.f32 %v2588_v34, %v2587_v49 }
 0x276   : > { %v2481_v48 = vpop.f32.mrf.mxu0  ;;  %v2590_v59 = vpop.f32.mrf.mxu1 }
 0x277   : > { %1177 = vst.msk [vmem:[%s4608_s8 + $0x68] sm:$0xff] %vm1163_vm0, %v2480_v16  ;;  %2397 = vst.msk [vmem:[%s4608_s8 + $0x160] sm:$0xff] %vm1163_vm0, %v2589_v14 }
 0x278   : > { %v2482_v62 = vpop.f32.mrf.mxu0  ;;  %v2591_v52 = vpop.f32.mrf.mxu1 }
 0x279   : > { %v2483_v32 = vadd.f32 %v2482_v62, %v2481_v48  ;;  %v2592_v33 = vadd.f32 %v2591_v52, %v2590_v59 }
 0x27a   : > { %v2484_v2 = vpop.f32.mrf.mxu0  ;;  %v2593_v30 = vpop.f32.mrf.mxu1 }
 0x27b   : > { %1178 = vst.msk [vmem:[%s4608_s8 + $0x70] sm:$0xff] %vm1163_vm0, %v2483_v32  ;;  %2398 = vst.msk [vmem:[%s4608_s8 + $0x168] sm:$0xff] %vm1163_vm0, %v2592_v33 }
 0x27c   : > { %v2485_v35 = vpop.f32.mrf.mxu0  ;;  %v2594_v21 = vpop.f32.mrf.mxu1 }
 0x27d   : > { %v2486_v13 = vadd.f32 %v2485_v35, %v2484_v2  ;;  %v2595_v3 = vadd.f32 %v2594_v21, %v2593_v30 }
 0x27e   : > { %v2487_v36 = vpop.f32.mrf.mxu0  ;;  %v2596_v29 = vpop.f32.mrf.mxu1 }
 0x27f   : > { %1179 = vst.msk [vmem:[%s4608_s8 + $0x78] sm:$0xff] %vm1163_vm0, %v2486_v13  ;;  %2399 = vst.msk [vmem:[%s4608_s8 + $0x170] sm:$0xff] %vm1163_vm0, %v2595_v3 }
 0x280   : > { %v2488_v15 = vpop.f32.mrf.mxu0  ;;  %v2597_v23 = vpop.f32.mrf.mxu1 }
 0x281   : > { %v2489_v56 = vadd.f32 %v2488_v15, %v2487_v36  ;;  %v2598_v58 = vadd.f32 %v2597_v23, %v2596_v29 }
 0x282   : > { %v2490_v25 = vpop.f32.mrf.mxu0  ;;  %v2599_v9 = vpop.f32.mrf.mxu1 }
 0x283   : > { %1180 = vst.msk [vmem:[%s4608_s8 + $0x80] sm:$0xff] %vm1163_vm0, %v2489_v56  ;;  %2400 = vst.msk [vmem:[%s4608_s8 + $0x178] sm:$0xff] %vm1163_vm0, %v2598_v58 }
 0x284   : > { %v2491_v27 = vpop.f32.mrf.mxu0  ;;  %v2600_v22 = vpop.f32.mrf.mxu1 }
 0x285   : > { %v2492_v0 = vadd.f32 %v2491_v27, %v2490_v25  ;;  %v2601_v6 = vadd.f32 %v2600_v22, %v2599_v9 }
 0x286   : > { %v2493_v4 = vpop.f32.mrf.mxu0  ;;  %v2602_v39 = vpop.f32.mrf.mxu1 }
 0x287   : > { %1181 = vst.msk [vmem:[%s4608_s8 + $0x88] sm:$0xff] %vm1163_vm0, %v2492_v0  ;;  %2401 = vst.msk [vmem:[%s4608_s8 + $0x180] sm:$0xff] %vm1163_vm0, %v2601_v6 }
 0x288   : > { %v2494_v60 = vpop.f32.mrf.mxu0  ;;  %v2603_v40 = vpop.f32.mrf.mxu1 }
 0x289   : > { %v2495_v47 = vadd.f32 %v2494_v60, %v2493_v4  ;;  %v2604_v46 = vadd.f32 %v2603_v40, %v2602_v39 }
 0x28a   : > { %v2496_v17 = vpop.f32.mrf.mxu0  ;;  %v2605_v54 = vpop.f32.mrf.mxu1 }
 0x28b   : > { %1182 = vst.msk [vmem:[%s4608_s8 + $0x90] sm:$0xff] %vm1163_vm0, %v2495_v47  ;;  %2402 = vst.msk [vmem:[%s4608_s8 + $0x188] sm:$0xff] %vm1163_vm0, %v2604_v46 }
 0x28c   : > { %v2497_v31 = vpop.f32.mrf.mxu0  ;;  %v2606_v55 = vpop.f32.mrf.mxu1 }
 0x28d   : > { %v2498_v53 = vadd.f32 %v2497_v31, %v2496_v17  ;;  %v2607_v26 = vadd.f32 %v2606_v55, %v2605_v54 }
 0x28e   : > { %v2499_v44 = vpop.f32.mrf.mxu0  ;;  %v2608_v8 = vpop.f32.mrf.mxu1 }
 0x28f   : > { %1183 = vst.msk [vmem:[%s4608_s8 + $0x98] sm:$0xff] %vm1163_vm0, %v2498_v53  ;;  %2403 = vst.msk [vmem:[%s4608_s8 + $0x190] sm:$0xff] %vm1163_vm0, %v2607_v26 }
 0x290   : > { %v2500_v11 = vpop.f32.mrf.mxu0  ;;  %v2609_v7 = vpop.f32.mrf.mxu1 }
 0x291   : > { %v2501_v37 = vadd.f32 %v2500_v11, %v2499_v44  ;;  %v2610_v1 = vadd.f32 %v2609_v7, %v2608_v8 }
 0x292   : > { %v2502_v24 = vpop.f32.mrf.mxu0  ;;  %v2611_v18 = vpop.f32.mrf.mxu1 }
 0x293   : > { %1184 = vst.msk [vmem:[%s4608_s8 + $0xa0] sm:$0xff] %vm1163_vm0, %v2501_v37  ;;  %2404 = vst.msk [vmem:[%s4608_s8 + $0x198] sm:$0xff] %vm1163_vm0, %v2610_v1 }
 0x294   : > { %v2503_v61 = vpop.f32.mrf.mxu0  ;;  %v2612_v5 = vpop.f32.mrf.mxu1 }
 0x295   : > { %v2504_v63 = vadd.f32 %v2503_v61, %v2502_v24  ;;  %v2613_v41 = vadd.f32 %v2612_v5, %v2611_v18 }
 0x296   : > { %v2505_v38 = vpop.f32.mrf.mxu0  ;;  %v2614_v45 = vpop.f32.mrf.mxu1 }
 0x297   : > { %1185 = vst.msk [vmem:[%s4608_s8 + $0xa8] sm:$0xff] %vm1163_vm0, %v2504_v63  ;;  %2405 = vst.msk [vmem:[%s4608_s8 + $0x1a0] sm:$0xff] %vm1163_vm0, %v2613_v41 }
 0x298   : > { %v2506_v50 = vpop.f32.mrf.mxu0  ;;  %v2615_v42 = vpop.f32.mrf.mxu1 }
 0x299   : > { %v2507_v28 = vadd.f32 %v2506_v50, %v2505_v38  ;;  %v2616_v19 = vadd.f32 %v2615_v42, %v2614_v45 }
 0x29a   : > { %v2508_v51 = vpop.f32.mrf.mxu0  ;;  %v2617_v57 = vpop.f32.mrf.mxu1 }
 0x29b   : > { %1186 = vst.msk [vmem:[%s4608_s8 + $0xb0] sm:$0xff] %vm1163_vm0, %v2507_v28  ;;  %2406 = vst.msk [vmem:[%s4608_s8 + $0x1a8] sm:$0xff] %vm1163_vm0, %v2616_v19 }
 0x29c   : > { %v2509_v12 = vpop.f32.mrf.mxu0  ;;  %v2618_v43 = vpop.f32.mrf.mxu1 }
 0x29d   : > { %v2510_v10 = vadd.f32 %v2509_v12, %v2508_v51  ;;  %v2619_v49 = vadd.f32 %v2618_v43, %v2617_v57 }
 0x29e   : > { %v2511_v20 = vpop.f32.mrf.mxu0  ;;  %v2620_v34 = vpop.f32.mrf.mxu1 }
 0x29f   : > { %1187 = vst.msk [vmem:[%s4608_s8 + $0xb8] sm:$0xff] %vm1163_vm0, %v2510_v10  ;;  %2407 = vst.msk [vmem:[%s4608_s8 + $0x1b0] sm:$0xff] %vm1163_vm0, %v2619_v49 }
 0x2a0   : > { %v2512_v16 = vpop.f32.mrf.mxu0  ;;  %v2621_v14 = vpop.f32.mrf.mxu1 }
 0x2a1   : > { %v2513_v48 = vadd.f32 %v2512_v16, %v2511_v20  ;;  %v2622_v59 = vadd.f32 %v2621_v14, %v2620_v34 }
 0x2a2   : > { %v2514_v62 = vpop.f32.mrf.mxu0  ;;  %v2623_v52 = vpop.f32.mrf.mxu1 }
 0x2a3   : > { %1188 = vst.msk [vmem:[%s4608_s8 + $0xc0] sm:$0xff] %vm1163_vm0, %v2513_v48  ;;  %2408 = vst.msk [vmem:[%s4608_s8 + $0x1b8] sm:$0xff] %vm1163_vm0, %v2622_v59 }
 0x2a4   : > { %v2515_v32 = vpop.f32.mrf.mxu0  ;;  %v2624_v33 = vpop.f32.mrf.mxu1 }
 0x2a5   : > { %v2516_v2 = vadd.f32 %v2515_v32, %v2514_v62  ;;  %v2625_v30 = vadd.f32 %v2624_v33, %v2623_v52 }
 0x2a6   : > { %v2517_v35 = vpop.f32.mrf.mxu0  ;;  %v2626_v21 = vpop.f32.mrf.mxu1 }
 0x2a7   : > { %1189 = vst.msk [vmem:[%s4608_s8 + $0xc8] sm:$0xff] %vm1163_vm0, %v2516_v2  ;;  %2409 = vst.msk [vmem:[%s4608_s8 + $0x1c0] sm:$0xff] %vm1163_vm0, %v2625_v30 }
 0x2a8   : > { %v2518_v13 = vpop.f32.mrf.mxu0  ;;  %v2627_v3 = vpop.f32.mrf.mxu1 }
 0x2a9   : > { %v2519_v36 = vadd.f32 %v2518_v13, %v2517_v35  ;;  %v2628_v29 = vadd.f32 %v2627_v3, %v2626_v21 }
 0x2aa   : > { %v2520_v15 = vpop.f32.mrf.mxu0  ;;  %v2629_v23 = vpop.f32.mrf.mxu1 }
 0x2ab   : > { %1190 = vst.msk [vmem:[%s4608_s8 + $0xd0] sm:$0xff] %vm1163_vm0, %v2519_v36  ;;  %2410 = vst.msk [vmem:[%s4608_s8 + $0x1c8] sm:$0xff] %vm1163_vm0, %v2628_v29 }
 0x2ac   : > { %v2521_v56 = vpop.f32.mrf.mxu0  ;;  %v2630_v58 = vpop.f32.mrf.mxu1 }
 0x2ad   : > { %v2522_v25 = vadd.f32 %v2521_v56, %v2520_v15  ;;  %v2631_v9 = vadd.f32 %v2630_v58, %v2629_v23 }
 0x2ae   : > { %v2523_v27 = vpop.f32.mrf.mxu0  ;;  %v2632_v22 = vpop.f32.mrf.mxu1 }
 0x2af   : > { %1191 = vst.msk [vmem:[%s4608_s8 + $0xd8] sm:$0xff] %vm1163_vm0, %v2522_v25  ;;  %2411 = vst.msk [vmem:[%s4608_s8 + $0x1d0] sm:$0xff] %vm1163_vm0, %v2631_v9 }
 0x2b0   : > { %v2524_v0 = vpop.f32.mrf.mxu0  ;;  %v2633_v6 = vpop.f32.mrf.mxu1 }
 0x2b1   : > { %v2525_v4 = vadd.f32 %v2524_v0, %v2523_v27  ;;  %v2634_v39 = vadd.f32 %v2633_v6, %v2632_v22 }
 0x2b2   : > { %v2526_v60 = vpop.f32.mrf.mxu0  ;;  %v2635_v40 = vpop.f32.mrf.mxu1 }
 0x2b3   : > { %1192 = vst.msk [vmem:[%s4608_s8 + $0xe0] sm:$0xff] %vm1163_vm0, %v2525_v4  ;;  %2412 = vst.msk [vmem:[%s4608_s8 + $0x1d8] sm:$0xff] %vm1163_vm0, %v2634_v39 }
 0x2b4   : > { %v2527_v47 = vpop.f32.mrf.mxu0  ;;  %v2636_v46 = vpop.f32.mrf.mxu1 }
 0x2b5   : > { %v2528_v17 = vadd.f32 %v2527_v47, %v2526_v60  ;;  %v2637_v54 = vadd.f32 %v2636_v46, %v2635_v40 }
 0x2b6   : > { %v2529_v31 = vpop.f32.mrf.mxu0  ;;  %v2638_v55 = vpop.f32.mrf.mxu1 }
 0x2b7   : > { %1193 = vst.msk [vmem:[%s4608_s8 + $0xe8] sm:$0xff] %vm1163_vm0, %v2528_v17  ;;  %2413 = vst.msk [vmem:[%s4608_s8 + $0x1e0] sm:$0xff] %vm1163_vm0, %v2637_v54 }
 0x2b8   : > { %v2530_v53 = vpop.f32.mrf.mxu0  ;;  %v2639_v26 = vpop.f32.mrf.mxu1 }
 0x2b9   : > { %v2531_v44 = vadd.f32 %v2530_v53, %v2529_v31  ;;  %v2640_v8 = vadd.f32 %v2639_v26, %v2638_v55 }
 0x2ba   : > { %v2532_v11 = vpop.f32.mrf.mxu0  ;;  %v2641_v7 = vpop.f32.mrf.mxu1 }
 0x2bb   : > { %1194 = vst.msk [vmem:[%s4608_s8 + $0xf0] sm:$0xff] %vm1163_vm0, %v2531_v44  ;;  %2414 = vst.msk [vmem:[%s4608_s8 + $0x1e8] sm:$0xff] %vm1163_vm0, %v2640_v8 }
 0x2bc   : > { %v2533_v37 = vpop.f32.mrf.mxu0  ;;  %v2642_v1 = vpop.f32.mrf.mxu1 }
 0x2bd   : > { %v2534_v24 = vadd.f32 %v2533_v37, %v2532_v11  ;;  %v2643_v18 = vadd.f32 %v2642_v1, %v2641_v7 }
 0x2be   : > { %v2644_v61 = vpop.f32.mrf.mxu1 }
 0x2bf   : > { %1195 = vst.msk [vmem:[%s4608_s8 + $0xf8] sm:$0xff] %vm1163_vm0, %v2534_v24  ;;  %2415 = vst.msk [vmem:[%s4608_s8 + $0x1f0] sm:$0xff] %vm1163_vm0, %v2643_v18 }
 0x2c0   : > { %v2645_v5 = vpop.f32.mrf.mxu1 }
 0x2c1   : > { %v2646_v63 = vadd.f32 %v2645_v5, %v2644_v61 }
 0x2c3   : > { %2416 = vst.msk [vmem:[%s4608_s8 + $0x1f8] sm:$0xff] %vm1163_vm0, %v2646_v63 }
 0x2c4 PF: > { %p13_p9 = scmp.ge.s32.totalorder %s3211_s17, 4   ;;  %s5234_s12 = smov %s3158_s13 }
 0x2c5   : > { %s5235_s13 = smov %s3162_s14  ;;  %s5236_s14 = smov %s3221_s20 }
 0x2c6   : > { %s5237_s15 = smov %s3211_s17  ;;  %15 = sbr.rel (!%p13_p9) target bundleno = 3 (0x3), region = 78 }
 0x2cb   :  { %2184 = vsyncpa [#allocation3], 1 }
 0x2cc   :  { %2186 = vsyncpa [#allocation3 + $0x1], 1 }

</bundles_post_ra>
